<compile_context>
chip_gen: v7x
topology: tpu7x:2x2x1
jax: 0.10.0
libtpu: 0.0.40
codegen_flags: <defaults>
</compile_context>

<pallas_src>
import numpy as np
import jax
import jax.numpy as jnp
from jax import lax
from jax.experimental import pallas as pl
from jax.experimental.pallas import tpu as pltpu

# ---------------- configuration (small but consistent with the module) -------------
RESOLUTION = 64                       # input spatial size (multiple of 32)
UPSAMPLE = 7                          # nn.Upsample(scale_factor=7), nearest
POOL_K = RESOLUTION // 32             # AvgPool2d kernel (= stride)
OUT_RES = (RESOLUTION * UPSAMPLE) // POOL_K   # = 224 (CLIP input resolution)
PATCH = 32
N_PATCH = (OUT_RES // PATCH) ** 2     # 49 patches
C = 3
PATCH_DIM = C * PATCH * PATCH         # 3072 (flattened 32x32x3 patch)
IMG_DIM = C * RESOLUTION * RESOLUTION # 12288 (flattened NCHW image)
EMBED = 128                           # reduced CLIP embed dim (real CLIP: 512)
SEQ = 8
VOCAB = 64
LOGIT_SCALE = float(np.exp(np.log(1.0 / 0.07)))   # CLIP logit_scale initialization


# ---------------- setup: separable upsample(x7 nearest) + avgpool(k) matrix --------
def make_resize_matrix():
    o = np.arange(OUT_RES).reshape(-1, 1)          # [224, 1] output row
    w = np.arange(POOL_K).reshape(1, -1)           # [1, k]   position inside pool window
    ups = o * POOL_K + w                           # upsampled-row indices covered
    src = ups // UPSAMPLE                          # source rows (nearest upsample)
    rows = np.broadcast_to(o, src.shape)
    A = np.zeros((OUT_RES, RESOLUTION), np.float32)
    np.add.at(A, (rows, src), 1.0 / POOL_K)        # duplicates accumulate correctly
    return jnp.asarray(A)                          # resized plane = A @ x @ A.T


# ---------------- setup: fold the whole (linear) image tower into one weight -------
def fold_image_tower(A, W_img):
    """Collapse resize (A@x@A^T), 32x32 patchify, patch-embedding (W_img) and the
    mean over the 49 patches into one effective weight [C*H*W, EMBED]."""
    g = OUT_RES // PATCH
    # A_r[p, h] = sum_gr A[gr*32 + p, h]  (patch-grid sum comes from the patch mean)
    A_r = A.reshape(g, PATCH, RESOLUTION).sum(axis=0)                 # [32, H]
    W4 = W_img.reshape(C, PATCH, PATCH, EMBED)                        # (c, ph, pw, e)
    t = jnp.einsum('ph,cpqe->chqe', A_r, W4)                          # contract patch rows
    W_eff = jnp.einsum('qw,chqe->chwe', A_r, t) / float(N_PATCH)      # contract patch cols
    return W_eff.reshape(IMG_DIM, EMBED)                              # [12288, 128] f32


# ---------------- setup: fold the (linear) text tower into one weight --------------
def fold_text_tower(token_emb, W_txt):
    """txt = ((counts/SEQ) @ token_emb) @ W_txt == counts @ ((token_emb @ W_txt)/SEQ)."""
    return (jnp.dot(token_emb, W_txt) / float(SEQ)).astype(jnp.bfloat16)   # [VOCAB, EMBED]


# ---------------- setup: int8 per-column symmetric quantization of W_eff -----------
def quantize_int8(W):
    col_max = jnp.maximum(jnp.max(jnp.abs(W), axis=0, keepdims=True), 1e-8)   # [1, EMBED]
    scale = col_max / 127.0                                                   # f32 [1, EMBED]
    W_q = jnp.clip(jnp.round(W / scale), -127.0, 127.0).astype(jnp.int8)      # [IMG_DIM, EMBED]
    return W_q, scale.astype(jnp.float32)


# ---------------- the single fused kernel ------------------------------------------
def clip_loss_kernel(x_ref, wq_ref, scale_ref, ids_ref, temb_ref, o_ref):
    # ---- image tower: folded resize + patchify + patch-embed + mean == one matmul ----
    # int8 weight dequantized to bf16 (exact: |q| <= 127), bf16 x bf16 MXU matmul with
    # f32 accumulation; per-column scale applied after accumulation (mathematically exact).
    x = x_ref[...].astype(jnp.bfloat16)                                       # [B, 12288]
    w = wq_ref[...].astype(jnp.bfloat16)                                      # [12288, EMBED]
    img = jnp.dot(x, w, preferred_element_type=jnp.float32) * scale_ref[...]  # [B, EMBED]

    # ---- text tower: token-count pooling + folded (embed @ proj / SEQ) weight ----
    ids = ids_ref[...]                                                        # [B, SEQ] int32
    b = ids.shape[0]
    vocab_iota = lax.broadcasted_iota(jnp.int32, (b, VOCAB), 1)               # hoisted out of loop
    counts = jnp.zeros((b, VOCAB), jnp.float32)
    for s in range(SEQ):                                                      # static unrolled, SEQ=8
        counts = counts + (ids[:, s:s + 1] == vocab_iota).astype(jnp.float32)
    txt = jnp.dot(counts.astype(jnp.bfloat16), temb_ref[...],
                  preferred_element_type=jnp.float32)                         # [B, EMBED]

    # ---- CLIP head: L2 normalize (+eps), scaled cosine logits, similarity ----
    img_n = img * lax.rsqrt(jnp.sum(img * img, axis=-1, keepdims=True) + 1e-12)
    txt_n = txt * lax.rsqrt(jnp.sum(txt * txt, axis=-1, keepdims=True) + 1e-12)
    # contract last dims of both operands: no explicit in-VMEM transpose of txt_n
    logits = LOGIT_SCALE * lax.dot_general(
        img_n, txt_n, (((1,), (1,)), ((), ())),
        preferred_element_type=jnp.float32)                                   # [B, B]
    o_ref[...] = 1.0 - logits / 100.0


# ---------------- full forward ------------------------------------------------------
def clip_loss_forward(image, text, W_q, scale, temb_eff):
    B = image.shape[0]
    x_flat = image.reshape(B, IMG_DIM)        # free metadata reshape (contiguous NCHW)
    vmem = pl.BlockSpec(memory_space=pltpu.MemorySpace.VMEM)
    # Everything fits comfortably in VMEM (int8 W_eff ~1.5 MiB), so no grid and no
    # tiling: one launch, all operands resident, output [B, B].
    return pl.pallas_call(
        clip_loss_kernel,
        out_shape=jax.ShapeDtypeStruct((B, B), jnp.float32),
        in_specs=[vmem, vmem, vmem, vmem, vmem],
        out_specs=vmem,
    )(x_flat, W_q, scale, text, temb_eff)


# ---------------- pure-JAX f32 reference (same folded/quantized params) --------------
def ref_forward(image, text, W_q, scale, temb_eff):
    B = image.shape[0]
    x = image.reshape(B, IMG_DIM).astype(jnp.float32)
    W = W_q.astype(jnp.float32) * scale
    img = x @ W
    counts = jnp.sum(jax.nn.one_hot(text, VOCAB, dtype=jnp.float32), axis=1)
    txt = counts @ temb_eff.astype(jnp.float32)
    img_n = img / jnp.sqrt(jnp.sum(img * img, -1, keepdims=True) + 1e-12)
    txt_n = txt / jnp.sqrt(jnp.sum(txt * txt, -1, keepdims=True) + 1e-12)
    return 1.0 - (LOGIT_SCALE * (img_n @ txt_n.T)) / 100.0


if __name__ == "__main__":
    key = jax.random.PRNGKey(0)
    k1, k2, k3, k4, k5 = jax.random.split(key, 5)

    image = jax.random.normal(k1, (2, C, RESOLUTION, RESOLUTION), jnp.float32)
    text = jax.random.randint(k2, (2, SEQ), 0, VOCAB, dtype=jnp.int32)

    # Deterministic synthetic parameters (shapes implied by CLIP's patch conv / projections).
    W_img = jax.random.normal(k3, (PATCH_DIM, EMBED), jnp.float32) * 0.02
    W_txt = jax.random.normal(k4, (EMBED, EMBED), jnp.float32) * 0.02
    token_emb = jax.random.normal(k5, (VOCAB, EMBED), jnp.float32) * 0.02

    # One-time parameter fold (setup cost, analogous to clip.load()):
    #  - image tower (resize + patchify + patch-embed + patch-mean) -> one int8 weight
    #  - text tower (token-embed mean pool + projection)            -> one bf16 weight
    A = make_resize_matrix()
    W_eff_f32 = fold_image_tower(A, W_img)                  # [12288, 128] f32
    W_q, scale = quantize_int8(W_eff_f32)                   # int8 weight + f32 [1,128] scales
    temb_eff = fold_text_tower(token_emb, W_txt)            # [64, 128] bf16

    fwd = jax.jit(clip_loss_forward)
    sim = fwd(image, text, W_q, scale, temb_eff)
    jax.block_until_ready(sim)

    assert sim.shape == (2, 2) and sim.dtype == jnp.float32
    assert bool(jnp.all(jnp.isfinite(sim)))

    # Correctness check against a pure-JAX f32 reference using the same folded params
    # (remaining delta is just the in-kernel bf16 activation rounding).
    ref = ref_forward(image, text, W_q, scale, temb_eff)
    assert bool(jnp.allclose(sim, ref, atol=3e-2)), (sim, ref)

    print("KERNEL_OK")
</pallas_src>

<mosaic_0001>
module attributes {stable_mosaic.version = 11 : i64} {
  func.func @clip_loss_kernel(%arg0: memref<2x12288xf32, #tpu.memory_space<vmem>>, %arg1: memref<12288x128xi8, #tpu.memory_space<vmem>>, %arg2: memref<1x128xf32, #tpu.memory_space<vmem>>, %arg3: memref<2x8xi32, #tpu.memory_space<vmem>>, %arg4: memref<64x128xbf16, #tpu.memory_space<vmem>>, %arg5: memref<2x2xf32, #tpu.memory_space<vmem>>) attributes {dimension_semantics = [], scalar_prefetch = 0 : i64, scratch_operands = 0 : i64, tpu.core_type = #tpu.core_type<tc>} {
    %c0 = arith.constant 0 : index
    %c0_0 = arith.constant 0 : index
    %0 = vector.load %arg0[%c0, %c0_0] : memref<2x12288xf32, #tpu.memory_space<vmem>>, vector<2x12288xf32>
    %1 = arith.truncf %0 : vector<2x12288xf32> to vector<2x12288xbf16>
    %c0_1 = arith.constant 0 : index
    %c0_2 = arith.constant 0 : index
    %2 = vector.load %arg1[%c0_1, %c0_2] : memref<12288x128xi8, #tpu.memory_space<vmem>>, vector<12288x128xi8>
    %3 = arith.sitofp %2 : vector<12288x128xi8> to vector<12288x128xbf16>
    %cst = arith.constant dense<0.000000e+00> : vector<2x128xf32>
    %4 = tpu.matmul %1, %3, %cst {dimension_numbers = #tpu.dot_dimension_numbers<[1], [0], [0], [1], [0, 0, 1, 1], [], []>} : vector<2x12288xbf16>, vector<12288x128xbf16>, vector<2x128xf32> -> vector<2x128xf32>
    %c0_3 = arith.constant 0 : index
    %c0_4 = arith.constant 0 : index
    %5 = vector.load %arg2[%c0_3, %c0_4] : memref<1x128xf32, #tpu.memory_space<vmem>>, vector<1x128xf32>
    %6 = vector.broadcast %5 : vector<1x128xf32> to vector<2x128xf32>
    %7 = arith.mulf %4, %6 : vector<2x128xf32>
    %c0_5 = arith.constant 0 : index
    %c0_6 = arith.constant 0 : index
    %8 = vector.load %arg3[%c0_5, %c0_6] : memref<2x8xi32, #tpu.memory_space<vmem>>, vector<2x8xi32>
    %9 = tpu.iota {dimensions = array<i32: 1>} : vector<2x64xi32>
    %cst_7 = arith.constant 0.000000e+00 : f32
    %10 = vector.broadcast %cst_7 : f32 to vector<2x64xf32>
    %11 = vector.extract_strided_slice %8 {offsets = [0, 0], sizes = [2, 1], strides = [1, 1]} : vector<2x8xi32> to vector<2x1xi32>
    %12 = vector.broadcast %11 : vector<2x1xi32> to vector<2x64xi32>
    %13 = arith.cmpi eq, %12, %9 : vector<2x64xi32>
    %14 = arith.extui %13 : vector<2x64xi1> to vector<2x64xi32>
    %15 = arith.sitofp %14 : vector<2x64xi32> to vector<2x64xf32>
    %16 = arith.addf %10, %15 : vector<2x64xf32>
    %17 = vector.extract_strided_slice %8 {offsets = [0, 1], sizes = [2, 1], strides = [1, 1]} : vector<2x8xi32> to vector<2x1xi32>
    %18 = vector.broadcast %17 : vector<2x1xi32> to vector<2x64xi32>
    %19 = arith.cmpi eq, %18, %9 : vector<2x64xi32>
    %20 = arith.extui %19 : vector<2x64xi1> to vector<2x64xi32>
    %21 = arith.sitofp %20 : vector<2x64xi32> to vector<2x64xf32>
    %22 = arith.addf %16, %21 : vector<2x64xf32>
    %23 = vector.extract_strided_slice %8 {offsets = [0, 2], sizes = [2, 1], strides = [1, 1]} : vector<2x8xi32> to vector<2x1xi32>
    %24 = vector.broadcast %23 : vector<2x1xi32> to vector<2x64xi32>
    %25 = arith.cmpi eq, %24, %9 : vector<2x64xi32>
    %26 = arith.extui %25 : vector<2x64xi1> to vector<2x64xi32>
    %27 = arith.sitofp %26 : vector<2x64xi32> to vector<2x64xf32>
    %28 = arith.addf %22, %27 : vector<2x64xf32>
    %29 = vector.extract_strided_slice %8 {offsets = [0, 3], sizes = [2, 1], strides = [1, 1]} : vector<2x8xi32> to vector<2x1xi32>
    %30 = vector.broadcast %29 : vector<2x1xi32> to vector<2x64xi32>
    %31 = arith.cmpi eq, %30, %9 : vector<2x64xi32>
    %32 = arith.extui %31 : vector<2x64xi1> to vector<2x64xi32>
    %33 = arith.sitofp %32 : vector<2x64xi32> to vector<2x64xf32>
    %34 = arith.addf %28, %33 : vector<2x64xf32>
    %35 = vector.extract_strided_slice %8 {offsets = [0, 4], sizes = [2, 1], strides = [1, 1]} : vector<2x8xi32> to vector<2x1xi32>
    %36 = vector.broadcast %35 : vector<2x1xi32> to vector<2x64xi32>
    %37 = arith.cmpi eq, %36, %9 : vector<2x64xi32>
    %38 = arith.extui %37 : vector<2x64xi1> to vector<2x64xi32>
    %39 = arith.sitofp %38 : vector<2x64xi32> to vector<2x64xf32>
    %40 = arith.addf %34, %39 : vector<2x64xf32>
    %41 = vector.extract_strided_slice %8 {offsets = [0, 5], sizes = [2, 1], strides = [1, 1]} : vector<2x8xi32> to vector<2x1xi32>
    %42 = vector.broadcast %41 : vector<2x1xi32> to vector<2x64xi32>
    %43 = arith.cmpi eq, %42, %9 : vector<2x64xi32>
    %44 = arith.extui %43 : vector<2x64xi1> to vector<2x64xi32>
    %45 = arith.sitofp %44 : vector<2x64xi32> to vector<2x64xf32>
    %46 = arith.addf %40, %45 : vector<2x64xf32>
    %47 = vector.extract_strided_slice %8 {offsets = [0, 6], sizes = [2, 1], strides = [1, 1]} : vector<2x8xi32> to vector<2x1xi32>
    %48 = vector.broadcast %47 : vector<2x1xi32> to vector<2x64xi32>
    %49 = arith.cmpi eq, %48, %9 : vector<2x64xi32>
    %50 = arith.extui %49 : vector<2x64xi1> to vector<2x64xi32>
    %51 = arith.sitofp %50 : vector<2x64xi32> to vector<2x64xf32>
    %52 = arith.addf %46, %51 : vector<2x64xf32>
    %53 = vector.extract_strided_slice %8 {offsets = [0, 7], sizes = [2, 1], strides = [1, 1]} : vector<2x8xi32> to vector<2x1xi32>
    %54 = vector.broadcast %53 : vector<2x1xi32> to vector<2x64xi32>
    %55 = arith.cmpi eq, %54, %9 : vector<2x64xi32>
    %56 = arith.extui %55 : vector<2x64xi1> to vector<2x64xi32>
    %57 = arith.sitofp %56 : vector<2x64xi32> to vector<2x64xf32>
    %58 = arith.addf %52, %57 : vector<2x64xf32>
    %59 = arith.truncf %58 : vector<2x64xf32> to vector<2x64xbf16>
    %c0_8 = arith.constant 0 : index
    %c0_9 = arith.constant 0 : index
    %60 = vector.load %arg4[%c0_8, %c0_9] : memref<64x128xbf16, #tpu.memory_space<vmem>>, vector<64x128xbf16>
    %cst_10 = arith.constant dense<0.000000e+00> : vector<2x128xf32>
    %61 = tpu.matmul %59, %60, %cst_10 {dimension_numbers = #tpu.dot_dimension_numbers<[1], [0], [0], [1], [0, 0, 1, 1], [], []>} : vector<2x64xbf16>, vector<64x128xbf16>, vector<2x128xf32> -> vector<2x128xf32>
    %62 = arith.mulf %7, %7 : vector<2x128xf32>
    %cst_11 = arith.constant dense<0.000000e+00> : vector<2xf32>
    %63 = vector.multi_reduction <add>, %62, %cst_11 [1] : vector<2x128xf32> to vector<2xf32>
    %64 = vector.shape_cast %63 : vector<2xf32> to vector<2x1xf32>
    %cst_12 = arith.constant 9.99999996E-13 : f32
    %65 = vector.broadcast %cst_12 : f32 to vector<2x1xf32>
    %66 = arith.addf %64, %65 : vector<2x1xf32>
    %67 = math.rsqrt %66 : vector<2x1xf32>
    %68 = vector.broadcast %67 : vector<2x1xf32> to vector<2x128xf32>
    %69 = arith.mulf %7, %68 : vector<2x128xf32>
    %70 = arith.mulf %61, %61 : vector<2x128xf32>
    %cst_13 = arith.constant dense<0.000000e+00> : vector<2xf32>
    %71 = vector.multi_reduction <add>, %70, %cst_13 [1] : vector<2x128xf32> to vector<2xf32>
    %72 = vector.shape_cast %71 : vector<2xf32> to vector<2x1xf32>
    %cst_14 = arith.constant 9.99999996E-13 : f32
    %73 = vector.broadcast %cst_14 : f32 to vector<2x1xf32>
    %74 = arith.addf %72, %73 : vector<2x1xf32>
    %75 = math.rsqrt %74 : vector<2x1xf32>
    %76 = vector.broadcast %75 : vector<2x1xf32> to vector<2x128xf32>
    %77 = arith.mulf %61, %76 : vector<2x128xf32>
    %cst_15 = arith.constant dense<0.000000e+00> : vector<2x2xf32>
    %78 = tpu.matmul %69, %77, %cst_15 {dimension_numbers = #tpu.dot_dimension_numbers<[1], [1], [0], [0], [0, 0, 1, 0], [], []>} : vector<2x128xf32>, vector<2x128xf32>, vector<2x2xf32> -> vector<2x2xf32>
    %cst_16 = arith.constant 14.2857141 : f32
    %79 = vector.broadcast %cst_16 : f32 to vector<2x2xf32>
    %80 = arith.mulf %79, %78 : vector<2x2xf32>
    %cst_17 = arith.constant 1.000000e+02 : f32
    %81 = vector.broadcast %cst_17 : f32 to vector<2x2xf32>
    %82 = arith.divf %80, %81 : vector<2x2xf32>
    %cst_18 = arith.constant 1.000000e+00 : f32
    %83 = vector.broadcast %cst_18 : f32 to vector<2x2xf32>
    %84 = arith.subf %83, %82 : vector<2x2xf32>
    %c0_19 = arith.constant 0 : index
    %c0_20 = arith.constant 0 : index
    %85 = vector.load %arg5[%c0_19, %c0_20] : memref<2x2xf32, #tpu.memory_space<vmem>>, vector<2x2xf32>
    tpu.vector_store %arg5[%c0_19, %c0_20], %84 {strides = array<i32>} : memref<2x2xf32, #tpu.memory_space<vmem>>, vector<2x2xf32>,
    return
  }
}

</mosaic_0001>

<bundles_post_ra>
// kernel: clip_loss_forward.1
= control target key start
LH: loop header
LB: loop body
LE: loop exit
PB: predicated region body
PF: predicated region fallthrough
CT: control target
= control target key end

     0   :  { %10 = vsyncpa [#allocation3], 0  ;;  %s5939_s0 = inlined_call_operand.vmem [shape: f32[2,12288], index: 0, kind: input, shape index: {}]   ;;  %s5940_s1 = inlined_call_operand.hbm [shape: s8[12288,128], index: 1, kind: input, shape index: {}]   ;;  %s5941_s2 = inlined_call_operand.hbm [shape: f32[1,128], index: 2, kind: input, shape index: {}]   ;;  %s5942_s3 = inlined_call_operand.hbm [shape: s32[2,8], index: 3, kind: input, shape index: {}]   ;;  %s5943_s4 = inlined_call_operand.hbm [shape: bf16[64,128], index: 4, kind: input, shape index: {}]   ;;  %s5944_s5 = inlined_call_operand.hbm [shape: f32[2,2], index: 5, kind: output, shape index: {}]  }
   0x1   :  { %11 = vsyncpa [#allocation6], 0 }
   0x2   :  { %12 = vsyncpa [#allocation9], 0 }
   0x3   :  { %13 = vsyncpa [#allocation4], 0  ;;  %s5318_s18 = smov [#allocation5]   ;;  %s5319_s20 = smov [#allocation2]  }
   0x4   :  { %s34_s19 = sshll.u32 %s5318_s18, 4  ;;  %s21_s21 = sshll.u32 %s5319_s20, 4  ;;  %s35_s19 = int_to_ptr.vmem [resolvable:$true] %s34_s19  ;;  %s5368_s21 = int_to_ptr.vmem [resolvable:$true] %s21_s21 }
   0x5   :  { %s5200_s24 = scalar_lea.hbm %s5941_s2, 16 }
   0x6   :  { %p5201_p0 = scmp.ne.s32.totalorder %s5941_s2, %s5200_s24  ;;  %p5204_p1 = scmp.lt.u32.totalorder %s5200_s24, %s5941_s2 }
   0x8   :  { %p5206_p2 = pnand %p5204_p1, %p5201_p0 }
   0xa   :  { %5209 = shalt.err (!%p5206_p2)
}
   0xb   :  { %s5210_s29 = scalar_lea.vmem %s35_s19, 16  ;;  %s5214_s30 = scalar_lea.vmem %s35_s19, 32 }
   0xc   :  { %p5211_p3 = scmp.ne.s32.totalorder %s35_s19, %s5210_s29  ;;  %p5215_p4 = scmp.lt.s32.totalorder %s35_s19, %s35_s19 }
   0xd   :  { %p5216_p5 = scmp.lt.s32.totalorder %s5214_s30, %s5210_s29 }
   0xf   :  { %p5217_p6 = por %p5216_p5, %p5215_p4 }
  0x11   :  { %p5218_p7 = pnand %p5217_p6, %p5211_p3 }
  0x13   :  { %5221 = shalt.err (!%p5218_p7)
}
  0x14   :  { %37 = dma.hbm_to_vmem [thread:$0]  %s5941_s2, 16, %s35_s19, [#allocation6]  }
  0x15   :  { %s5222_s10 = scalar_lea.hbm %s5940_s1, 49152 }
  0x16   :  { %p5223_p8 = scmp.ne.s32.totalorder %s5940_s1, %s5222_s10  ;;  %p5226_p9 = scmp.lt.u32.totalorder %s5222_s10, %s5940_s1 }
  0x18   :  { %p5228_p10 = pnand %p5226_p9, %p5223_p8 }
  0x1a   :  { %5231 = shalt.err (!%p5228_p10)
}
  0x1b   :  { %s5232_s15 = scalar_lea.vmem %s5368_s21, 49152  ;;  %p5237_p12 = scmp.lt.s32.totalorder %s5368_s21, %s5368_s21 }
  0x1c   :  { %p5233_p11 = scmp.ne.s32.totalorder %s5368_s21, %s5232_s15  ;;  %p5238_p13 = scmp.lt.s32.totalorder %s5232_s15, %s5232_s15 }
  0x1e   :  { %p5239_p0 = por %p5238_p13, %p5237_p12 }
  0x20   :  { %p5240_p1 = pnand %p5239_p0, %p5233_p11 }
  0x22   :  { %5243 = shalt.err (!%p5240_p1)
}
  0x23   :  { %s5320_s2 = smov 128   ;;  %s5321_s16 = smov 8  }
  0x24   :  { %27 = dma.hbm_to_vmem [thread:$0]  %s5940_s1, 49152, %s5368_s21, [#allocation3], %s5320_s2, %s5320_s2, %s5321_s16  }
  0x25   :  { %s5322_s19 = smov [#allocation7]   ;;  %s5323_s22 = smov [#allocation8]  }
  0x26   :  { %s44_s20 = sshll.u32 %s5322_s19, 4  ;;  %s53_s23 = sshll.u32 %s5323_s22, 4  ;;  %s45_s20 = int_to_ptr.vmem [resolvable:$true] %s44_s20  ;;  %s5399_s23 = int_to_ptr.vmem [resolvable:$true] %s53_s23 }
  0x27   :  { %s5244_s26 = scalar_lea.hbm %s5942_s3, 32 }
  0x28   :  { %p5245_p2 = scmp.ne.s32.totalorder %s5942_s3, %s5244_s26  ;;  %p5248_p3 = scmp.lt.u32.totalorder %s5244_s26, %s5942_s3 }
  0x2a   :  { %p5250_p4 = pnand %p5248_p3, %p5245_p2 }
  0x2c   :  { %5253 = shalt.err (!%p5250_p4)
}
  0x2d   :  { %s5254_s1 = scalar_lea.vmem %s45_s20, 32  ;;  %p5259_p6 = scmp.lt.s32.totalorder %s45_s20, %s45_s20 }
  0x2e   :  { %p5255_p5 = scmp.ne.s32.totalorder %s45_s20, %s5254_s1  ;;  %p5260_p7 = scmp.lt.s32.totalorder %s5254_s1, %s5254_s1 }
  0x30   :  { %p5261_p8 = por %p5260_p7, %p5259_p6 }
  0x32   :  { %p5262_p9 = pnand %p5261_p8, %p5255_p5 }
  0x34   :  { %5265 = shalt.err (!%p5262_p9)
}
  0x35   :  { %47 = dma.hbm_to_vmem [thread:$0]  %s5942_s3, 32, %s45_s20, [#allocation6]  }
  0x36   :  { %s5266_s9 = scalar_lea.hbm %s5943_s4, 512 }
  0x37   :  { %p5267_p10 = scmp.ne.s32.totalorder %s5943_s4, %s5266_s9  ;;  %p5270_p11 = scmp.lt.u32.totalorder %s5266_s9, %s5943_s4 }
  0x39   :  { %p5272_p12 = pnand %p5270_p11, %p5267_p10 }
  0x3b   :  { %5275 = shalt.err (!%p5272_p12)
}
  0x3c   :  { %s5276_s14 = scalar_lea.vmem %s5399_s23, 512  ;;  %p5281_p0 = scmp.lt.s32.totalorder %s5399_s23, %s5399_s23 }
  0x3d   :  { %p5277_p13 = scmp.ne.s32.totalorder %s5399_s23, %s5276_s14  ;;  %p5282_p1 = scmp.lt.s32.totalorder %s5276_s14, %s5276_s14 }
  0x3f   :  { %p5283_p2 = por %p5282_p1, %p5281_p0 }
  0x41   :  { %p5284_p3 = pnand %p5283_p2, %p5277_p13 }
  0x43   :  { %5287 = shalt.err (!%p5284_p3)
}
  0x44   :  { %s5324_s3 = smov 64   ;;  %s5325_s15 = smov 4  }
  0x45   :  { %59 = dma.hbm_to_vmem [thread:$0]  %s5943_s4, 512, %s5399_s23, [#allocation9], %s5324_s3, %s5324_s3, %s5325_s15  }
  0x46   :  { %5310 = dma.done.wait [#allocation3], 49152  }
  0x47   :  { %5311 = vsyncadd [#allocation3], 4294918144 }
  0x48   :  { %5312 = dma.done.wait [#allocation6], 48  }
  0x49   :  { %5313 = vsyncadd [#allocation6], 4294967248 }
  0x4a   :  { %5314 = dma.done.wait [#allocation9], 512  }
  0x4b   :  { %5315 = vsyncadd [#allocation9], 4294966784  ;;  %v5326_v0 = vmov 1983009808   ;;  %v125_v2 = vlaneseq  ;;  %v725_v3 = vld [vmem:[#allocation2 + $0x20] sm:$0xff]  ;;  %v726_v15 = vld [vmem:[#allocation2 + $0x28] sm:$0xff] }
  0x4c   :  { %v123_v1 = vunpack.c.l.s4 %v5326_v0  ;;  %v733_v4 = vld [vmem:[#allocation2 + $0x60] sm:$0xff]  ;;  %v1113_v8 = vunpack.c.l.s8.bf16 %v725_v3  ;;  %v1114_v9 = vunpack.c.h.s8.bf16 %v725_v3  ;;  %v734_v16 = vld [vmem:[#allocation2 + $0x68] sm:$0xff]  ;;  %v1115_v19 = vunpack.c.l.s8.bf16 %v726_v15  ;;  %v727_v31 = vld [vmem:[#allocation2 + $0x30] sm:$0xff] }
  0x4d   :  { %v721_v5 = vld [vmem:[#allocation2] sm:$0xff]  ;;  %v126_v7 = vshrl.u32 %v125_v2, 7  ;;  %v1129_v10 = vunpack.c.l.s8.bf16 %v733_v4  ;;  %v1130_v11 = vunpack.c.h.s8.bf16 %v733_v4  ;;  %v1131_v20 = vunpack.c.l.s8.bf16 %v734_v16  ;;  %v722_v21 = vld [vmem:[#allocation2 + $0x8] sm:$0xff]  ;;  %v735_v32 = vld [vmem:[#allocation2 + $0x70] sm:$0xff] }
  0x4e   :  { %v124_v6 = vunpack.c.0.s8 %v123_v1  ;;  %v729_v12 = vld [vmem:[#allocation2 + $0x40] sm:$0xff]  ;;  %v1105_v13 = vunpack.c.l.s8.bf16 %v721_v5  ;;  %4059 = vmatprep.subr.bf16.mxu0 %v1113_v8  ;;  %v1106_v17 = vunpack.c.h.s8.bf16 %v721_v5  ;;  %v730_v22 = vld [vmem:[#allocation2 + $0x48] sm:$0xff]  ;;  %v1107_v25 = vunpack.c.l.s8.bf16 %v722_v21  ;;  %v723_v39 = vld [vmem:[#allocation2 + $0x10] sm:$0xff] }
  0x4f   :  { %v1121_v14 = vunpack.c.l.s8.bf16 %v729_v12  ;;  %4081 = vmatprep.subr.bf16.mxu1 %v1129_v10  ;;  %v1122_v18 = vunpack.c.h.s8.bf16 %v729_v12  ;;  %v73_v24 = vld [vmem:[%s5939_s0] sm:$0xff]  ;;  %v1123_v26 = vunpack.c.l.s8.bf16 %v730_v22  ;;  %v1116_v27 = vunpack.c.h.s8.bf16 %v726_v15  ;;  %v731_v40 = vld [vmem:[#allocation2 + $0x50] sm:$0xff]  ;;  %v728_v48 = vld [vmem:[#allocation2 + $0x38] sm:$0xff] }
  0x50   :  { %4060 = vmatpush3.bf16.msra.mxu0 %v1105_v13  ;;  %v5431_v23 = vsub.s32 %v124_v6, %v126_v7  ;;  %v1132_v28 = vunpack.c.h.s8.bf16 %v734_v16  ;;  %v121_v30 = vcombine.high %v73_v24, %v73_v24  ;;  %v1108_v35 = vunpack.c.h.s8.bf16 %v722_v21  ;;  %v736_v49 = vld [vmem:[#allocation2 + $0x78] sm:$0xff]  ;;  %v74_v50 = vld [vmem:[%s5939_s0 + $0x8] sm:$0xff]  ;;  %v741_v62 = vld [vmem:[#allocation2 + $0xa0] sm:$0xff] }
  0x51   :  { %4082 = vmatpush3.bf16.msra.mxu1 %v1121_v14  ;;  %4061 = vmatprep.subr.bf16.mxu0 %v1114_v9  ;;  %v1124_v36 = vunpack.c.h.s8.bf16 %v730_v22  ;;  %v1117_v37 = vunpack.c.l.s8.bf16 %v727_v31  ;;  %v1133_v38 = vunpack.c.l.s8.bf16 %v735_v32  ;;  %v1109_v44 = vunpack.c.l.s8.bf16 %v723_v39  ;;  %v724_v55 = vld [vmem:[#allocation2 + $0x18] sm:$0xff]  ;;  %v749_v63 = vld [vmem:[#allocation2 + $0xe0] sm:$0xff] }
  0x52   :  { %4083 = vmatprep.subr.bf16.mxu1 %v1130_v11  ;;  %v5437_v29 = vrot.slane %v73_v24, %v5431_v23  ;;  %v5442_v34 = vrot.slane %v121_v30, %v5431_v23  ;;  %v1125_v45 = vunpack.c.l.s8.bf16 %v731_v40  ;;  %v1118_v46 = vunpack.c.h.s8.bf16 %v727_v31  ;;  %v732_v56 = vld [vmem:[#allocation2 + $0x58] sm:$0xff]  ;;  %v737_v3 = vld [vmem:[#allocation2 + $0x80] sm:$0xff] }
  0x53   :  { %v1134_v47 = vunpack.c.h.s8.bf16 %v735_v32  ;;  %v1110_v51 = vunpack.c.h.s8.bf16 %v723_v39  ;;  %v1126_v52 = vunpack.c.h.s8.bf16 %v731_v40  ;;  %v1119_v53 = vunpack.c.l.s8.bf16 %v728_v48  ;;  %v745_v6 = vld [vmem:[#allocation2 + $0xc0] sm:$0xff]  ;;  %v743_v32 = vld [vmem:[#allocation2 + $0xb0] sm:$0xff] }
  0x54   :  { %4062 = vmatpush3.bf16.msra.mxu0 %v1106_v17  ;;  %v136_v33 = vcombine.high %v5437_v29, %v5437_v29  ;;  %v137_v42 = vcombine.high %v5442_v34, %v5442_v34  ;;  %v1135_v54 = vunpack.c.l.s8.bf16 %v736_v49  ;;  %v138_v57 = vcombine.high %v74_v50, %v74_v50  ;;  %v742_v17 = vld [vmem:[#allocation2 + $0xa8] sm:$0xff]  ;;  %v747_v39 = vld [vmem:[#allocation2 + $0xd0] sm:$0xff] }
  0x55   :  { %4084 = vmatpush3.bf16.msra.mxu1 %v1122_v18  ;;  %4063 = vmatprep.subr.bf16.mxu0 %v1115_v19  ;;  %v1111_v58 = vunpack.c.l.s8.bf16 %v724_v55  ;;  %v1127_v59 = vunpack.c.l.s8.bf16 %v732_v56  ;;  %v1120_v60 = vunpack.c.h.s8.bf16 %v728_v48  ;;  %v1136_v61 = vunpack.c.h.s8.bf16 %v736_v49  ;;  %v750_v18 = vld [vmem:[#allocation2 + $0xe8] sm:$0xff] }
  0x56   :  { %4085 = vmatprep.subr.bf16.mxu1 %v1131_v20  ;;  %v626_v41 = vpack.c.bf16 %v136_v33, %v136_v33  ;;  %v628_v43 = vpack.c.bf16 %v137_v42, %v137_v42  ;;  %v5450_v0 = vrot.slane %v74_v50, %v5431_v23  ;;  %v5453_v1 = vrot.slane %v138_v57, %v5431_v23  ;;  %v751_v33 = vld [vmem:[#allocation2 + $0xf0] sm:$0xff]  ;;  %v740_v50 = vld [vmem:[#allocation2 + $0x98] sm:$0xff] }
  0x57   :  { %v1112_v4 = vunpack.c.h.s8.bf16 %v724_v55  ;;  %v1128_v5 = vunpack.c.h.s8.bf16 %v732_v56  ;;  %v1145_v7 = vunpack.c.l.s8.bf16 %v741_v62  ;;  %v1161_v8 = vunpack.c.l.s8.bf16 %v749_v63 }
  0x58   :  { %4064 = vmatpush3.bf16.msra.mxu0 %v1107_v25  ;;  %1905 = vmatprep.mubr.bf16.mxu0 %v626_v41  ;;  %v153_v9 = vcombine.high %v5450_v0, %v5450_v0  ;;  %v154_v10 = vcombine.high %v5453_v1, %v5453_v1  ;;  %v625_v11 = vpack.c.bf16 %v5437_v29, %v5437_v29  ;;  %v1137_v13 = vunpack.c.l.s8.bf16 %v737_v3  ;;  %v738_v25 = vld [vmem:[#allocation2 + $0x88] sm:$0xff] }
  0x59   :  { %4086 = vmatpush3.bf16.msra.mxu1 %v1123_v26  ;;  %4065 = vmatprep.subr.bf16.mxu0 %v1116_v27  ;;  %v627_v12 = vpack.c.bf16 %v5442_v34, %v5442_v34  ;;  %v1153_v14 = vunpack.c.l.s8.bf16 %v745_v6  ;;  %v1146_v15 = vunpack.c.h.s8.bf16 %v741_v62  ;;  %v1162_v16 = vunpack.c.h.s8.bf16 %v749_v63  ;;  %v746_v27 = vld [vmem:[#allocation2 + $0xc8] sm:$0xff] }
  0x5a   :  { %4087 = vmatprep.subr.bf16.mxu1 %v1132_v28  ;;  %1945 = vmatprep.mubr.bf16.mxu1 %v628_v43  ;;  %v630_v19 = vpack.c.bf16 %v153_v9, %v153_v9  ;;  %v632_v20 = vpack.c.bf16 %v154_v10, %v154_v10  ;;  %v1138_v21 = vunpack.c.h.s8.bf16 %v737_v3  ;;  %v1154_v22 = vunpack.c.h.s8.bf16 %v745_v6  ;;  %v761_v6 = vld [vmem:[#allocation2 + $0x140] sm:$0xff] }
  0x5b   :  { %v1147_v24 = vunpack.c.l.s8.bf16 %v742_v17  ;;  %v1163_v26 = vunpack.c.l.s8.bf16 %v750_v18  ;;  %v1139_v28 = vunpack.c.l.s8.bf16 %v738_v25  ;;  %v1155_v29 = vunpack.c.l.s8.bf16 %v746_v27 }
  0x5c   :  { %4066 = vmatpush3.bf16.msra.mxu0 %v1108_v35  ;;  %v1148_v30 = vunpack.c.h.s8.bf16 %v742_v17  ;;  %v1164_v31 = vunpack.c.h.s8.bf16 %v750_v18  ;;  %v1140_v34 = vunpack.c.h.s8.bf16 %v738_v25  ;;  %v1156_v35 = vunpack.c.h.s8.bf16 %v746_v27 }
  0x5d   :  { %4088 = vmatpush3.bf16.msra.mxu1 %v1124_v36  ;;  %4067 = vmatprep.subr.bf16.mxu0 %v1117_v37  ;;  %v1149_v36 = vunpack.c.l.s8.bf16 %v743_v32  ;;  %v739_v37 = vld [vmem:[#allocation2 + $0x90] sm:$0xff]  ;;  %v1157_v41 = vunpack.c.l.s8.bf16 %v747_v39  ;;  %v1150_v42 = vunpack.c.h.s8.bf16 %v743_v32  ;;  %v1166_v43 = vunpack.c.h.s8.bf16 %v751_v33 }
  0x5e   :  { %4089 = vmatprep.subr.bf16.mxu1 %v1133_v38  ;;  %v1165_v38 = vunpack.c.l.s8.bf16 %v751_v33  ;;  %v1141_v40 = vunpack.c.l.s8.bf16 %v739_v37  ;;  %v1158_v48 = vunpack.c.h.s8.bf16 %v747_v39  ;;  %v1144_v62 = vunpack.c.h.s8.bf16 %v740_v50  ;;  %v755_v33 = vld [vmem:[#allocation2 + $0x110] sm:$0xff] }
  0x5f   :  { %v629_v9 = vpack.c.bf16 %v5450_v0, %v5450_v0  ;;  %v631_v10 = vpack.c.bf16 %v5453_v1, %v5453_v1  ;;  %vm5336_vm7 = vmmov 0   ;;  %vm3893_vm9 = vcmask 523264  }
  0x60   :  { %4068 = vmatpush3.bf16.msra.mxu0 %v1109_v44  ;;  %v744_v44 = vld [vmem:[#allocation2 + $0xb8] sm:$0xff]  ;;  %vm3938_vm10 = vcmask 1041408   ;;  %vm4026_vm11 = vcmask 9216  }
  0x61   :  { %4090 = vmatpush3.bf16.msra.mxu1 %v1125_v45  ;;  %4069 = vmatprep.subr.bf16.mxu0 %v1118_v46  ;;  %v752_v45 = vld [vmem:[#allocation2 + $0xf8] sm:$0xff]  ;;  %v75_v46 = vld [vmem:[%s5939_s0 + $0x10] sm:$0xff]  ;;  %v1151_v49 = vunpack.c.l.s8.bf16 %v744_v44  ;;  %v1152_v56 = vunpack.c.h.s8.bf16 %v744_v44 }
  0x62   :  { %4091 = vmatprep.subr.bf16.mxu1 %v1134_v47  ;;  %v1142_v47 = vunpack.c.h.s8.bf16 %v739_v37  ;;  %v1168_v57 = vunpack.c.h.s8.bf16 %v752_v45 }
  0x64   :  { %4070 = vmatpush3.bf16.msra.mxu0 %v1110_v51  ;;  %v1167_v51 = vunpack.c.l.s8.bf16 %v752_v45 }
  0x65   :  { %4092 = vmatpush3.bf16.msra.mxu1 %v1126_v52  ;;  %4071 = vmatprep.subr.bf16.mxu0 %v1119_v53  ;;  %v748_v52 = vld [vmem:[#allocation2 + $0xd8] sm:$0xff]  ;;  %v155_v53 = vcombine.high %v75_v46, %v75_v46 }
  0x66   :  { %4093 = vmatprep.subr.bf16.mxu1 %v1135_v54  ;;  %v1143_v54 = vunpack.c.l.s8.bf16 %v740_v50  ;;  %v1159_v55 = vunpack.c.l.s8.bf16 %v748_v52  ;;  %v1160_v63 = vunpack.c.h.s8.bf16 %v748_v52 }
  0x68   :  { %4072 = vmatpush3.bf16.msra.mxu0 %v1111_v58  ;;  %v757_v58 = vld [vmem:[#allocation2 + $0x120] sm:$0xff] }
  0x69   :  { %4094 = vmatpush3.bf16.msra.mxu1 %v1127_v59  ;;  %4073 = vmatprep.subr.bf16.mxu0 %v1120_v60  ;;  %v765_v59 = vld [vmem:[#allocation2 + $0x160] sm:$0xff]  ;;  %v5467_v60 = vrot.slane %v75_v46, %v5431_v23  ;;  %v1177_v3 = vunpack.c.l.s8.bf16 %v757_v58  ;;  %v756_v46 = vld [vmem:[#allocation2 + $0x118] sm:$0xff] }
  0x6a   :  { %4095 = vmatprep.subr.bf16.mxu1 %v1136_v61  ;;  %v5470_v61 = vrot.slane %v155_v53, %v5431_v23  ;;  %v1175_v50 = vunpack.c.l.s8.bf16 %v756_v46 }
  0x6c   :  { %4074 = vmatpush3.bf16.msra.mxu0 %v1112_v4  ;;  %v753_v4 = vld [vmem:[#allocation2 + $0x100] sm:$0xff] }
  0x6d   :  { %4096 = vmatpush3.bf16.msra.mxu1 %v1128_v5  ;;  %4103 = vmatprep.subr.bf16.mxu0 %v1145_v7  ;;  %v1193_v5 = vunpack.c.l.s8.bf16 %v765_v59  ;;  %v170_v7 = vcombine.high %v5467_v60, %v5467_v60  ;;  %v1170_v0 = vunpack.c.h.s8.bf16 %v753_v4 }
  0x6e   :  { %4125 = vmatprep.subr.bf16.mxu1 %v1161_v8  ;;  %v171_v8 = vcombine.high %v5470_v61, %v5470_v61 }
  0x6f   :  { %1906 = vmatmul.mubr.bf16.vlgmr.msra.gmra.mrb[0].mxu0 %v625_v11  ;;  %v1169_v11 = vunpack.c.l.s8.bf16 %v753_v4  ;;  %v634_v17 = vpack.c.bf16 %v170_v7, %v170_v7  ;;  %v777_v4 = vld [vmem:[#allocation2 + $0x1c0] sm:$0xff]  ;;  %v633_v7 = vpack.c.bf16 %v5467_v60, %v5467_v60 }
  0x70   :  { %1946 = vmatmul.mubr.bf16.vlgmr.msra.gmra.mrb[0].mxu1 %v627_v12  ;;  %4104 = vmatpush3.bf16.msra.mxu0 %v1137_v13  ;;  %v1185_v12 = vunpack.c.l.s8.bf16 %v761_v6  ;;  %v1178_v13 = vunpack.c.h.s8.bf16 %v757_v58  ;;  %v636_v18 = vpack.c.bf16 %v171_v8, %v171_v8  ;;  %v1176_v58 = vunpack.c.h.s8.bf16 %v756_v46 }
  0x71   :  { %4126 = vmatpush3.bf16.msra.mxu1 %v1153_v14  ;;  %4105 = vmatprep.subr.bf16.mxu0 %v1146_v15  ;;  %v1194_v14 = vunpack.c.h.s8.bf16 %v765_v59  ;;  %v758_v15 = vld [vmem:[#allocation2 + $0x128] sm:$0xff]  ;;  %v635_v8 = vpack.c.bf16 %v5470_v61, %v5470_v61 }
  0x72   :  { %4127 = vmatprep.subr.bf16.mxu1 %v1162_v16  ;;  %1985 = vmatprep.mubr.bf16.mxu0 %v630_v19  ;;  %v766_v16 = vld [vmem:[#allocation2 + $0x168] sm:$0xff]  ;;  %v1186_v19 = vunpack.c.h.s8.bf16 %v761_v6  ;;  %v1179_v1 = vunpack.c.l.s8.bf16 %v758_v15 }
  0x73   :  { %2025 = vmatprep.mubr.bf16.mxu1 %v632_v20  ;;  %v754_v20 = vld [vmem:[#allocation2 + $0x108] sm:$0xff]  ;;  %v1196_v27 = vunpack.c.h.s8.bf16 %v766_v16 }
  0x74   :  { %4106 = vmatpush3.bf16.msra.mxu0 %v1138_v21  ;;  %v1195_v21 = vunpack.c.l.s8.bf16 %v766_v16 }
  0x75   :  { %4128 = vmatpush3.bf16.msra.mxu1 %v1154_v22  ;;  %4107 = vmatprep.subr.bf16.mxu0 %v1147_v24  ;;  %v762_v22 = vld [vmem:[#allocation2 + $0x148] sm:$0xff]  ;;  %v1171_v24 = vunpack.c.l.s8.bf16 %v754_v20 }
  0x76   :  { %4129 = vmatprep.subr.bf16.mxu1 %v1163_v26  ;;  %v1187_v25 = vunpack.c.l.s8.bf16 %v762_v22  ;;  %v1180_v26 = vunpack.c.h.s8.bf16 %v758_v15 }
  0x78   :  { %4108 = vmatpush3.bf16.msra.mxu0 %v1139_v28  ;;  %v759_v28 = vld [vmem:[#allocation2 + $0x130] sm:$0xff] }
  0x79   :  { %4130 = vmatpush3.bf16.msra.mxu1 %v1155_v29  ;;  %4109 = vmatprep.subr.bf16.mxu0 %v1148_v30  ;;  %v767_v29 = vld [vmem:[#allocation2 + $0x170] sm:$0xff]  ;;  %v1172_v30 = vunpack.c.h.s8.bf16 %v754_v20  ;;  %v1181_v32 = vunpack.c.l.s8.bf16 %v759_v28 }
  0x7a   :  { %4131 = vmatprep.subr.bf16.mxu1 %v1164_v31  ;;  %v1188_v31 = vunpack.c.h.s8.bf16 %v762_v22  ;;  %v1198_v39 = vunpack.c.h.s8.bf16 %v767_v29 }
  0x7c   :  { %4110 = vmatpush3.bf16.msra.mxu0 %v1140_v34  ;;  %v1197_v34 = vunpack.c.l.s8.bf16 %v767_v29  ;;  %v771_v29 = vld [vmem:[#allocation2 + $0x190] sm:$0xff] }
  0x7d   :  { %4132 = vmatpush3.bf16.msra.mxu1 %v1156_v35  ;;  %4111 = vmatprep.subr.bf16.mxu0 %v1149_v36  ;;  %v763_v35 = vld [vmem:[#allocation2 + $0x150] sm:$0xff]  ;;  %v1173_v36 = vunpack.c.l.s8.bf16 %v755_v33 }
  0x7e   :  { %4133 = vmatprep.subr.bf16.mxu1 %v1165_v38  ;;  %v1189_v37 = vunpack.c.l.s8.bf16 %v763_v35  ;;  %v1182_v38 = vunpack.c.h.s8.bf16 %v759_v28  ;;  %v1190_v44 = vunpack.c.h.s8.bf16 %v763_v35 }
  0x80   :  { %4112 = vmatpush3.bf16.msra.mxu0 %v1141_v40  ;;  %v760_v40 = vld [vmem:[#allocation2 + $0x138] sm:$0xff] }
  0x81   :  { %4134 = vmatpush3.bf16.msra.mxu1 %v1157_v41  ;;  %4113 = vmatprep.subr.bf16.mxu0 %v1150_v42  ;;  %v768_v41 = vld [vmem:[#allocation2 + $0x178] sm:$0xff]  ;;  %v1183_v45 = vunpack.c.l.s8.bf16 %v760_v40  ;;  %v1184_v52 = vunpack.c.h.s8.bf16 %v760_v40 }
  0x82   :  { %4135 = vmatprep.subr.bf16.mxu1 %v1166_v43  ;;  %v76_v42 = vld [vmem:[%s5939_s0 + $0x18] sm:$0xff]  ;;  %v1174_v43 = vunpack.c.h.s8.bf16 %v755_v33  ;;  %v1200_v53 = vunpack.c.h.s8.bf16 %v768_v41 }
  0x84   :  { %4114 = vmatpush3.bf16.msra.mxu0 %v1142_v47  ;;  %v1199_v47 = vunpack.c.l.s8.bf16 %v768_v41 }
  0x85   :  { %4136 = vmatpush3.bf16.msra.mxu1 %v1158_v48  ;;  %4115 = vmatprep.subr.bf16.mxu0 %v1151_v49  ;;  %v764_v48 = vld [vmem:[#allocation2 + $0x158] sm:$0xff]  ;;  %v172_v49 = vcombine.high %v76_v42, %v76_v42 }
  0x86   :  { %4137 = vmatprep.subr.bf16.mxu1 %v1167_v51  ;;  %v1191_v51 = vunpack.c.l.s8.bf16 %v764_v48  ;;  %v1192_v59 = vunpack.c.h.s8.bf16 %v764_v48 }
  0x88   :  { %4116 = vmatpush3.bf16.msra.mxu0 %v1143_v54  ;;  %v773_v54 = vld [vmem:[#allocation2 + $0x1a0] sm:$0xff] }
  0x89   :  { %4138 = vmatpush3.bf16.msra.mxu1 %v1159_v55  ;;  %4117 = vmatprep.subr.bf16.mxu0 %v1152_v56  ;;  %v781_v55 = vld [vmem:[#allocation2 + $0x1e0] sm:$0xff]  ;;  %v5484_v56 = vrot.slane %v76_v42, %v5431_v23  ;;  %v772_v42 = vld [vmem:[#allocation2 + $0x198] sm:$0xff] }
  0x8a   :  { %4139 = vmatprep.subr.bf16.mxu1 %v1168_v57  ;;  %v5487_v57 = vrot.slane %v172_v49, %v5431_v23  ;;  %v1207_v46 = vunpack.c.l.s8.bf16 %v772_v42 }
  0x8c   :  { %4118 = vmatpush3.bf16.msra.mxu0 %v1144_v62  ;;  %v1209_v62 = vunpack.c.l.s8.bf16 %v773_v54  ;;  %v188_v6 = vcombine.high %v5487_v57, %v5487_v57 }
  0x8d   :  { %4140 = vmatpush3.bf16.msra.mxu1 %v1160_v63  ;;  %4147 = vmatprep.subr.bf16.mxu0 %v1177_v3  ;;  %v769_v63 = vld [vmem:[#allocation2 + $0x180] sm:$0xff]  ;;  %v1225_v3 = vunpack.c.l.s8.bf16 %v781_v55 }
  0x8e   :  { %4169 = vmatprep.subr.bf16.mxu1 %v1193_v5  ;;  %v187_v5 = vcombine.high %v5484_v56, %v5484_v56  ;;  %v640_v16 = vpack.c.bf16 %v188_v6, %v188_v6  ;;  %v1202_v60 = vunpack.c.h.s8.bf16 %v769_v63  ;;  %v639_v6 = vpack.c.bf16 %v5487_v57, %v5487_v57 }
  0x8f   :  { %1986 = vmatmul.mubr.bf16.vlgmr.msra.gmra.mrb[4].mxu0 %v629_v9  ;;  %v1201_v9 = vunpack.c.l.s8.bf16 %v769_v63  ;;  %v793_v63 = vld [vmem:[#allocation2 + $0x240] sm:$0xff] }
  0x90   :  { %2026 = vmatmul.mubr.bf16.vlgmr.msra.gmra.mrb[4].mxu1 %v631_v10  ;;  %4148 = vmatpush3.bf16.msra.mxu0 %v1169_v11  ;;  %v1217_v10 = vunpack.c.l.s8.bf16 %v777_v4  ;;  %v1210_v11 = vunpack.c.h.s8.bf16 %v773_v54  ;;  %v638_v15 = vpack.c.bf16 %v187_v5, %v187_v5  ;;  %v1208_v54 = vunpack.c.h.s8.bf16 %v772_v42 }
  0x91   :  { %4170 = vmatpush3.bf16.msra.mxu1 %v1185_v12  ;;  %4149 = vmatprep.subr.bf16.mxu0 %v1178_v13  ;;  %v1226_v12 = vunpack.c.h.s8.bf16 %v781_v55  ;;  %v774_v13 = vld [vmem:[#allocation2 + $0x1a8] sm:$0xff]  ;;  %v637_v5 = vpack.c.bf16 %v5484_v56, %v5484_v56 }
  0x92   :  { %4171 = vmatprep.subr.bf16.mxu1 %v1194_v14  ;;  %2065 = vmatprep.mubr.bf16.mxu0 %v634_v17  ;;  %v782_v14 = vld [vmem:[#allocation2 + $0x1e8] sm:$0xff]  ;;  %v1218_v17 = vunpack.c.h.s8.bf16 %v777_v4  ;;  %v1211_v61 = vunpack.c.l.s8.bf16 %v774_v13 }
  0x93   :  { %2105 = vmatprep.mubr.bf16.mxu1 %v636_v18  ;;  %v770_v18 = vld [vmem:[#allocation2 + $0x188] sm:$0xff]  ;;  %v1228_v22 = vunpack.c.h.s8.bf16 %v782_v14 }
  0x94   :  { %4150 = vmatpush3.bf16.msra.mxu0 %v1170_v0  ;;  %v1227_v0 = vunpack.c.l.s8.bf16 %v782_v14 }
  0x95   :  { %4172 = vmatpush3.bf16.msra.mxu1 %v1186_v19  ;;  %4151 = vmatprep.subr.bf16.mxu0 %v1179_v1  ;;  %v778_v19 = vld [vmem:[#allocation2 + $0x1c8] sm:$0xff]  ;;  %v1203_v1 = vunpack.c.l.s8.bf16 %v770_v18 }
  0x96   :  { %4173 = vmatprep.subr.bf16.mxu1 %v1195_v21  ;;  %v1219_v20 = vunpack.c.l.s8.bf16 %v778_v19  ;;  %v1212_v21 = vunpack.c.h.s8.bf16 %v774_v13 }
  0x98   :  { %4152 = vmatpush3.bf16.msra.mxu0 %v1171_v24  ;;  %v775_v24 = vld [vmem:[#allocation2 + $0x1b0] sm:$0xff] }
  0x99   :  { %4174 = vmatpush3.bf16.msra.mxu1 %v1187_v25  ;;  %4153 = vmatprep.subr.bf16.mxu0 %v1180_v26  ;;  %v783_v25 = vld [vmem:[#allocation2 + $0x1f0] sm:$0xff]  ;;  %v1204_v26 = vunpack.c.h.s8.bf16 %v770_v18  ;;  %v1213_v28 = vunpack.c.l.s8.bf16 %v775_v24 }
  0x9a   :  { %4175 = vmatprep.subr.bf16.mxu1 %v1196_v27  ;;  %v1220_v27 = vunpack.c.h.s8.bf16 %v778_v19  ;;  %v1230_v35 = vunpack.c.h.s8.bf16 %v783_v25 }
  0x9c   :  { %4154 = vmatpush3.bf16.msra.mxu0 %v1172_v30  ;;  %v1229_v30 = vunpack.c.l.s8.bf16 %v783_v25  ;;  %v787_v25 = vld [vmem:[#allocation2 + $0x210] sm:$0xff] }
  0x9d   :  { %4176 = vmatpush3.bf16.msra.mxu1 %v1188_v31  ;;  %4155 = vmatprep.subr.bf16.mxu0 %v1181_v32  ;;  %v779_v31 = vld [vmem:[#allocation2 + $0x1d0] sm:$0xff]  ;;  %v1205_v32 = vunpack.c.l.s8.bf16 %v771_v29 }
  0x9e   :  { %4177 = vmatprep.subr.bf16.mxu1 %v1197_v34  ;;  %v1221_v33 = vunpack.c.l.s8.bf16 %v779_v31  ;;  %v1214_v34 = vunpack.c.h.s8.bf16 %v775_v24  ;;  %v1222_v40 = vunpack.c.h.s8.bf16 %v779_v31 }
  0xa0   :  { %4156 = vmatpush3.bf16.msra.mxu0 %v1173_v36  ;;  %v776_v36 = vld [vmem:[#allocation2 + $0x1b8] sm:$0xff] }
  0xa1   :  { %4178 = vmatpush3.bf16.msra.mxu1 %v1189_v37  ;;  %4157 = vmatprep.subr.bf16.mxu0 %v1182_v38  ;;  %v784_v37 = vld [vmem:[#allocation2 + $0x1f8] sm:$0xff]  ;;  %v77_v38 = vld [vmem:[%s5939_s0 + $0x20] sm:$0xff]  ;;  %v1215_v41 = vunpack.c.l.s8.bf16 %v776_v36  ;;  %v1216_v48 = vunpack.c.h.s8.bf16 %v776_v36 }
  0xa2   :  { %4179 = vmatprep.subr.bf16.mxu1 %v1198_v39  ;;  %v1206_v39 = vunpack.c.h.s8.bf16 %v771_v29  ;;  %v1232_v49 = vunpack.c.h.s8.bf16 %v784_v37 }
  0xa4   :  { %4158 = vmatpush3.bf16.msra.mxu0 %v1174_v43  ;;  %v1231_v43 = vunpack.c.l.s8.bf16 %v784_v37 }
  0xa5   :  { %4180 = vmatpush3.bf16.msra.mxu1 %v1190_v44  ;;  %4159 = vmatprep.subr.bf16.mxu0 %v1183_v45  ;;  %v780_v44 = vld [vmem:[#allocation2 + $0x1d8] sm:$0xff]  ;;  %v189_v45 = vcombine.high %v77_v38, %v77_v38 }
  0xa6   :  { %4181 = vmatprep.subr.bf16.mxu1 %v1199_v47  ;;  %v1223_v47 = vunpack.c.l.s8.bf16 %v780_v44  ;;  %v1224_v55 = vunpack.c.h.s8.bf16 %v780_v44 }
  0xa8   :  { %4160 = vmatpush3.bf16.msra.mxu0 %v1175_v50  ;;  %v789_v50 = vld [vmem:[#allocation2 + $0x220] sm:$0xff] }
  0xa9   :  { %4182 = vmatpush3.bf16.msra.mxu1 %v1191_v51  ;;  %4161 = vmatprep.subr.bf16.mxu0 %v1184_v52  ;;  %v797_v51 = vld [vmem:[#allocation2 + $0x260] sm:$0xff]  ;;  %v5501_v52 = vrot.slane %v77_v38, %v5431_v23  ;;  %v788_v38 = vld [vmem:[#allocation2 + $0x218] sm:$0xff] }
  0xaa   :  { %4183 = vmatprep.subr.bf16.mxu1 %v1200_v53  ;;  %v5504_v53 = vrot.slane %v189_v45, %v5431_v23  ;;  %v1239_v42 = vunpack.c.l.s8.bf16 %v788_v38 }
  0xac   :  { %4162 = vmatpush3.bf16.msra.mxu0 %v1176_v58  ;;  %v1241_v58 = vunpack.c.l.s8.bf16 %v789_v50  ;;  %v205_v4 = vcombine.high %v5504_v53, %v5504_v53 }
  0xad   :  { %4184 = vmatpush3.bf16.msra.mxu1 %v1192_v59  ;;  %4191 = vmatprep.subr.bf16.mxu0 %v1209_v62  ;;  %v785_v59 = vld [vmem:[#allocation2 + $0x200] sm:$0xff]  ;;  %v1257_v62 = vunpack.c.l.s8.bf16 %v797_v51 }
  0xae   :  { %4213 = vmatprep.subr.bf16.mxu1 %v1225_v3  ;;  %v204_v3 = vcombine.high %v5501_v52, %v5501_v52  ;;  %v644_v14 = vpack.c.bf16 %v205_v4, %v205_v4  ;;  %v1234_v56 = vunpack.c.h.s8.bf16 %v785_v59  ;;  %v643_v4 = vpack.c.bf16 %v5504_v53, %v5504_v53 }
  0xaf   :  { %2066 = vmatmul.mubr.bf16.vlgmr.msra.gmra.mrb[8].mxu0 %v633_v7  ;;  %v1233_v7 = vunpack.c.l.s8.bf16 %v785_v59  ;;  %v809_v59 = vld [vmem:[#allocation2 + $0x2c0] sm:$0xff] }
  0xb0   :  { %2106 = vmatmul.mubr.bf16.vlgmr.msra.gmra.mrb[8].mxu1 %v635_v8  ;;  %4192 = vmatpush3.bf16.msra.mxu0 %v1201_v9  ;;  %v1249_v8 = vunpack.c.l.s8.bf16 %v793_v63  ;;  %v1242_v9 = vunpack.c.h.s8.bf16 %v789_v50  ;;  %v642_v13 = vpack.c.bf16 %v204_v3, %v204_v3  ;;  %v1240_v50 = vunpack.c.h.s8.bf16 %v788_v38 }
  0xb1   :  { %4214 = vmatpush3.bf16.msra.mxu1 %v1217_v10  ;;  %4193 = vmatprep.subr.bf16.mxu0 %v1210_v11  ;;  %v1258_v10 = vunpack.c.h.s8.bf16 %v797_v51  ;;  %v790_v11 = vld [vmem:[#allocation2 + $0x228] sm:$0xff]  ;;  %v641_v3 = vpack.c.bf16 %v5501_v52, %v5501_v52 }
  0xb2   :  { %4215 = vmatprep.subr.bf16.mxu1 %v1226_v12  ;;  %2145 = vmatprep.mubr.bf16.mxu0 %v638_v15  ;;  %v798_v12 = vld [vmem:[#allocation2 + $0x268] sm:$0xff]  ;;  %v1250_v15 = vunpack.c.h.s8.bf16 %v793_v63  ;;  %v1243_v57 = vunpack.c.l.s8.bf16 %v790_v11 }
  0xb3   :  { %2185 = vmatprep.mubr.bf16.mxu1 %v640_v16  ;;  %v786_v16 = vld [vmem:[#allocation2 + $0x208] sm:$0xff]  ;;  %v1260_v19 = vunpack.c.h.s8.bf16 %v798_v12 }
  0xb4   :  { %4194 = vmatpush3.bf16.msra.mxu0 %v1202_v60  ;;  %v1259_v60 = vunpack.c.l.s8.bf16 %v798_v12 }
  0xb5   :  { %4216 = vmatpush3.bf16.msra.mxu1 %v1218_v17  ;;  %4195 = vmatprep.subr.bf16.mxu0 %v1211_v61  ;;  %v794_v17 = vld [vmem:[#allocation2 + $0x248] sm:$0xff]  ;;  %v1235_v61 = vunpack.c.l.s8.bf16 %v786_v16 }
  0xb6   :  { %4217 = vmatprep.subr.bf16.mxu1 %v1227_v0  ;;  %v1251_v18 = vunpack.c.l.s8.bf16 %v794_v17  ;;  %v1244_v0 = vunpack.c.h.s8.bf16 %v790_v11 }
  0xb8   :  { %4196 = vmatpush3.bf16.msra.mxu0 %v1203_v1  ;;  %v791_v1 = vld [vmem:[#allocation2 + $0x230] sm:$0xff] }
  0xb9   :  { %4218 = vmatpush3.bf16.msra.mxu1 %v1219_v20  ;;  %4197 = vmatprep.subr.bf16.mxu0 %v1212_v21  ;;  %v799_v20 = vld [vmem:[#allocation2 + $0x270] sm:$0xff]  ;;  %v1236_v21 = vunpack.c.h.s8.bf16 %v786_v16  ;;  %v1245_v24 = vunpack.c.l.s8.bf16 %v791_v1 }
  0xba   :  { %4219 = vmatprep.subr.bf16.mxu1 %v1228_v22  ;;  %v1252_v22 = vunpack.c.h.s8.bf16 %v794_v17  ;;  %v1262_v31 = vunpack.c.h.s8.bf16 %v799_v20 }
  0xbc   :  { %4198 = vmatpush3.bf16.msra.mxu0 %v1204_v26  ;;  %v1261_v26 = vunpack.c.l.s8.bf16 %v799_v20  ;;  %v803_v20 = vld [vmem:[#allocation2 + $0x290] sm:$0xff] }
  0xbd   :  { %4220 = vmatpush3.bf16.msra.mxu1 %v1220_v27  ;;  %4199 = vmatprep.subr.bf16.mxu0 %v1213_v28  ;;  %v795_v27 = vld [vmem:[#allocation2 + $0x250] sm:$0xff]  ;;  %v1237_v28 = vunpack.c.l.s8.bf16 %v787_v25 }
  0xbe   :  { %4221 = vmatprep.subr.bf16.mxu1 %v1229_v30  ;;  %v1253_v29 = vunpack.c.l.s8.bf16 %v795_v27  ;;  %v1246_v30 = vunpack.c.h.s8.bf16 %v791_v1  ;;  %v1254_v36 = vunpack.c.h.s8.bf16 %v795_v27 }
  0xc0   :  { %4200 = vmatpush3.bf16.msra.mxu0 %v1205_v32  ;;  %v792_v32 = vld [vmem:[#allocation2 + $0x238] sm:$0xff] }
  0xc1   :  { %4222 = vmatpush3.bf16.msra.mxu1 %v1221_v33  ;;  %4201 = vmatprep.subr.bf16.mxu0 %v1214_v34  ;;  %v800_v33 = vld [vmem:[#allocation2 + $0x278] sm:$0xff]  ;;  %v78_v34 = vld [vmem:[%s5939_s0 + $0x28] sm:$0xff]  ;;  %v1247_v37 = vunpack.c.l.s8.bf16 %v792_v32  ;;  %v1248_v44 = vunpack.c.h.s8.bf16 %v792_v32 }
  0xc2   :  { %4223 = vmatprep.subr.bf16.mxu1 %v1230_v35  ;;  %v1238_v35 = vunpack.c.h.s8.bf16 %v787_v25  ;;  %v1264_v45 = vunpack.c.h.s8.bf16 %v800_v33 }
  0xc4   :  { %4202 = vmatpush3.bf16.msra.mxu0 %v1206_v39  ;;  %v1263_v39 = vunpack.c.l.s8.bf16 %v800_v33 }
  0xc5   :  { %4224 = vmatpush3.bf16.msra.mxu1 %v1222_v40  ;;  %4203 = vmatprep.subr.bf16.mxu0 %v1215_v41  ;;  %v796_v40 = vld [vmem:[#allocation2 + $0x258] sm:$0xff]  ;;  %v206_v41 = vcombine.high %v78_v34, %v78_v34 }
  0xc6   :  { %4225 = vmatprep.subr.bf16.mxu1 %v1231_v43  ;;  %v1255_v43 = vunpack.c.l.s8.bf16 %v796_v40  ;;  %v1256_v51 = vunpack.c.h.s8.bf16 %v796_v40 }
  0xc8   :  { %4204 = vmatpush3.bf16.msra.mxu0 %v1207_v46  ;;  %v805_v46 = vld [vmem:[#allocation2 + $0x2a0] sm:$0xff] }
  0xc9   :  { %4226 = vmatpush3.bf16.msra.mxu1 %v1223_v47  ;;  %4205 = vmatprep.subr.bf16.mxu0 %v1216_v48  ;;  %v813_v47 = vld [vmem:[#allocation2 + $0x2e0] sm:$0xff]  ;;  %v5518_v48 = vrot.slane %v78_v34, %v5431_v23  ;;  %v804_v34 = vld [vmem:[#allocation2 + $0x298] sm:$0xff] }
  0xca   :  { %4227 = vmatprep.subr.bf16.mxu1 %v1232_v49  ;;  %v5521_v49 = vrot.slane %v206_v41, %v5431_v23  ;;  %v1271_v38 = vunpack.c.l.s8.bf16 %v804_v34 }
  0xcc   :  { %4206 = vmatpush3.bf16.msra.mxu0 %v1208_v54  ;;  %v1273_v54 = vunpack.c.l.s8.bf16 %v805_v46  ;;  %v222_v63 = vcombine.high %v5521_v49, %v5521_v49 }
  0xcd   :  { %4228 = vmatpush3.bf16.msra.mxu1 %v1224_v55  ;;  %4235 = vmatprep.subr.bf16.mxu0 %v1241_v58  ;;  %v801_v55 = vld [vmem:[#allocation2 + $0x280] sm:$0xff]  ;;  %v1289_v58 = vunpack.c.l.s8.bf16 %v813_v47 }
  0xce   :  { %4257 = vmatprep.subr.bf16.mxu1 %v1257_v62  ;;  %v221_v62 = vcombine.high %v5518_v48, %v5518_v48  ;;  %v648_v12 = vpack.c.bf16 %v222_v63, %v222_v63  ;;  %v1266_v52 = vunpack.c.h.s8.bf16 %v801_v55  ;;  %v647_v63 = vpack.c.bf16 %v5521_v49, %v5521_v49 }
  0xcf   :  { %2146 = vmatmul.mubr.bf16.vlgmr.msra.gmra.mrb[12].mxu0 %v637_v5  ;;  %v1265_v5 = vunpack.c.l.s8.bf16 %v801_v55  ;;  %v825_v55 = vld [vmem:[#allocation2 + $0x340] sm:$0xff] }
  0xd0   :  { %2186 = vmatmul.mubr.bf16.vlgmr.msra.gmra.mrb[12].mxu1 %v639_v6  ;;  %4236 = vmatpush3.bf16.msra.mxu0 %v1233_v7  ;;  %v1281_v6 = vunpack.c.l.s8.bf16 %v809_v59  ;;  %v1274_v7 = vunpack.c.h.s8.bf16 %v805_v46  ;;  %v646_v11 = vpack.c.bf16 %v221_v62, %v221_v62  ;;  %v1272_v46 = vunpack.c.h.s8.bf16 %v804_v34 }
  0xd1   :  { %4258 = vmatpush3.bf16.msra.mxu1 %v1249_v8  ;;  %4237 = vmatprep.subr.bf16.mxu0 %v1242_v9  ;;  %v1290_v8 = vunpack.c.h.s8.bf16 %v813_v47  ;;  %v806_v9 = vld [vmem:[#allocation2 + $0x2a8] sm:$0xff]  ;;  %v645_v62 = vpack.c.bf16 %v5518_v48, %v5518_v48 }
  0xd2   :  { %4259 = vmatprep.subr.bf16.mxu1 %v1258_v10  ;;  %2225 = vmatprep.mubr.bf16.mxu0 %v642_v13  ;;  %v814_v10 = vld [vmem:[#allocation2 + $0x2e8] sm:$0xff]  ;;  %v1282_v13 = vunpack.c.h.s8.bf16 %v809_v59  ;;  %v1275_v53 = vunpack.c.l.s8.bf16 %v806_v9 }
  0xd3   :  { %2265 = vmatprep.mubr.bf16.mxu1 %v644_v14  ;;  %v802_v14 = vld [vmem:[#allocation2 + $0x288] sm:$0xff]  ;;  %v1292_v17 = vunpack.c.h.s8.bf16 %v814_v10 }
  0xd4   :  { %4238 = vmatpush3.bf16.msra.mxu0 %v1234_v56  ;;  %v1291_v56 = vunpack.c.l.s8.bf16 %v814_v10 }
  0xd5   :  { %4260 = vmatpush3.bf16.msra.mxu1 %v1250_v15  ;;  %4239 = vmatprep.subr.bf16.mxu0 %v1243_v57  ;;  %v810_v15 = vld [vmem:[#allocation2 + $0x2c8] sm:$0xff]  ;;  %v1267_v57 = vunpack.c.l.s8.bf16 %v802_v14 }
  0xd6   :  { %4261 = vmatprep.subr.bf16.mxu1 %v1259_v60  ;;  %v1283_v16 = vunpack.c.l.s8.bf16 %v810_v15  ;;  %v1276_v60 = vunpack.c.h.s8.bf16 %v806_v9 }
  0xd8   :  { %4240 = vmatpush3.bf16.msra.mxu0 %v1235_v61  ;;  %v807_v61 = vld [vmem:[#allocation2 + $0x2b0] sm:$0xff] }
  0xd9   :  { %4262 = vmatpush3.bf16.msra.mxu1 %v1251_v18  ;;  %4241 = vmatprep.subr.bf16.mxu0 %v1244_v0  ;;  %v815_v18 = vld [vmem:[#allocation2 + $0x2f0] sm:$0xff]  ;;  %v1268_v0 = vunpack.c.h.s8.bf16 %v802_v14  ;;  %v1277_v1 = vunpack.c.l.s8.bf16 %v807_v61 }
  0xda   :  { %4263 = vmatprep.subr.bf16.mxu1 %v1260_v19  ;;  %v1284_v19 = vunpack.c.h.s8.bf16 %v810_v15  ;;  %v1294_v27 = vunpack.c.h.s8.bf16 %v815_v18 }
  0xdc   :  { %4242 = vmatpush3.bf16.msra.mxu0 %v1236_v21  ;;  %v1293_v21 = vunpack.c.l.s8.bf16 %v815_v18  ;;  %v819_v18 = vld [vmem:[#allocation2 + $0x310] sm:$0xff] }
  0xdd   :  { %4264 = vmatpush3.bf16.msra.mxu1 %v1252_v22  ;;  %4243 = vmatprep.subr.bf16.mxu0 %v1245_v24  ;;  %v811_v22 = vld [vmem:[#allocation2 + $0x2d0] sm:$0xff]  ;;  %v1269_v24 = vunpack.c.l.s8.bf16 %v803_v20 }
  0xde   :  { %4265 = vmatprep.subr.bf16.mxu1 %v1261_v26  ;;  %v1285_v25 = vunpack.c.l.s8.bf16 %v811_v22  ;;  %v1278_v26 = vunpack.c.h.s8.bf16 %v807_v61  ;;  %v1286_v32 = vunpack.c.h.s8.bf16 %v811_v22 }
  0xe0   :  { %4244 = vmatpush3.bf16.msra.mxu0 %v1237_v28  ;;  %v808_v28 = vld [vmem:[#allocation2 + $0x2b8] sm:$0xff] }
  0xe1   :  { %4266 = vmatpush3.bf16.msra.mxu1 %v1253_v29  ;;  %4245 = vmatprep.subr.bf16.mxu0 %v1246_v30  ;;  %v816_v29 = vld [vmem:[#allocation2 + $0x2f8] sm:$0xff]  ;;  %v79_v30 = vld [vmem:[%s5939_s0 + $0x30] sm:$0xff]  ;;  %v1279_v33 = vunpack.c.l.s8.bf16 %v808_v28  ;;  %v1280_v40 = vunpack.c.h.s8.bf16 %v808_v28 }
  0xe2   :  { %4267 = vmatprep.subr.bf16.mxu1 %v1262_v31  ;;  %v1270_v31 = vunpack.c.h.s8.bf16 %v803_v20  ;;  %v1296_v41 = vunpack.c.h.s8.bf16 %v816_v29 }
  0xe4   :  { %4246 = vmatpush3.bf16.msra.mxu0 %v1238_v35  ;;  %v1295_v35 = vunpack.c.l.s8.bf16 %v816_v29 }
  0xe5   :  { %4268 = vmatpush3.bf16.msra.mxu1 %v1254_v36  ;;  %4247 = vmatprep.subr.bf16.mxu0 %v1247_v37  ;;  %v812_v36 = vld [vmem:[#allocation2 + $0x2d8] sm:$0xff]  ;;  %v223_v37 = vcombine.high %v79_v30, %v79_v30 }
  0xe6   :  { %4269 = vmatprep.subr.bf16.mxu1 %v1263_v39  ;;  %v1287_v39 = vunpack.c.l.s8.bf16 %v812_v36  ;;  %v1288_v47 = vunpack.c.h.s8.bf16 %v812_v36 }
  0xe8   :  { %4248 = vmatpush3.bf16.msra.mxu0 %v1239_v42  ;;  %v821_v42 = vld [vmem:[#allocation2 + $0x320] sm:$0xff] }
  0xe9   :  { %4270 = vmatpush3.bf16.msra.mxu1 %v1255_v43  ;;  %4249 = vmatprep.subr.bf16.mxu0 %v1248_v44  ;;  %v829_v43 = vld [vmem:[#allocation2 + $0x360] sm:$0xff]  ;;  %v5535_v44 = vrot.slane %v79_v30, %v5431_v23  ;;  %v820_v30 = vld [vmem:[#allocation2 + $0x318] sm:$0xff] }
  0xea   :  { %4271 = vmatprep.subr.bf16.mxu1 %v1264_v45  ;;  %v5538_v45 = vrot.slane %v223_v37, %v5431_v23  ;;  %v1303_v34 = vunpack.c.l.s8.bf16 %v820_v30 }
  0xec   :  { %4250 = vmatpush3.bf16.msra.mxu0 %v1240_v50  ;;  %v1305_v50 = vunpack.c.l.s8.bf16 %v821_v42  ;;  %v239_v59 = vcombine.high %v5538_v45, %v5538_v45 }
  0xed   :  { %4272 = vmatpush3.bf16.msra.mxu1 %v1256_v51  ;;  %4279 = vmatprep.subr.bf16.mxu0 %v1273_v54  ;;  %v817_v51 = vld [vmem:[#allocation2 + $0x300] sm:$0xff]  ;;  %v1321_v54 = vunpack.c.l.s8.bf16 %v829_v43 }
  0xee   :  { %4301 = vmatprep.subr.bf16.mxu1 %v1289_v58  ;;  %v238_v58 = vcombine.high %v5535_v44, %v5535_v44  ;;  %v652_v10 = vpack.c.bf16 %v239_v59, %v239_v59  ;;  %v1298_v48 = vunpack.c.h.s8.bf16 %v817_v51  ;;  %v651_v59 = vpack.c.bf16 %v5538_v45, %v5538_v45 }
  0xef   :  { %2226 = vmatmul.mubr.bf16.vlgmr.msra.gmra.mrb[16].mxu0 %v641_v3  ;;  %v1297_v3 = vunpack.c.l.s8.bf16 %v817_v51  ;;  %v841_v51 = vld [vmem:[#allocation2 + $0x3c0] sm:$0xff] }
  0xf0   :  { %2266 = vmatmul.mubr.bf16.vlgmr.msra.gmra.mrb[16].mxu1 %v643_v4  ;;  %4280 = vmatpush3.bf16.msra.mxu0 %v1265_v5  ;;  %v1313_v4 = vunpack.c.l.s8.bf16 %v825_v55  ;;  %v1306_v5 = vunpack.c.h.s8.bf16 %v821_v42  ;;  %v650_v9 = vpack.c.bf16 %v238_v58, %v238_v58  ;;  %v1304_v42 = vunpack.c.h.s8.bf16 %v820_v30 }
  0xf1   :  { %4302 = vmatpush3.bf16.msra.mxu1 %v1281_v6  ;;  %4281 = vmatprep.subr.bf16.mxu0 %v1274_v7  ;;  %v1322_v6 = vunpack.c.h.s8.bf16 %v829_v43  ;;  %v822_v7 = vld [vmem:[#allocation2 + $0x328] sm:$0xff]  ;;  %v649_v58 = vpack.c.bf16 %v5535_v44, %v5535_v44 }
  0xf2   :  { %4303 = vmatprep.subr.bf16.mxu1 %v1290_v8  ;;  %2305 = vmatprep.mubr.bf16.mxu0 %v646_v11  ;;  %v830_v8 = vld [vmem:[#allocation2 + $0x368] sm:$0xff]  ;;  %v1314_v11 = vunpack.c.h.s8.bf16 %v825_v55  ;;  %v1307_v49 = vunpack.c.l.s8.bf16 %v822_v7 }
  0xf3   :  { %2345 = vmatprep.mubr.bf16.mxu1 %v648_v12  ;;  %v818_v12 = vld [vmem:[#allocation2 + $0x308] sm:$0xff]  ;;  %v1324_v15 = vunpack.c.h.s8.bf16 %v830_v8 }
  0xf4   :  { %4282 = vmatpush3.bf16.msra.mxu0 %v1266_v52  ;;  %v1323_v52 = vunpack.c.l.s8.bf16 %v830_v8 }
  0xf5   :  { %4304 = vmatpush3.bf16.msra.mxu1 %v1282_v13  ;;  %4283 = vmatprep.subr.bf16.mxu0 %v1275_v53  ;;  %v826_v13 = vld [vmem:[#allocation2 + $0x348] sm:$0xff]  ;;  %v1299_v53 = vunpack.c.l.s8.bf16 %v818_v12 }
  0xf6   :  { %4305 = vmatprep.subr.bf16.mxu1 %v1291_v56  ;;  %v1315_v14 = vunpack.c.l.s8.bf16 %v826_v13  ;;  %v1308_v56 = vunpack.c.h.s8.bf16 %v822_v7 }
  0xf8   :  { %4284 = vmatpush3.bf16.msra.mxu0 %v1267_v57  ;;  %v823_v57 = vld [vmem:[#allocation2 + $0x330] sm:$0xff] }
  0xf9   :  { %4306 = vmatpush3.bf16.msra.mxu1 %v1283_v16  ;;  %4285 = vmatprep.subr.bf16.mxu0 %v1276_v60  ;;  %v831_v16 = vld [vmem:[#allocation2 + $0x370] sm:$0xff]  ;;  %v1300_v60 = vunpack.c.h.s8.bf16 %v818_v12  ;;  %v1309_v61 = vunpack.c.l.s8.bf16 %v823_v57 }
  0xfa   :  { %4307 = vmatprep.subr.bf16.mxu1 %v1292_v17  ;;  %v1316_v17 = vunpack.c.h.s8.bf16 %v826_v13  ;;  %v1326_v22 = vunpack.c.h.s8.bf16 %v831_v16 }
  0xfc   :  { %4286 = vmatpush3.bf16.msra.mxu0 %v1268_v0  ;;  %v1325_v0 = vunpack.c.l.s8.bf16 %v831_v16  ;;  %v835_v16 = vld [vmem:[#allocation2 + $0x390] sm:$0xff] }
  0xfd   :  { %4308 = vmatpush3.bf16.msra.mxu1 %v1284_v19  ;;  %4287 = vmatprep.subr.bf16.mxu0 %v1277_v1  ;;  %v827_v19 = vld [vmem:[#allocation2 + $0x350] sm:$0xff]  ;;  %v1301_v1 = vunpack.c.l.s8.bf16 %v819_v18 }
  0xfe   :  { %4309 = vmatprep.subr.bf16.mxu1 %v1293_v21  ;;  %v1317_v20 = vunpack.c.l.s8.bf16 %v827_v19  ;;  %v1310_v21 = vunpack.c.h.s8.bf16 %v823_v57  ;;  %v1318_v28 = vunpack.c.h.s8.bf16 %v827_v19 }
 0x100   :  { %4288 = vmatpush3.bf16.msra.mxu0 %v1269_v24  ;;  %v824_v24 = vld [vmem:[#allocation2 + $0x338] sm:$0xff] }
 0x101   :  { %4310 = vmatpush3.bf16.msra.mxu1 %v1285_v25  ;;  %4289 = vmatprep.subr.bf16.mxu0 %v1278_v26  ;;  %v832_v25 = vld [vmem:[#allocation2 + $0x378] sm:$0xff]  ;;  %v1311_v29 = vunpack.c.l.s8.bf16 %v824_v24  ;;  %v1312_v36 = vunpack.c.h.s8.bf16 %v824_v24 }
 0x102   :  { %4311 = vmatprep.subr.bf16.mxu1 %v1294_v27  ;;  %v80_v26 = vld [vmem:[%s5939_s0 + $0x38] sm:$0xff]  ;;  %v1302_v27 = vunpack.c.h.s8.bf16 %v819_v18  ;;  %v1328_v37 = vunpack.c.h.s8.bf16 %v832_v25 }
 0x104   :  { %4290 = vmatpush3.bf16.msra.mxu0 %v1270_v31  ;;  %v1327_v31 = vunpack.c.l.s8.bf16 %v832_v25 }
 0x105   :  { %4312 = vmatpush3.bf16.msra.mxu1 %v1286_v32  ;;  %4291 = vmatprep.subr.bf16.mxu0 %v1279_v33  ;;  %v828_v32 = vld [vmem:[#allocation2 + $0x358] sm:$0xff]  ;;  %v240_v33 = vcombine.high %v80_v26, %v80_v26 }
 0x106   :  { %4313 = vmatprep.subr.bf16.mxu1 %v1295_v35  ;;  %v1319_v35 = vunpack.c.l.s8.bf16 %v828_v32  ;;  %v1320_v43 = vunpack.c.h.s8.bf16 %v828_v32 }
 0x108   :  { %4292 = vmatpush3.bf16.msra.mxu0 %v1271_v38  ;;  %v837_v38 = vld [vmem:[#allocation2 + $0x3a0] sm:$0xff] }
 0x109   :  { %4314 = vmatpush3.bf16.msra.mxu1 %v1287_v39  ;;  %4293 = vmatprep.subr.bf16.mxu0 %v1280_v40  ;;  %v845_v39 = vld [vmem:[#allocation2 + $0x3e0] sm:$0xff]  ;;  %v5552_v40 = vrot.slane %v80_v26, %v5431_v23  ;;  %v836_v26 = vld [vmem:[#allocation2 + $0x398] sm:$0xff] }
 0x10a   :  { %4315 = vmatprep.subr.bf16.mxu1 %v1296_v41  ;;  %v5555_v41 = vrot.slane %v240_v33, %v5431_v23 }
 0x10c   :  { %4294 = vmatpush3.bf16.msra.mxu0 %v1272_v46  ;;  %v1337_v46 = vunpack.c.l.s8.bf16 %v837_v38  ;;  %v256_v55 = vcombine.high %v5555_v41, %v5555_v41 }
 0x10d   :  { %4316 = vmatpush3.bf16.msra.mxu1 %v1288_v47  ;;  %4323 = vmatprep.subr.bf16.mxu0 %v1305_v50  ;;  %v833_v47 = vld [vmem:[#allocation2 + $0x380] sm:$0xff]  ;;  %v1353_v50 = vunpack.c.l.s8.bf16 %v845_v39 }
 0x10e   :  { %4345 = vmatprep.subr.bf16.mxu1 %v1321_v54  ;;  %v255_v54 = vcombine.high %v5552_v40, %v5552_v40  ;;  %v656_v8 = vpack.c.bf16 %v256_v55, %v256_v55  ;;  %v1330_v44 = vunpack.c.h.s8.bf16 %v833_v47 }
 0x10f   :  { %2306 = vmatmul.mubr.bf16.vlgmr.msra.gmra.mrb[20].mxu0 %v645_v62  ;;  %v1329_v62 = vunpack.c.l.s8.bf16 %v833_v47 }
 0x110   :  { %2346 = vmatmul.mubr.bf16.vlgmr.msra.gmra.mrb[20].mxu1 %v647_v63  ;;  %4324 = vmatpush3.bf16.msra.mxu0 %v1297_v3  ;;  %v1345_v63 = vunpack.c.l.s8.bf16 %v841_v51  ;;  %v1338_v3 = vunpack.c.h.s8.bf16 %v837_v38  ;;  %v654_v7 = vpack.c.bf16 %v255_v54, %v255_v54  ;;  %v861_v54 = vld [vmem:[#allocation2 + $0x460] sm:$0xff] }
 0x111   :  { %4346 = vmatpush3.bf16.msra.mxu1 %v1313_v4  ;;  %4325 = vmatprep.subr.bf16.mxu0 %v1306_v5  ;;  %v1354_v4 = vunpack.c.h.s8.bf16 %v845_v39  ;;  %v838_v5 = vld [vmem:[#allocation2 + $0x3a8] sm:$0xff] }
 0x112   :  { %4347 = vmatprep.subr.bf16.mxu1 %v1322_v6  ;;  %2385 = vmatprep.mubr.bf16.mxu0 %v650_v9  ;;  %v846_v6 = vld [vmem:[#allocation2 + $0x3e8] sm:$0xff]  ;;  %v1346_v9 = vunpack.c.h.s8.bf16 %v841_v51  ;;  %v1339_v45 = vunpack.c.l.s8.bf16 %v838_v5  ;;  %v853_v51 = vld [vmem:[#allocation2 + $0x420] sm:$0xff] }
 0x113   :  { %2425 = vmatprep.mubr.bf16.mxu1 %v652_v10  ;;  %v834_v10 = vld [vmem:[#allocation2 + $0x388] sm:$0xff]  ;;  %v1356_v13 = vunpack.c.h.s8.bf16 %v846_v6 }
 0x114   :  { %4326 = vmatpush3.bf16.msra.mxu0 %v1298_v48  ;;  %v1355_v48 = vunpack.c.l.s8.bf16 %v846_v6 }
 0x115   :  { %4348 = vmatpush3.bf16.msra.mxu1 %v1314_v11  ;;  %4327 = vmatprep.subr.bf16.mxu0 %v1307_v49  ;;  %v842_v11 = vld [vmem:[#allocation2 + $0x3c8] sm:$0xff]  ;;  %v1331_v49 = vunpack.c.l.s8.bf16 %v834_v10 }
 0x116   :  { %4349 = vmatprep.subr.bf16.mxu1 %v1323_v52  ;;  %v1347_v12 = vunpack.c.l.s8.bf16 %v842_v11  ;;  %v1340_v52 = vunpack.c.h.s8.bf16 %v838_v5  ;;  %v857_v5 = vld [vmem:[#allocation2 + $0x440] sm:$0xff] }
 0x118   :  { %4328 = vmatpush3.bf16.msra.mxu0 %v1299_v53  ;;  %v839_v53 = vld [vmem:[#allocation2 + $0x3b0] sm:$0xff] }
 0x119   :  { %4350 = vmatpush3.bf16.msra.mxu1 %v1315_v14  ;;  %4329 = vmatprep.subr.bf16.mxu0 %v1308_v56  ;;  %v847_v14 = vld [vmem:[#allocation2 + $0x3f0] sm:$0xff]  ;;  %v1332_v56 = vunpack.c.h.s8.bf16 %v834_v10  ;;  %v1341_v57 = vunpack.c.l.s8.bf16 %v839_v53  ;;  %v1370_v10 = vunpack.c.h.s8.bf16 %v853_v51 }
 0x11a   :  { %4351 = vmatprep.subr.bf16.mxu1 %v1324_v15  ;;  %v1348_v15 = vunpack.c.h.s8.bf16 %v842_v11  ;;  %v1358_v19 = vunpack.c.h.s8.bf16 %v847_v14  ;;  %v854_v11 = vld [vmem:[#allocation2 + $0x428] sm:$0xff] }
 0x11c   :  { %4330 = vmatpush3.bf16.msra.mxu0 %v1300_v60  ;;  %v1357_v60 = vunpack.c.l.s8.bf16 %v847_v14 }
 0x11d   :  { %4352 = vmatpush3.bf16.msra.mxu1 %v1316_v17  ;;  %4331 = vmatprep.subr.bf16.mxu0 %v1309_v61  ;;  %v843_v17 = vld [vmem:[#allocation2 + $0x3d0] sm:$0xff]  ;;  %v1333_v61 = vunpack.c.l.s8.bf16 %v835_v16 }
 0x11e   :  { %4353 = vmatprep.subr.bf16.mxu1 %v1325_v0  ;;  %v1349_v18 = vunpack.c.l.s8.bf16 %v843_v17  ;;  %v1342_v0 = vunpack.c.h.s8.bf16 %v839_v53  ;;  %v1350_v24 = vunpack.c.h.s8.bf16 %v843_v17  ;;  %v850_v53 = vld [vmem:[#allocation2 + $0x408] sm:$0xff]  ;;  %v855_v17 = vld [vmem:[#allocation2 + $0x430] sm:$0xff] }
 0x120   :  { %4332 = vmatpush3.bf16.msra.mxu0 %v1301_v1  ;;  %v840_v1 = vld [vmem:[#allocation2 + $0x3b8] sm:$0xff] }
 0x121   :  { %4354 = vmatpush3.bf16.msra.mxu1 %v1317_v20  ;;  %4333 = vmatprep.subr.bf16.mxu0 %v1310_v21  ;;  %v848_v20 = vld [vmem:[#allocation2 + $0x3f8] sm:$0xff]  ;;  %v81_v21 = vld [vmem:[%s5939_s0 + $0x40] sm:$0xff]  ;;  %v1343_v25 = vunpack.c.l.s8.bf16 %v840_v1 }
 0x122   :  { %4355 = vmatprep.subr.bf16.mxu1 %v1326_v22  ;;  %v1334_v22 = vunpack.c.h.s8.bf16 %v835_v16  ;;  %v5571_v55 = vrot.slane %v81_v21, %v5431_v23  ;;  %v1372_v16 = vunpack.c.h.s8.bf16 %v854_v11 }
 0x124   :  { %4334 = vmatpush3.bf16.msra.mxu0 %v1302_v27  ;;  %v1359_v27 = vunpack.c.l.s8.bf16 %v848_v20  ;;  %v272_v6 = vcombine.high %v5571_v55, %v5571_v55 }
 0x125   :  { %4356 = vmatpush3.bf16.msra.mxu1 %v1318_v28  ;;  %4335 = vmatprep.subr.bf16.mxu0 %v1311_v29  ;;  %v844_v28 = vld [vmem:[#allocation2 + $0x3d8] sm:$0xff] }
 0x126   :  { %4357 = vmatprep.subr.bf16.mxu1 %v1327_v31  ;;  %v257_v31 = vcombine.high %v81_v21, %v81_v21  ;;  %v1351_v38 = vunpack.c.l.s8.bf16 %v844_v28  ;;  %v859_v21 = vld [vmem:[#allocation2 + $0x450] sm:$0xff] }
 0x128   :  { %4336 = vmatpush3.bf16.msra.mxu0 %v1303_v34 }
 0x129   :  { %4358 = vmatpush3.bf16.msra.mxu1 %v1319_v35  ;;  %4337 = vmatprep.subr.bf16.mxu0 %v1312_v36 }
 0x12a   :  { %4359 = vmatprep.subr.bf16.mxu1 %v1328_v37  ;;  %v1335_v37 = vunpack.c.l.s8.bf16 %v836_v26 }
 0x12c   :  { %4338 = vmatpush3.bf16.msra.mxu0 %v1304_v42 }
 0x12d   :  { %4360 = vmatpush3.bf16.msra.mxu1 %v1320_v43  ;;  %4367 = vmatprep.subr.bf16.mxu0 %v1337_v46  ;;  %v1344_v43 = vunpack.c.h.s8.bf16 %v840_v1  ;;  %v1360_v46 = vunpack.c.h.s8.bf16 %v848_v20  ;;  %v851_v1 = vld [vmem:[#allocation2 + $0x410] sm:$0xff] }
 0x12e   :  { %4389 = vmatprep.subr.bf16.mxu1 %v1353_v50 }
 0x12f   :  { %2386 = vmatmul.mubr.bf16.vlgmr.msra.gmra.mrb[24].mxu0 %v649_v58  ;;  %v5574_v58 = vrot.slane %v257_v31, %v5431_v23  ;;  %v1382_v31 = vunpack.c.h.s8.bf16 %v859_v21 }
 0x130   :  { %2426 = vmatmul.mubr.bf16.vlgmr.msra.gmra.mrb[24].mxu1 %v651_v59  ;;  %4368 = vmatpush3.bf16.msra.mxu0 %v1329_v62  ;;  %v1336_v59 = vunpack.c.h.s8.bf16 %v836_v26  ;;  %v1352_v62 = vunpack.c.h.s8.bf16 %v844_v28  ;;  %v864_v28 = vld [vmem:[#allocation2 + $0x478] sm:$0xff] }
 0x131   :  { %4390 = vmatpush3.bf16.msra.mxu1 %v1345_v63  ;;  %4369 = vmatprep.subr.bf16.mxu0 %v1338_v3  ;;  %v1369_v63 = vunpack.c.l.s8.bf16 %v853_v51  ;;  %v849_v3 = vld [vmem:[#allocation2 + $0x400] sm:$0xff] }
 0x132   :  { %4391 = vmatprep.subr.bf16.mxu1 %v1354_v4  ;;  %2465 = vmatprep.mubr.bf16.mxu0 %v654_v7  ;;  %v1385_v4 = vunpack.c.l.s8.bf16 %v861_v54  ;;  %v273_v7 = vcombine.high %v5574_v58, %v5574_v58 }
 0x133   :  { %2505 = vmatprep.mubr.bf16.mxu1 %v656_v8  ;;  %v653_v8 = vpack.c.bf16 %v5552_v40, %v5552_v40  ;;  %v1362_v40 = vunpack.c.h.s8.bf16 %v849_v3 }
 0x134   :  { %4370 = vmatpush3.bf16.msra.mxu0 %v1330_v44  ;;  %v655_v44 = vpack.c.bf16 %v5555_v41, %v5555_v41  ;;  %v1371_v41 = vunpack.c.l.s8.bf16 %v854_v11  ;;  %v865_v11 = vld [vmem:[#allocation2 + $0x480] sm:$0xff] }
 0x135   :  { %4392 = vmatpush3.bf16.msra.mxu1 %v1346_v9  ;;  %4371 = vmatprep.subr.bf16.mxu0 %v1339_v45  ;;  %v1361_v9 = vunpack.c.l.s8.bf16 %v849_v3  ;;  %v1377_v45 = vunpack.c.l.s8.bf16 %v857_v5  ;;  %v1392_v3 = vunpack.c.h.s8.bf16 %v864_v28 }
 0x136   :  { %4393 = vmatprep.subr.bf16.mxu1 %v1355_v48  ;;  %v1386_v48 = vunpack.c.h.s8.bf16 %v861_v54 }
 0x138   :  { %4372 = vmatpush3.bf16.msra.mxu0 %v1331_v49  ;;  %v862_v49 = vld [vmem:[#allocation2 + $0x468] sm:$0xff] }
 0x139   :  { %4394 = vmatpush3.bf16.msra.mxu1 %v1347_v12  ;;  %4373 = vmatprep.subr.bf16.mxu0 %v1340_v52  ;;  %v658_v12 = vpack.c.bf16 %v272_v6, %v272_v6  ;;  %v660_v52 = vpack.c.bf16 %v273_v7, %v273_v7  ;;  %v1387_v14 = vunpack.c.l.s8.bf16 %v862_v49  ;;  %v869_v6 = vld [vmem:[#allocation2 + $0x4a0] sm:$0xff] }
 0x13a   :  { %4395 = vmatprep.subr.bf16.mxu1 %v1356_v13  ;;  %v1378_v13 = vunpack.c.h.s8.bf16 %v857_v5  ;;  %v877_v7 = vld [vmem:[#allocation2 + $0x4e0] sm:$0xff] }
 0x13c   :  { %4374 = vmatpush3.bf16.msra.mxu0 %v1332_v56  ;;  %v858_v56 = vld [vmem:[#allocation2 + $0x448] sm:$0xff] }
 0x13d   :  { %4396 = vmatpush3.bf16.msra.mxu1 %v1348_v15  ;;  %4375 = vmatprep.subr.bf16.mxu0 %v1341_v57  ;;  %v1363_v15 = vunpack.c.l.s8.bf16 %v850_v53  ;;  %v1379_v57 = vunpack.c.l.s8.bf16 %v858_v56 }
 0x13e   :  { %4397 = vmatprep.subr.bf16.mxu1 %v1357_v60  ;;  %v1388_v60 = vunpack.c.h.s8.bf16 %v862_v49  ;;  %v1417_v49 = vunpack.c.l.s8.bf16 %v877_v7 }
 0x140   :  { %4376 = vmatpush3.bf16.msra.mxu0 %v1333_v61  ;;  %v863_v61 = vld [vmem:[#allocation2 + $0x470] sm:$0xff] }
 0x141   :  { %4398 = vmatpush3.bf16.msra.mxu1 %v1349_v18  ;;  %4377 = vmatprep.subr.bf16.mxu0 %v1342_v0  ;;  %v1364_v18 = vunpack.c.h.s8.bf16 %v850_v53  ;;  %v1380_v0 = vunpack.c.h.s8.bf16 %v858_v56  ;;  %v1389_v20 = vunpack.c.l.s8.bf16 %v863_v61  ;;  %v1390_v26 = vunpack.c.h.s8.bf16 %v863_v61  ;;  %v866_v61 = vld [vmem:[#allocation2 + $0x488] sm:$0xff] }
 0x142   :  { %4399 = vmatprep.subr.bf16.mxu1 %v1358_v19  ;;  %v4075_v29 = vpop.f32.mrb[0].mxu0  ;;  %v1373_v19 = vunpack.c.l.s8.bf16 %v855_v17  ;;  %v1418_v56 = vunpack.c.h.s8.bf16 %v877_v7 }
 0x143   :  { %v4097_v30 = vpop.f32.mrb[0].mxu1  ;;  %v4076_v32 = vpop.f32.mrb[1].mxu0 }
 0x144   :  { %v4098_v33 = vpop.f32.mrb[1].mxu1  ;;  %v4077_v34 = vadd.f32 %v4076_v32, %v4075_v29  ;;  %v4078_v36 = vpop.f32.mrb[2].mxu0  ;;  %4378 = vmatpush3.bf16.msra.mxu0 %v1334_v22  ;;  %v1365_v22 = vunpack.c.l.s8.bf16 %v851_v1  ;;  %v82_v29 = vld [vmem:[%s5939_s0 + $0x48] sm:$0xff] }
 0x145   :  { %v4099_v35 = vadd.f32 %v4098_v33, %v4097_v30  ;;  %4400 = vmatpush3.bf16.msra.mxu1 %v1350_v24  ;;  %v4100_v39 = vpop.f32.mrb[2].mxu1  ;;  %v4079_v42 = vpop.f32.mrb[3].mxu0  ;;  %4379 = vmatprep.subr.bf16.mxu0 %v1343_v25  ;;  %v1381_v24 = vunpack.c.l.s8.bf16 %v859_v21  ;;  %v1374_v25 = vunpack.c.h.s8.bf16 %v855_v17  ;;  %v1366_v30 = vunpack.c.h.s8.bf16 %v851_v1  ;;  %v852_v33 = vld [vmem:[#allocation2 + $0x418] sm:$0xff] }
 0x146   :  { %4401 = vmatprep.subr.bf16.mxu1 %v1359_v27  ;;  %v4101_v47 = vpop.f32.mrb[3].mxu1  ;;  %v856_v27 = vld [vmem:[#allocation2 + $0x438] sm:$0xff]  ;;  %v1367_v51 = vunpack.c.l.s8.bf16 %v852_v33 }
 0x147   :  { %v5568_v50 = vadd.f32 %v4099_v35, %v4077_v34  ;;  %v1375_v32 = vunpack.c.l.s8.bf16 %v856_v27  ;;  %v1391_v34 = vunpack.c.l.s8.bf16 %v864_v28  ;;  %v860_v35 = vld [vmem:[#allocation2 + $0x458] sm:$0xff]  ;;  %v867_v28 = vld [vmem:[#allocation2 + $0x490] sm:$0xff] }
 0x148   :  { %4380 = vmatpush3.bf16.msra.mxu0 %v1335_v37  ;;  %v1383_v54 = vunpack.c.l.s8.bf16 %v860_v35 }
 0x149   :  { %4402 = vmatpush3.bf16.msra.mxu1 %v1351_v38  ;;  %4381 = vmatprep.subr.bf16.mxu0 %v1344_v43  ;;  %v274_v38 = vcombine.high %v82_v29, %v82_v29 }
 0x14a   :  { %4403 = vmatprep.subr.bf16.mxu1 %v1360_v46 }
 0x14c   :  { %4382 = vmatpush3.bf16.msra.mxu0 %v1336_v59 }
 0x14d   :  { %4404 = vmatpush3.bf16.msra.mxu1 %v1352_v62  ;;  %4411 = vmatprep.subr.bf16.mxu0 %v1369_v63  ;;  %v1376_v63 = vunpack.c.h.s8.bf16 %v856_v27 }
 0x14e   :  { %4433 = vmatprep.subr.bf16.mxu1 %v1385_v4 }
 0x14f   :  { %2466 = vmatmul.mubr.bf16.vlgmr.msra.gmra.mrb[28].mxu0 %v653_v8  ;;  %v5589_v8 = vrot.slane %v82_v29, %v5431_v23 }
 0x150   :  { %2506 = vmatmul.mubr.bf16.vlgmr.msra.gmra.mrb[28].mxu1 %v655_v44  ;;  %4412 = vmatpush3.bf16.msra.mxu0 %v1361_v9  ;;  %v5592_v44 = vrot.slane %v274_v38, %v5431_v23  ;;  %v1398_v38 = vunpack.c.h.s8.bf16 %v867_v28 }
 0x151   :  { %4434 = vmatpush3.bf16.msra.mxu1 %v1377_v45  ;;  %4413 = vmatprep.subr.bf16.mxu0 %v1370_v10  ;;  %v1368_v45 = vunpack.c.h.s8.bf16 %v852_v33  ;;  %v1384_v10 = vunpack.c.h.s8.bf16 %v860_v35  ;;  %v872_v35 = vld [vmem:[#allocation2 + $0x4b8] sm:$0xff] }
 0x152   :  { %4435 = vmatprep.subr.bf16.mxu1 %v1386_v48  ;;  %2545 = vmatprep.mubr.bf16.mxu0 %v658_v12  ;;  %v1401_v48 = vunpack.c.l.s8.bf16 %v869_v6  ;;  %v289_v12 = vcombine.high %v5589_v8, %v5589_v8 }
 0x153   :  { %2585 = vmatprep.mubr.bf16.mxu1 %v660_v52  ;;  %v290_v52 = vcombine.high %v5592_v44, %v5592_v44 }
 0x154   :  { %4414 = vmatpush3.bf16.msra.mxu0 %v1362_v40  ;;  %v657_v40 = vpack.c.bf16 %v5571_v55, %v5571_v55  ;;  %v1394_v55 = vunpack.c.h.s8.bf16 %v865_v11 }
 0x155   :  { %4436 = vmatpush3.bf16.msra.mxu1 %v1378_v13  ;;  %4415 = vmatprep.subr.bf16.mxu0 %v1371_v41  ;;  %v659_v13 = vpack.c.bf16 %v5574_v58, %v5574_v58  ;;  %v1393_v41 = vunpack.c.l.s8.bf16 %v865_v11 }
 0x156   :  { %4437 = vmatprep.subr.bf16.mxu1 %v1387_v14  ;;  %v1402_v14 = vunpack.c.h.s8.bf16 %v869_v6 }
 0x158   :  { %4416 = vmatpush3.bf16.msra.mxu0 %v1363_v15  ;;  %v870_v15 = vld [vmem:[#allocation2 + $0x4a8] sm:$0xff] }
 0x159   :  { %4438 = vmatpush3.bf16.msra.mxu1 %v1379_v57  ;;  %4417 = vmatprep.subr.bf16.mxu0 %v1372_v16  ;;  %v878_v57 = vld [vmem:[#allocation2 + $0x4e8] sm:$0xff]  ;;  %v662_v16 = vpack.c.bf16 %v289_v12, %v289_v12  ;;  %v1403_v58 = vunpack.c.l.s8.bf16 %v870_v15  ;;  %v885_v12 = vld [vmem:[#allocation2 + $0x520] sm:$0xff] }
 0x15a   :  { %4439 = vmatprep.subr.bf16.mxu1 %v1388_v60  ;;  %v664_v60 = vpack.c.bf16 %v290_v52, %v290_v52  ;;  %v1420_v21 = vunpack.c.h.s8.bf16 %v878_v57  ;;  %v893_v52 = vld [vmem:[#allocation2 + $0x560] sm:$0xff] }
 0x15c   :  { %4418 = vmatpush3.bf16.msra.mxu0 %v1364_v18  ;;  %v1419_v18 = vunpack.c.l.s8.bf16 %v878_v57  ;;  %v1449_v57 = vunpack.c.l.s8.bf16 %v893_v52 }
 0x15d   :  { %4440 = vmatpush3.bf16.msra.mxu1 %v1380_v0  ;;  %4419 = vmatprep.subr.bf16.mxu0 %v1373_v19  ;;  %v874_v0 = vld [vmem:[#allocation2 + $0x4c8] sm:$0xff]  ;;  %v1395_v19 = vunpack.c.l.s8.bf16 %v866_v61 }
 0x15e   :  { %4441 = vmatprep.subr.bf16.mxu1 %v1389_v20  ;;  %v1411_v1 = vunpack.c.l.s8.bf16 %v874_v0  ;;  %v1404_v20 = vunpack.c.h.s8.bf16 %v870_v15  ;;  %v881_v15 = vld [vmem:[#allocation2 + $0x500] sm:$0xff] }
 0x160   :  { %4420 = vmatpush3.bf16.msra.mxu0 %v1365_v22  ;;  %v871_v22 = vld [vmem:[#allocation2 + $0x4b0] sm:$0xff] }
 0x161   :  { %4442 = vmatpush3.bf16.msra.mxu1 %v1381_v24  ;;  %4421 = vmatprep.subr.bf16.mxu0 %v1374_v25  ;;  %v879_v24 = vld [vmem:[#allocation2 + $0x4f0] sm:$0xff]  ;;  %v1396_v25 = vunpack.c.h.s8.bf16 %v866_v61  ;;  %v1405_v27 = vunpack.c.l.s8.bf16 %v871_v22  ;;  %v1406_v33 = vunpack.c.h.s8.bf16 %v871_v22 }
 0x162   :  { %4443 = vmatprep.subr.bf16.mxu1 %v1390_v26  ;;  %v4119_v36 = vpop.f32.mrb[4].mxu0  ;;  %v1412_v26 = vunpack.c.h.s8.bf16 %v874_v0  ;;  %v1421_v29 = vunpack.c.l.s8.bf16 %v879_v24  ;;  %v1450_v0 = vunpack.c.h.s8.bf16 %v893_v52 }
 0x163   :  { %v4141_v37 = vpop.f32.mrb[4].mxu1  ;;  %v4120_v39 = vpop.f32.mrb[5].mxu0 }
 0x164   :  { %v4142_v42 = vpop.f32.mrb[5].mxu1  ;;  %v4121_v43 = vadd.f32 %v4120_v39, %v4119_v36  ;;  %v4122_v46 = vpop.f32.mrb[6].mxu0  ;;  %4422 = vmatpush3.bf16.msra.mxu0 %v1366_v30  ;;  %v875_v30 = vld [vmem:[#allocation2 + $0x4d0] sm:$0xff]  ;;  %v880_v36 = vld [vmem:[#allocation2 + $0x4f8] sm:$0xff] }
 0x165   :  { %v4143_v47 = vadd.f32 %v4142_v42, %v4141_v37  ;;  %4444 = vmatpush3.bf16.msra.mxu1 %v1382_v31  ;;  %v4144_v59 = vpop.f32.mrb[6].mxu1  ;;  %v4123_v62 = vpop.f32.mrb[7].mxu0  ;;  %4423 = vmatprep.subr.bf16.mxu0 %v1375_v32  ;;  %v1397_v31 = vunpack.c.l.s8.bf16 %v867_v28  ;;  %v1413_v32 = vunpack.c.l.s8.bf16 %v875_v30  ;;  %v83_v37 = vld [vmem:[%s5939_s0 + $0x50] sm:$0xff]  ;;  %v1414_v39 = vunpack.c.h.s8.bf16 %v875_v30 }
 0x166   :  { %4445 = vmatprep.subr.bf16.mxu1 %v1391_v34  ;;  %v4145_v4 = vpop.f32.mrb[7].mxu1  ;;  %v1988_v5 = vadd.f32 %v4121_v43, %v5568_v50  ;;  %v873_v50 = vld [vmem:[#allocation2 + $0x4c0] sm:$0xff]  ;;  %v1422_v34 = vunpack.c.h.s8.bf16 %v879_v24  ;;  %v1407_v42 = vunpack.c.l.s8.bf16 %v872_v35  ;;  %v868_v43 = vld [vmem:[#allocation2 + $0x498] sm:$0xff]  ;;  %v1423_v46 = vunpack.c.l.s8.bf16 %v880_v36  ;;  %v882_v24 = vld [vmem:[#allocation2 + $0x508] sm:$0xff] }
 0x167   :  { %v1409_v53 = vunpack.c.l.s8.bf16 %v873_v50  ;;  %v1410_v17 = vunpack.c.h.s8.bf16 %v873_v50  ;;  %v291_v59 = vcombine.high %v83_v37, %v83_v37  ;;  %v1399_v6 = vunpack.c.l.s8.bf16 %v868_v43 }
 0x168   :  { %v5594_v9 = vadd.f32 %v4143_v47, %v1988_v5  ;;  %4424 = vmatpush3.bf16.msra.mxu0 %v1367_v51  ;;  %v876_v47 = vld [vmem:[#allocation2 + $0x4d8] sm:$0xff]  ;;  %v1424_v11 = vunpack.c.h.s8.bf16 %v880_v36  ;;  %v883_v36 = vld [vmem:[#allocation2 + $0x510] sm:$0xff] }
 0x169   :  { %4446 = vmatpush3.bf16.msra.mxu1 %v1383_v54  ;;  %4425 = vmatprep.subr.bf16.mxu0 %v1376_v63  ;;  %v1415_v7 = vunpack.c.l.s8.bf16 %v876_v47 }
 0x16a   :  { %4447 = vmatprep.subr.bf16.mxu1 %v1392_v3 }
 0x16c   :  { %4426 = vmatpush3.bf16.msra.mxu0 %v1368_v45 }
 0x16d   :  { %4448 = vmatpush3.bf16.msra.mxu1 %v1384_v10  ;;  %4455 = vmatprep.subr.bf16.mxu0 %v1401_v48  ;;  %v1408_v48 = vunpack.c.h.s8.bf16 %v872_v35 }
 0x16e   :  { %4477 = vmatprep.subr.bf16.mxu1 %v1417_v49 }
 0x16f   :  { %2546 = vmatmul.mubr.bf16.vlgmr.msra.gmra.mrb[32].mxu0 %v657_v40  ;;  %v5609_v40 = vrot.slane %v83_v37, %v5431_v23 }
 0x170   :  { %2586 = vmatmul.mubr.bf16.vlgmr.msra.gmra.mrb[32].mxu1 %v659_v13  ;;  %4456 = vmatpush3.bf16.msra.mxu0 %v1393_v41  ;;  %v5612_v13 = vrot.slane %v291_v59, %v5431_v23  ;;  %v1430_v59 = vunpack.c.h.s8.bf16 %v883_v36 }
 0x171   :  { %4478 = vmatpush3.bf16.msra.mxu1 %v1409_v53  ;;  %4457 = vmatprep.subr.bf16.mxu0 %v1402_v14  ;;  %v1400_v53 = vunpack.c.h.s8.bf16 %v868_v43  ;;  %v1416_v14 = vunpack.c.h.s8.bf16 %v876_v47  ;;  %v888_v47 = vld [vmem:[#allocation2 + $0x538] sm:$0xff] }
 0x172   :  { %4479 = vmatprep.subr.bf16.mxu1 %v1418_v56  ;;  %2625 = vmatprep.mubr.bf16.mxu0 %v662_v16  ;;  %v1433_v56 = vunpack.c.l.s8.bf16 %v885_v12  ;;  %v306_v16 = vcombine.high %v5609_v40, %v5609_v40 }
 0x173   :  { %2665 = vmatprep.mubr.bf16.mxu1 %v664_v60  ;;  %v307_v60 = vcombine.high %v5612_v13, %v5612_v13 }
 0x174   :  { %4458 = vmatpush3.bf16.msra.mxu0 %v1394_v55  ;;  %v661_v55 = vpack.c.bf16 %v5589_v8, %v5589_v8  ;;  %v1426_v8 = vunpack.c.h.s8.bf16 %v881_v15 }
 0x175   :  { %4480 = vmatpush3.bf16.msra.mxu1 %v1410_v17  ;;  %4459 = vmatprep.subr.bf16.mxu0 %v1403_v58  ;;  %v663_v17 = vpack.c.bf16 %v5592_v44, %v5592_v44  ;;  %v1425_v58 = vunpack.c.l.s8.bf16 %v881_v15 }
 0x176   :  { %4481 = vmatprep.subr.bf16.mxu1 %v1419_v18  ;;  %v1434_v18 = vunpack.c.h.s8.bf16 %v885_v12 }
 0x178   :  { %4460 = vmatpush3.bf16.msra.mxu0 %v1395_v19  ;;  %v886_v19 = vld [vmem:[#allocation2 + $0x528] sm:$0xff] }
 0x179   :  { %4482 = vmatpush3.bf16.msra.mxu1 %v1411_v1  ;;  %4461 = vmatprep.subr.bf16.mxu0 %v1404_v20  ;;  %v894_v1 = vld [vmem:[#allocation2 + $0x568] sm:$0xff]  ;;  %v666_v20 = vpack.c.bf16 %v306_v16, %v306_v16  ;;  %v1435_v44 = vunpack.c.l.s8.bf16 %v886_v19  ;;  %v901_v16 = vld [vmem:[#allocation2 + $0x5a0] sm:$0xff] }
 0x17a   :  { %4483 = vmatprep.subr.bf16.mxu1 %v1420_v21  ;;  %v668_v21 = vpack.c.bf16 %v307_v60, %v307_v60  ;;  %v1452_v30 = vunpack.c.h.s8.bf16 %v894_v1  ;;  %v909_v60 = vld [vmem:[#allocation2 + $0x5e0] sm:$0xff] }
 0x17c   :  { %4462 = vmatpush3.bf16.msra.mxu0 %v1396_v25  ;;  %v1451_v25 = vunpack.c.l.s8.bf16 %v894_v1  ;;  %v1481_v1 = vunpack.c.l.s8.bf16 %v909_v60 }
 0x17d   :  { %4484 = vmatpush3.bf16.msra.mxu1 %v1412_v26  ;;  %4463 = vmatprep.subr.bf16.mxu0 %v1405_v27  ;;  %v890_v26 = vld [vmem:[#allocation2 + $0x548] sm:$0xff]  ;;  %v1427_v27 = vunpack.c.l.s8.bf16 %v882_v24 }
 0x17e   :  { %4485 = vmatprep.subr.bf16.mxu1 %v1421_v29  ;;  %v1443_v28 = vunpack.c.l.s8.bf16 %v890_v26  ;;  %v1436_v29 = vunpack.c.h.s8.bf16 %v886_v19  ;;  %v897_v19 = vld [vmem:[#allocation2 + $0x580] sm:$0xff] }
 0x180   :  { %4464 = vmatpush3.bf16.msra.mxu0 %v1397_v31  ;;  %v887_v31 = vld [vmem:[#allocation2 + $0x530] sm:$0xff] }
 0x181   :  { %4486 = vmatpush3.bf16.msra.mxu1 %v1413_v32  ;;  %4465 = vmatprep.subr.bf16.mxu0 %v1406_v33  ;;  %v895_v32 = vld [vmem:[#allocation2 + $0x570] sm:$0xff]  ;;  %v1428_v33 = vunpack.c.h.s8.bf16 %v882_v24  ;;  %v1437_v35 = vunpack.c.l.s8.bf16 %v887_v31  ;;  %v1438_v43 = vunpack.c.h.s8.bf16 %v887_v31 }
 0x182   :  { %4487 = vmatprep.subr.bf16.mxu1 %v1422_v34  ;;  %v4163_v51 = vpop.f32.mrb[8].mxu0  ;;  %v1444_v34 = vunpack.c.h.s8.bf16 %v890_v26  ;;  %v1453_v37 = vunpack.c.l.s8.bf16 %v895_v32  ;;  %v1482_v26 = vunpack.c.h.s8.bf16 %v909_v60 }
 0x183   :  { %v4185_v54 = vpop.f32.mrb[8].mxu1  ;;  %v4164_v62 = vpop.f32.mrb[9].mxu0 }
 0x184   :  { %v4186_v63 = vpop.f32.mrb[9].mxu1  ;;  %v4165_v3 = vadd.f32 %v4164_v62, %v4163_v51  ;;  %v4166_v4 = vpop.f32.mrb[10].mxu0  ;;  %4466 = vmatpush3.bf16.msra.mxu0 %v1398_v38  ;;  %v891_v38 = vld [vmem:[#allocation2 + $0x550] sm:$0xff]  ;;  %v896_v51 = vld [vmem:[#allocation2 + $0x578] sm:$0xff] }
 0x185   :  { %v4187_v5 = vadd.f32 %v4186_v63, %v4185_v54  ;;  %4488 = vmatpush3.bf16.msra.mxu1 %v1414_v39  ;;  %v4188_v45 = vpop.f32.mrb[10].mxu1  ;;  %v4167_v10 = vpop.f32.mrb[11].mxu0  ;;  %4467 = vmatprep.subr.bf16.mxu0 %v1407_v42  ;;  %v1429_v39 = vunpack.c.l.s8.bf16 %v883_v36  ;;  %v1445_v42 = vunpack.c.l.s8.bf16 %v891_v38  ;;  %v84_v54 = vld [vmem:[%s5939_s0 + $0x58] sm:$0xff]  ;;  %v1446_v62 = vunpack.c.h.s8.bf16 %v891_v38 }
 0x186   :  { %4489 = vmatprep.subr.bf16.mxu1 %v1423_v46  ;;  %v4189_v49 = vpop.f32.mrb[11].mxu1  ;;  %v2068_v50 = vadd.f32 %v4165_v3, %v5594_v9  ;;  %v889_v9 = vld [vmem:[#allocation2 + $0x540] sm:$0xff]  ;;  %v1454_v46 = vunpack.c.h.s8.bf16 %v895_v32  ;;  %v1439_v63 = vunpack.c.l.s8.bf16 %v888_v47  ;;  %v884_v3 = vld [vmem:[#allocation2 + $0x518] sm:$0xff]  ;;  %v1455_v4 = vunpack.c.l.s8.bf16 %v896_v51  ;;  %v898_v32 = vld [vmem:[#allocation2 + $0x588] sm:$0xff] }
 0x187   :  { %v1441_v61 = vunpack.c.l.s8.bf16 %v889_v9  ;;  %v1442_v22 = vunpack.c.h.s8.bf16 %v889_v9  ;;  %v308_v45 = vcombine.high %v84_v54, %v84_v54  ;;  %v1431_v12 = vunpack.c.l.s8.bf16 %v884_v3 }
 0x188   :  { %v5614_v41 = vadd.f32 %v4187_v5, %v2068_v50  ;;  %4468 = vmatpush3.bf16.msra.mxu0 %v1399_v6  ;;  %v892_v5 = vld [vmem:[#allocation2 + $0x558] sm:$0xff]  ;;  %v1456_v15 = vunpack.c.h.s8.bf16 %v896_v51  ;;  %v899_v51 = vld [vmem:[#allocation2 + $0x590] sm:$0xff] }
 0x189   :  { %4490 = vmatpush3.bf16.msra.mxu1 %v1415_v7  ;;  %4469 = vmatprep.subr.bf16.mxu0 %v1408_v48  ;;  %v1447_v52 = vunpack.c.l.s8.bf16 %v892_v5 }
 0x18a   :  { %4491 = vmatprep.subr.bf16.mxu1 %v1424_v11 }
 0x18c   :  { %4470 = vmatpush3.bf16.msra.mxu0 %v1400_v53 }
 0x18d   :  { %4492 = vmatpush3.bf16.msra.mxu1 %v1416_v14  ;;  %4499 = vmatprep.subr.bf16.mxu0 %v1433_v56  ;;  %v1440_v56 = vunpack.c.h.s8.bf16 %v888_v47 }
 0x18e   :  { %4521 = vmatprep.subr.bf16.mxu1 %v1449_v57 }
 0x18f   :  { %2626 = vmatmul.mubr.bf16.vlgmr.msra.gmra.mrb[36].mxu0 %v661_v55  ;;  %v5629_v55 = vrot.slane %v84_v54, %v5431_v23 }
 0x190   :  { %2666 = vmatmul.mubr.bf16.vlgmr.msra.gmra.mrb[36].mxu1 %v663_v17  ;;  %4500 = vmatpush3.bf16.msra.mxu0 %v1425_v58  ;;  %v5632_v17 = vrot.slane %v308_v45, %v5431_v23  ;;  %v1462_v45 = vunpack.c.h.s8.bf16 %v899_v51 }
 0x191   :  { %4522 = vmatpush3.bf16.msra.mxu1 %v1441_v61  ;;  %4501 = vmatprep.subr.bf16.mxu0 %v1434_v18  ;;  %v1432_v61 = vunpack.c.h.s8.bf16 %v884_v3  ;;  %v1448_v18 = vunpack.c.h.s8.bf16 %v892_v5  ;;  %v904_v5 = vld [vmem:[#allocation2 + $0x5b8] sm:$0xff] }
 0x192   :  { %4523 = vmatprep.subr.bf16.mxu1 %v1450_v0  ;;  %2705 = vmatprep.mubr.bf16.mxu0 %v666_v20  ;;  %v1465_v0 = vunpack.c.l.s8.bf16 %v901_v16  ;;  %v323_v20 = vcombine.high %v5629_v55, %v5629_v55 }
 0x193   :  { %2745 = vmatprep.mubr.bf16.mxu1 %v668_v21  ;;  %v324_v21 = vcombine.high %v5632_v17, %v5632_v17 }
 0x194   :  { %4502 = vmatpush3.bf16.msra.mxu0 %v1426_v8  ;;  %v665_v8 = vpack.c.bf16 %v5609_v40, %v5609_v40  ;;  %v1458_v40 = vunpack.c.h.s8.bf16 %v897_v19 }
 0x195   :  { %4524 = vmatpush3.bf16.msra.mxu1 %v1442_v22  ;;  %4503 = vmatprep.subr.bf16.mxu0 %v1435_v44  ;;  %v667_v22 = vpack.c.bf16 %v5612_v13, %v5612_v13  ;;  %v1457_v44 = vunpack.c.l.s8.bf16 %v897_v19 }
 0x196   :  { %4525 = vmatprep.subr.bf16.mxu1 %v1451_v25  ;;  %v1466_v25 = vunpack.c.h.s8.bf16 %v901_v16 }
 0x198   :  { %4504 = vmatpush3.bf16.msra.mxu0 %v1427_v27  ;;  %v902_v27 = vld [vmem:[#allocation2 + $0x5a8] sm:$0xff] }
 0x199   :  { %4526 = vmatpush3.bf16.msra.mxu1 %v1443_v28  ;;  %4505 = vmatprep.subr.bf16.mxu0 %v1436_v29  ;;  %v910_v28 = vld [vmem:[#allocation2 + $0x5e8] sm:$0xff]  ;;  %v670_v29 = vpack.c.bf16 %v323_v20, %v323_v20  ;;  %v1467_v13 = vunpack.c.l.s8.bf16 %v902_v27  ;;  %v917_v20 = vld [vmem:[#allocation2 + $0x620] sm:$0xff] }
 0x19a   :  { %4527 = vmatprep.subr.bf16.mxu1 %v1452_v30  ;;  %v672_v30 = vpack.c.bf16 %v324_v21, %v324_v21  ;;  %v1484_v38 = vunpack.c.h.s8.bf16 %v910_v28  ;;  %v925_v21 = vld [vmem:[#allocation2 + $0x660] sm:$0xff] }
 0x19c   :  { %4506 = vmatpush3.bf16.msra.mxu0 %v1428_v33  ;;  %v1483_v33 = vunpack.c.l.s8.bf16 %v910_v28  ;;  %v1513_v28 = vunpack.c.l.s8.bf16 %v925_v21 }
 0x19d   :  { %4528 = vmatpush3.bf16.msra.mxu1 %v1444_v34  ;;  %4507 = vmatprep.subr.bf16.mxu0 %v1437_v35  ;;  %v906_v34 = vld [vmem:[#allocation2 + $0x5c8] sm:$0xff]  ;;  %v1459_v35 = vunpack.c.l.s8.bf16 %v898_v32 }
 0x19e   :  { %4529 = vmatprep.subr.bf16.mxu1 %v1453_v37  ;;  %v1475_v36 = vunpack.c.l.s8.bf16 %v906_v34  ;;  %v1468_v37 = vunpack.c.h.s8.bf16 %v902_v27  ;;  %v913_v27 = vld [vmem:[#allocation2 + $0x600] sm:$0xff] }
 0x1a0   :  { %4508 = vmatpush3.bf16.msra.mxu0 %v1429_v39  ;;  %v903_v39 = vld [vmem:[#allocation2 + $0x5b0] sm:$0xff] }
 0x1a1   :  { %4530 = vmatpush3.bf16.msra.mxu1 %v1445_v42  ;;  %4509 = vmatprep.subr.bf16.mxu0 %v1438_v43  ;;  %v911_v42 = vld [vmem:[#allocation2 + $0x5f0] sm:$0xff]  ;;  %v1460_v43 = vunpack.c.h.s8.bf16 %v898_v32  ;;  %v1469_v47 = vunpack.c.l.s8.bf16 %v903_v39  ;;  %v1470_v3 = vunpack.c.h.s8.bf16 %v903_v39 }
 0x1a2   :  { %4531 = vmatprep.subr.bf16.mxu1 %v1454_v46  ;;  %v4207_v6 = vpop.f32.mrb[12].mxu0  ;;  %v1476_v46 = vunpack.c.h.s8.bf16 %v906_v34  ;;  %v1485_v54 = vunpack.c.l.s8.bf16 %v911_v42  ;;  %v1514_v34 = vunpack.c.h.s8.bf16 %v925_v21 }
 0x1a3   :  { %v4229_v7 = vpop.f32.mrb[12].mxu1  ;;  %v4208_v10 = vpop.f32.mrb[13].mxu0 }
 0x1a4   :  { %v4230_v48 = vpop.f32.mrb[13].mxu1  ;;  %v4209_v11 = vadd.f32 %v4208_v10, %v4207_v6  ;;  %v4210_v49 = vpop.f32.mrb[14].mxu0  ;;  %4510 = vmatpush3.bf16.msra.mxu0 %v1430_v59  ;;  %v907_v59 = vld [vmem:[#allocation2 + $0x5d0] sm:$0xff]  ;;  %v912_v6 = vld [vmem:[#allocation2 + $0x5f8] sm:$0xff] }
 0x1a5   :  { %v4231_v50 = vadd.f32 %v4230_v48, %v4229_v7  ;;  %4532 = vmatpush3.bf16.msra.mxu1 %v1446_v62  ;;  %v4232_v53 = vpop.f32.mrb[14].mxu1  ;;  %v4211_v14 = vpop.f32.mrb[15].mxu0  ;;  %4511 = vmatprep.subr.bf16.mxu0 %v1439_v63  ;;  %v1461_v62 = vunpack.c.l.s8.bf16 %v899_v51  ;;  %v1477_v63 = vunpack.c.l.s8.bf16 %v907_v59  ;;  %v85_v7 = vld [vmem:[%s5939_s0 + $0x60] sm:$0xff]  ;;  %v1478_v10 = vunpack.c.h.s8.bf16 %v907_v59 }
 0x1a6   :  { %4533 = vmatprep.subr.bf16.mxu1 %v1455_v4  ;;  %v4233_v57 = vpop.f32.mrb[15].mxu1  ;;  %v2148_v9 = vadd.f32 %v4209_v11, %v5614_v41  ;;  %v905_v41 = vld [vmem:[#allocation2 + $0x5c0] sm:$0xff]  ;;  %v1486_v4 = vunpack.c.h.s8.bf16 %v911_v42  ;;  %v1471_v48 = vunpack.c.l.s8.bf16 %v904_v5  ;;  %v900_v11 = vld [vmem:[#allocation2 + $0x598] sm:$0xff]  ;;  %v1487_v49 = vunpack.c.l.s8.bf16 %v912_v6  ;;  %v914_v42 = vld [vmem:[#allocation2 + $0x608] sm:$0xff] }
 0x1a7   :  { %v1473_v24 = vunpack.c.l.s8.bf16 %v905_v41  ;;  %v1474_v31 = vunpack.c.h.s8.bf16 %v905_v41  ;;  %v325_v53 = vcombine.high %v85_v7, %v85_v7  ;;  %v1463_v16 = vunpack.c.l.s8.bf16 %v900_v11 }
 0x1a8   :  { %v5634_v58 = vadd.f32 %v4231_v50, %v2148_v9  ;;  %4512 = vmatpush3.bf16.msra.mxu0 %v1431_v12  ;;  %v908_v50 = vld [vmem:[#allocation2 + $0x5d8] sm:$0xff]  ;;  %v1488_v19 = vunpack.c.h.s8.bf16 %v912_v6  ;;  %v915_v6 = vld [vmem:[#allocation2 + $0x610] sm:$0xff] }
 0x1a9   :  { %4534 = vmatpush3.bf16.msra.mxu1 %v1447_v52  ;;  %4513 = vmatprep.subr.bf16.mxu0 %v1440_v56  ;;  %v1479_v60 = vunpack.c.l.s8.bf16 %v908_v50 }
 0x1aa   :  { %4535 = vmatprep.subr.bf16.mxu1 %v1456_v15 }
 0x1ac   :  { %4514 = vmatpush3.bf16.msra.mxu0 %v1432_v61 }
 0x1ad   :  { %4536 = vmatpush3.bf16.msra.mxu1 %v1448_v18  ;;  %4543 = vmatprep.subr.bf16.mxu0 %v1465_v0  ;;  %v1472_v0 = vunpack.c.h.s8.bf16 %v904_v5 }
 0x1ae   :  { %4565 = vmatprep.subr.bf16.mxu1 %v1481_v1 }
 0x1af   :  { %2706 = vmatmul.mubr.bf16.vlgmr.msra.gmra.mrb[40].mxu0 %v665_v8  ;;  %v5649_v8 = vrot.slane %v85_v7, %v5431_v23 }
 0x1b0   :  { %2746 = vmatmul.mubr.bf16.vlgmr.msra.gmra.mrb[40].mxu1 %v667_v22  ;;  %4544 = vmatpush3.bf16.msra.mxu0 %v1457_v44  ;;  %v5652_v22 = vrot.slane %v325_v53, %v5431_v23  ;;  %v1494_v53 = vunpack.c.h.s8.bf16 %v915_v6 }
 0x1b1   :  { %4566 = vmatpush3.bf16.msra.mxu1 %v1473_v24  ;;  %4545 = vmatprep.subr.bf16.mxu0 %v1466_v25  ;;  %v1464_v24 = vunpack.c.h.s8.bf16 %v900_v11  ;;  %v1480_v25 = vunpack.c.h.s8.bf16 %v908_v50  ;;  %v920_v50 = vld [vmem:[#allocation2 + $0x638] sm:$0xff] }
 0x1b2   :  { %4567 = vmatprep.subr.bf16.mxu1 %v1482_v26  ;;  %2785 = vmatprep.mubr.bf16.mxu0 %v670_v29  ;;  %v1497_v26 = vunpack.c.l.s8.bf16 %v917_v20  ;;  %v340_v29 = vcombine.high %v5649_v8, %v5649_v8 }
 0x1b3   :  { %2825 = vmatprep.mubr.bf16.mxu1 %v672_v30  ;;  %v341_v30 = vcombine.high %v5652_v22, %v5652_v22 }
 0x1b4   :  { %4546 = vmatpush3.bf16.msra.mxu0 %v1458_v40  ;;  %v669_v40 = vpack.c.bf16 %v5629_v55, %v5629_v55  ;;  %v1490_v55 = vunpack.c.h.s8.bf16 %v913_v27 }
 0x1b5   :  { %4568 = vmatpush3.bf16.msra.mxu1 %v1474_v31  ;;  %4547 = vmatprep.subr.bf16.mxu0 %v1467_v13  ;;  %v671_v31 = vpack.c.bf16 %v5632_v17, %v5632_v17  ;;  %v1489_v13 = vunpack.c.l.s8.bf16 %v913_v27 }
 0x1b6   :  { %4569 = vmatprep.subr.bf16.mxu1 %v1483_v33  ;;  %v1498_v33 = vunpack.c.h.s8.bf16 %v917_v20 }
 0x1b8   :  { %4548 = vmatpush3.bf16.msra.mxu0 %v1459_v35  ;;  %v918_v35 = vld [vmem:[#allocation2 + $0x628] sm:$0xff] }
 0x1b9   :  { %4570 = vmatpush3.bf16.msra.mxu1 %v1475_v36  ;;  %4549 = vmatprep.subr.bf16.mxu0 %v1468_v37  ;;  %v926_v36 = vld [vmem:[#allocation2 + $0x668] sm:$0xff]  ;;  %v674_v37 = vpack.c.bf16 %v340_v29, %v340_v29  ;;  %v1499_v17 = vunpack.c.l.s8.bf16 %v918_v35  ;;  %v933_v29 = vld [vmem:[#allocation2 + $0x6a0] sm:$0xff] }
 0x1ba   :  { %4571 = vmatprep.subr.bf16.mxu1 %v1484_v38  ;;  %v676_v38 = vpack.c.bf16 %v341_v30, %v341_v30  ;;  %v1516_v59 = vunpack.c.h.s8.bf16 %v926_v36  ;;  %v941_v30 = vld [vmem:[#allocation2 + $0x6e0] sm:$0xff] }
 0x1bc   :  { %4550 = vmatpush3.bf16.msra.mxu0 %v1460_v43  ;;  %v1515_v43 = vunpack.c.l.s8.bf16 %v926_v36  ;;  %v1545_v36 = vunpack.c.l.s8.bf16 %v941_v30 }
 0x1bd   :  { %4572 = vmatpush3.bf16.msra.mxu1 %v1476_v46  ;;  %4551 = vmatprep.subr.bf16.mxu0 %v1469_v47  ;;  %v922_v46 = vld [vmem:[#allocation2 + $0x648] sm:$0xff]  ;;  %v1491_v47 = vunpack.c.l.s8.bf16 %v914_v42 }
 0x1be   :  { %4573 = vmatprep.subr.bf16.mxu1 %v1485_v54  ;;  %v1507_v51 = vunpack.c.l.s8.bf16 %v922_v46  ;;  %v1500_v54 = vunpack.c.h.s8.bf16 %v918_v35  ;;  %v929_v35 = vld [vmem:[#allocation2 + $0x680] sm:$0xff] }
 0x1c0   :  { %4552 = vmatpush3.bf16.msra.mxu0 %v1461_v62  ;;  %v919_v62 = vld [vmem:[#allocation2 + $0x630] sm:$0xff] }
 0x1c1   :  { %4574 = vmatpush3.bf16.msra.mxu1 %v1477_v63  ;;  %4553 = vmatprep.subr.bf16.mxu0 %v1470_v3  ;;  %v927_v63 = vld [vmem:[#allocation2 + $0x670] sm:$0xff]  ;;  %v1492_v3 = vunpack.c.h.s8.bf16 %v914_v42  ;;  %v1501_v5 = vunpack.c.l.s8.bf16 %v919_v62  ;;  %v1502_v11 = vunpack.c.h.s8.bf16 %v919_v62 }
 0x1c2   :  { %4575 = vmatprep.subr.bf16.mxu1 %v1486_v4  ;;  %v4251_v12 = vpop.f32.mrb[16].mxu0  ;;  %v1508_v4 = vunpack.c.h.s8.bf16 %v922_v46  ;;  %v1517_v7 = vunpack.c.l.s8.bf16 %v927_v63  ;;  %v1546_v46 = vunpack.c.h.s8.bf16 %v941_v30 }
 0x1c3   :  { %v4273_v52 = vpop.f32.mrb[16].mxu1  ;;  %v4252_v14 = vpop.f32.mrb[17].mxu0 }
 0x1c4   :  { %v4274_v56 = vpop.f32.mrb[17].mxu1  ;;  %v4253_v15 = vadd.f32 %v4252_v14, %v4251_v12  ;;  %v4254_v57 = vpop.f32.mrb[18].mxu0  ;;  %4554 = vmatpush3.bf16.msra.mxu0 %v1462_v45  ;;  %v923_v45 = vld [vmem:[#allocation2 + $0x650] sm:$0xff]  ;;  %v928_v12 = vld [vmem:[#allocation2 + $0x678] sm:$0xff] }
 0x1c5   :  { %v4275_v9 = vadd.f32 %v4274_v56, %v4273_v52  ;;  %4576 = vmatpush3.bf16.msra.mxu1 %v1478_v10  ;;  %v4276_v61 = vpop.f32.mrb[18].mxu1  ;;  %v4255_v18 = vpop.f32.mrb[19].mxu0  ;;  %4555 = vmatprep.subr.bf16.mxu0 %v1471_v48  ;;  %v1493_v10 = vunpack.c.l.s8.bf16 %v915_v6  ;;  %v1509_v48 = vunpack.c.l.s8.bf16 %v923_v45  ;;  %v86_v52 = vld [vmem:[%s5939_s0 + $0x68] sm:$0xff]  ;;  %v1510_v14 = vunpack.c.h.s8.bf16 %v923_v45 }
 0x1c6   :  { %4577 = vmatprep.subr.bf16.mxu1 %v1487_v49  ;;  %v4277_v1 = vpop.f32.mrb[19].mxu1  ;;  %v2228_v41 = vadd.f32 %v4253_v15, %v5634_v58  ;;  %v921_v58 = vld [vmem:[#allocation2 + $0x640] sm:$0xff]  ;;  %v1518_v49 = vunpack.c.h.s8.bf16 %v927_v63  ;;  %v1503_v56 = vunpack.c.l.s8.bf16 %v920_v50  ;;  %v916_v15 = vld [vmem:[#allocation2 + $0x618] sm:$0xff]  ;;  %v1519_v57 = vunpack.c.l.s8.bf16 %v928_v12  ;;  %v930_v63 = vld [vmem:[#allocation2 + $0x688] sm:$0xff] }
 0x1c7   :  { %v1505_v32 = vunpack.c.l.s8.bf16 %v921_v58  ;;  %v1506_v39 = vunpack.c.h.s8.bf16 %v921_v58  ;;  %v342_v61 = vcombine.high %v86_v52, %v86_v52  ;;  %v1495_v20 = vunpack.c.l.s8.bf16 %v916_v15 }
 0x1c8   :  { %v5654_v44 = vadd.f32 %v4275_v9, %v2228_v41  ;;  %4556 = vmatpush3.bf16.msra.mxu0 %v1463_v16  ;;  %v924_v9 = vld [vmem:[#allocation2 + $0x658] sm:$0xff]  ;;  %v1520_v27 = vunpack.c.h.s8.bf16 %v928_v12  ;;  %v931_v12 = vld [vmem:[#allocation2 + $0x690] sm:$0xff] }
 0x1c9   :  { %4578 = vmatpush3.bf16.msra.mxu1 %v1479_v60  ;;  %4557 = vmatprep.subr.bf16.mxu0 %v1472_v0  ;;  %v1511_v21 = vunpack.c.l.s8.bf16 %v924_v9 }
 0x1ca   :  { %4579 = vmatprep.subr.bf16.mxu1 %v1488_v19 }
 0x1cc   :  { %4558 = vmatpush3.bf16.msra.mxu0 %v1464_v24 }
 0x1cd   :  { %4580 = vmatpush3.bf16.msra.mxu1 %v1480_v25  ;;  %4587 = vmatprep.subr.bf16.mxu0 %v1497_v26  ;;  %v1504_v26 = vunpack.c.h.s8.bf16 %v920_v50 }
 0x1ce   :  { %4609 = vmatprep.subr.bf16.mxu1 %v1513_v28 }
 0x1cf   :  { %2786 = vmatmul.mubr.bf16.vlgmr.msra.gmra.mrb[44].mxu0 %v669_v40  ;;  %v5669_v40 = vrot.slane %v86_v52, %v5431_v23 }
 0x1d0   :  { %2826 = vmatmul.mubr.bf16.vlgmr.msra.gmra.mrb[44].mxu1 %v671_v31  ;;  %4588 = vmatpush3.bf16.msra.mxu0 %v1489_v13  ;;  %v5672_v31 = vrot.slane %v342_v61, %v5431_v23  ;;  %v1526_v61 = vunpack.c.h.s8.bf16 %v931_v12 }
 0x1d1   :  { %4610 = vmatpush3.bf16.msra.mxu1 %v1505_v32  ;;  %4589 = vmatprep.subr.bf16.mxu0 %v1498_v33  ;;  %v1496_v32 = vunpack.c.h.s8.bf16 %v916_v15  ;;  %v1512_v33 = vunpack.c.h.s8.bf16 %v924_v9  ;;  %v936_v9 = vld [vmem:[#allocation2 + $0x6b8] sm:$0xff] }
 0x1d2   :  { %4611 = vmatprep.subr.bf16.mxu1 %v1514_v34  ;;  %2865 = vmatprep.mubr.bf16.mxu0 %v674_v37  ;;  %v1529_v34 = vunpack.c.l.s8.bf16 %v933_v29  ;;  %v357_v37 = vcombine.high %v5669_v40, %v5669_v40 }
 0x1d3   :  { %2905 = vmatprep.mubr.bf16.mxu1 %v676_v38  ;;  %v358_v38 = vcombine.high %v5672_v31, %v5672_v31 }
 0x1d4   :  { %4590 = vmatpush3.bf16.msra.mxu0 %v1490_v55  ;;  %v673_v55 = vpack.c.bf16 %v5649_v8, %v5649_v8  ;;  %v1522_v8 = vunpack.c.h.s8.bf16 %v929_v35 }
 0x1d5   :  { %4612 = vmatpush3.bf16.msra.mxu1 %v1506_v39  ;;  %4591 = vmatprep.subr.bf16.mxu0 %v1499_v17  ;;  %v675_v39 = vpack.c.bf16 %v5652_v22, %v5652_v22  ;;  %v1521_v17 = vunpack.c.l.s8.bf16 %v929_v35 }
 0x1d6   :  { %4613 = vmatprep.subr.bf16.mxu1 %v1515_v43  ;;  %v1530_v43 = vunpack.c.h.s8.bf16 %v933_v29 }
 0x1d8   :  { %4592 = vmatpush3.bf16.msra.mxu0 %v1491_v47  ;;  %v934_v47 = vld [vmem:[#allocation2 + $0x6a8] sm:$0xff] }
 0x1d9   :  { %4614 = vmatpush3.bf16.msra.mxu1 %v1507_v51  ;;  %4593 = vmatprep.subr.bf16.mxu0 %v1500_v54  ;;  %v942_v51 = vld [vmem:[#allocation2 + $0x6e8] sm:$0xff]  ;;  %v678_v54 = vpack.c.bf16 %v357_v37, %v357_v37  ;;  %v1531_v22 = vunpack.c.l.s8.bf16 %v934_v47  ;;  %v949_v37 = vld [vmem:[#allocation2 + $0x720] sm:$0xff] }
 0x1da   :  { %4615 = vmatprep.subr.bf16.mxu1 %v1516_v59  ;;  %v680_v59 = vpack.c.bf16 %v358_v38, %v358_v38  ;;  %v1548_v45 = vunpack.c.h.s8.bf16 %v942_v51  ;;  %v957_v38 = vld [vmem:[#allocation2 + $0x760] sm:$0xff] }
 0x1dc   :  { %4594 = vmatpush3.bf16.msra.mxu0 %v1492_v3  ;;  %v1547_v3 = vunpack.c.l.s8.bf16 %v942_v51  ;;  %v1577_v51 = vunpack.c.l.s8.bf16 %v957_v38 }
 0x1dd   :  { %4616 = vmatpush3.bf16.msra.mxu1 %v1508_v4  ;;  %4595 = vmatprep.subr.bf16.mxu0 %v1501_v5  ;;  %v938_v4 = vld [vmem:[#allocation2 + $0x6c8] sm:$0xff]  ;;  %v1523_v5 = vunpack.c.l.s8.bf16 %v930_v63 }
 0x1de   :  { %4617 = vmatprep.subr.bf16.mxu1 %v1517_v7  ;;  %v1539_v6 = vunpack.c.l.s8.bf16 %v938_v4  ;;  %v1532_v7 = vunpack.c.h.s8.bf16 %v934_v47  ;;  %v945_v47 = vld [vmem:[#allocation2 + $0x700] sm:$0xff] }
 0x1e0   :  { %4596 = vmatpush3.bf16.msra.mxu0 %v1493_v10  ;;  %v935_v10 = vld [vmem:[#allocation2 + $0x6b0] sm:$0xff] }
 0x1e1   :  { %4618 = vmatpush3.bf16.msra.mxu1 %v1509_v48  ;;  %4597 = vmatprep.subr.bf16.mxu0 %v1502_v11  ;;  %v943_v48 = vld [vmem:[#allocation2 + $0x6f0] sm:$0xff]  ;;  %v1524_v11 = vunpack.c.h.s8.bf16 %v930_v63  ;;  %v1533_v50 = vunpack.c.l.s8.bf16 %v935_v10  ;;  %v1534_v15 = vunpack.c.h.s8.bf16 %v935_v10 }
 0x1e2   :  { %4619 = vmatprep.subr.bf16.mxu1 %v1518_v49  ;;  %v4295_v16 = vpop.f32.mrb[20].mxu0  ;;  %v1540_v49 = vunpack.c.h.s8.bf16 %v938_v4  ;;  %v1549_v52 = vunpack.c.l.s8.bf16 %v943_v48  ;;  %v1578_v4 = vunpack.c.h.s8.bf16 %v957_v38 }
 0x1e3   :  { %v4317_v60 = vpop.f32.mrb[20].mxu1  ;;  %v4296_v18 = vpop.f32.mrb[21].mxu0 }
 0x1e4   :  { %v4318_v0 = vpop.f32.mrb[21].mxu1  ;;  %v4297_v19 = vadd.f32 %v4296_v18, %v4295_v16  ;;  %v4298_v1 = vpop.f32.mrb[22].mxu0  ;;  %4598 = vmatpush3.bf16.msra.mxu0 %v1494_v53  ;;  %v939_v53 = vld [vmem:[#allocation2 + $0x6d0] sm:$0xff]  ;;  %v944_v16 = vld [vmem:[#allocation2 + $0x6f8] sm:$0xff] }
 0x1e5   :  { %v4319_v41 = vadd.f32 %v4318_v0, %v4317_v60  ;;  %4620 = vmatpush3.bf16.msra.mxu1 %v1510_v14  ;;  %v4320_v24 = vpop.f32.mrb[22].mxu1  ;;  %v4299_v25 = vpop.f32.mrb[23].mxu0  ;;  %4599 = vmatprep.subr.bf16.mxu0 %v1503_v56  ;;  %v1525_v14 = vunpack.c.l.s8.bf16 %v931_v12  ;;  %v1541_v56 = vunpack.c.l.s8.bf16 %v939_v53  ;;  %v87_v60 = vld [vmem:[%s5939_s0 + $0x70] sm:$0xff]  ;;  %v1542_v18 = vunpack.c.h.s8.bf16 %v939_v53 }
 0x1e6   :  { %4621 = vmatprep.subr.bf16.mxu1 %v1519_v57  ;;  %v4321_v28 = vpop.f32.mrb[23].mxu1  ;;  %v2308_v58 = vadd.f32 %v4297_v19, %v5654_v44  ;;  %v937_v44 = vld [vmem:[#allocation2 + $0x6c0] sm:$0xff]  ;;  %v1550_v57 = vunpack.c.h.s8.bf16 %v943_v48  ;;  %v1535_v0 = vunpack.c.l.s8.bf16 %v936_v9  ;;  %v932_v19 = vld [vmem:[#allocation2 + $0x698] sm:$0xff]  ;;  %v1551_v1 = vunpack.c.l.s8.bf16 %v944_v16  ;;  %v946_v48 = vld [vmem:[#allocation2 + $0x708] sm:$0xff] }
 0x1e7   :  { %v1537_v42 = vunpack.c.l.s8.bf16 %v937_v44  ;;  %v1538_v62 = vunpack.c.h.s8.bf16 %v937_v44  ;;  %v359_v24 = vcombine.high %v87_v60, %v87_v60  ;;  %v1527_v29 = vunpack.c.l.s8.bf16 %v932_v19 }
 0x1e8   :  { %v5674_v13 = vadd.f32 %v4319_v41, %v2308_v58  ;;  %4600 = vmatpush3.bf16.msra.mxu0 %v1495_v20  ;;  %v940_v41 = vld [vmem:[#allocation2 + $0x6d8] sm:$0xff]  ;;  %v1552_v35 = vunpack.c.h.s8.bf16 %v944_v16  ;;  %v947_v16 = vld [vmem:[#allocation2 + $0x710] sm:$0xff] }
 0x1e9   :  { %4622 = vmatpush3.bf16.msra.mxu1 %v1511_v21  ;;  %4601 = vmatprep.subr.bf16.mxu0 %v1504_v26  ;;  %v1543_v30 = vunpack.c.l.s8.bf16 %v940_v41 }
 0x1ea   :  { %4623 = vmatprep.subr.bf16.mxu1 %v1520_v27 }
 0x1ec   :  { %4602 = vmatpush3.bf16.msra.mxu0 %v1496_v32 }
 0x1ed   :  { %4624 = vmatpush3.bf16.msra.mxu1 %v1512_v33  ;;  %4631 = vmatprep.subr.bf16.mxu0 %v1529_v34  ;;  %v1536_v34 = vunpack.c.h.s8.bf16 %v936_v9 }
 0x1ee   :  { %4653 = vmatprep.subr.bf16.mxu1 %v1545_v36 }
 0x1ef   :  { %2866 = vmatmul.mubr.bf16.vlgmr.msra.gmra.mrb[48].mxu0 %v673_v55  ;;  %v5689_v55 = vrot.slane %v87_v60, %v5431_v23 }
 0x1f0   :  { %2906 = vmatmul.mubr.bf16.vlgmr.msra.gmra.mrb[48].mxu1 %v675_v39  ;;  %4632 = vmatpush3.bf16.msra.mxu0 %v1521_v17  ;;  %v5692_v39 = vrot.slane %v359_v24, %v5431_v23  ;;  %v1558_v24 = vunpack.c.h.s8.bf16 %v947_v16 }
 0x1f1   :  { %4654 = vmatpush3.bf16.msra.mxu1 %v1537_v42  ;;  %4633 = vmatprep.subr.bf16.mxu0 %v1530_v43  ;;  %v1528_v42 = vunpack.c.h.s8.bf16 %v932_v19  ;;  %v1544_v43 = vunpack.c.h.s8.bf16 %v940_v41  ;;  %v952_v41 = vld [vmem:[#allocation2 + $0x738] sm:$0xff] }
 0x1f2   :  { %4655 = vmatprep.subr.bf16.mxu1 %v1546_v46  ;;  %2945 = vmatprep.mubr.bf16.mxu0 %v678_v54  ;;  %v1561_v46 = vunpack.c.l.s8.bf16 %v949_v37  ;;  %v374_v54 = vcombine.high %v5689_v55, %v5689_v55 }
 0x1f3   :  { %2985 = vmatprep.mubr.bf16.mxu1 %v680_v59  ;;  %v375_v59 = vcombine.high %v5692_v39, %v5692_v39 }
 0x1f4   :  { %4634 = vmatpush3.bf16.msra.mxu0 %v1522_v8  ;;  %v677_v8 = vpack.c.bf16 %v5669_v40, %v5669_v40  ;;  %v1554_v40 = vunpack.c.h.s8.bf16 %v945_v47 }
 0x1f5   :  { %4656 = vmatpush3.bf16.msra.mxu1 %v1538_v62  ;;  %4635 = vmatprep.subr.bf16.mxu0 %v1531_v22  ;;  %v679_v62 = vpack.c.bf16 %v5672_v31, %v5672_v31  ;;  %v1553_v22 = vunpack.c.l.s8.bf16 %v945_v47 }
 0x1f6   :  { %4657 = vmatprep.subr.bf16.mxu1 %v1547_v3  ;;  %v1562_v3 = vunpack.c.h.s8.bf16 %v949_v37 }
 0x1f8   :  { %4636 = vmatpush3.bf16.msra.mxu0 %v1523_v5  ;;  %v950_v5 = vld [vmem:[#allocation2 + $0x728] sm:$0xff] }
 0x1f9   :  { %4658 = vmatpush3.bf16.msra.mxu1 %v1539_v6  ;;  %4637 = vmatprep.subr.bf16.mxu0 %v1532_v7  ;;  %v958_v6 = vld [vmem:[#allocation2 + $0x768] sm:$0xff]  ;;  %v682_v7 = vpack.c.bf16 %v374_v54, %v374_v54  ;;  %v1563_v31 = vunpack.c.l.s8.bf16 %v950_v5  ;;  %v965_v54 = vld [vmem:[#allocation2 + $0x7a0] sm:$0xff] }
 0x1fa   :  { %4659 = vmatprep.subr.bf16.mxu1 %v1548_v45  ;;  %v684_v45 = vpack.c.bf16 %v375_v59, %v375_v59  ;;  %v1580_v53 = vunpack.c.h.s8.bf16 %v958_v6  ;;  %v973_v59 = vld [vmem:[#allocation2 + $0x7e0] sm:$0xff] }
 0x1fc   :  { %4638 = vmatpush3.bf16.msra.mxu0 %v1524_v11  ;;  %v1579_v11 = vunpack.c.l.s8.bf16 %v958_v6  ;;  %v1609_v6 = vunpack.c.l.s8.bf16 %v973_v59 }
 0x1fd   :  { %4660 = vmatpush3.bf16.msra.mxu1 %v1540_v49  ;;  %4639 = vmatprep.subr.bf16.mxu0 %v1533_v50  ;;  %v954_v49 = vld [vmem:[#allocation2 + $0x748] sm:$0xff]  ;;  %v1555_v50 = vunpack.c.l.s8.bf16 %v946_v48 }
 0x1fe   :  { %4661 = vmatprep.subr.bf16.mxu1 %v1549_v52  ;;  %v1571_v12 = vunpack.c.l.s8.bf16 %v954_v49  ;;  %v1564_v52 = vunpack.c.h.s8.bf16 %v950_v5  ;;  %v961_v5 = vld [vmem:[#allocation2 + $0x780] sm:$0xff] }
 0x200   :  { %4640 = vmatpush3.bf16.msra.mxu0 %v1525_v14  ;;  %v951_v14 = vld [vmem:[#allocation2 + $0x730] sm:$0xff] }
 0x201   :  { %4662 = vmatpush3.bf16.msra.mxu1 %v1541_v56  ;;  %4641 = vmatprep.subr.bf16.mxu0 %v1534_v15  ;;  %v959_v56 = vld [vmem:[#allocation2 + $0x770] sm:$0xff]  ;;  %v1556_v15 = vunpack.c.h.s8.bf16 %v946_v48  ;;  %v1565_v9 = vunpack.c.l.s8.bf16 %v951_v14  ;;  %v1566_v19 = vunpack.c.h.s8.bf16 %v951_v14 }
 0x202   :  { %4663 = vmatprep.subr.bf16.mxu1 %v1550_v57  ;;  %v4339_v20 = vpop.f32.mrb[24].mxu0  ;;  %v1572_v57 = vunpack.c.h.s8.bf16 %v954_v49  ;;  %v1581_v60 = vunpack.c.l.s8.bf16 %v959_v56  ;;  %v1610_v49 = vunpack.c.h.s8.bf16 %v973_v59  ;;  %v5330_v59 = vmov 1  }
 0x203   :  { %v4361_v21 = vpop.f32.mrb[24].mxu1  ;;  %v4340_v25 = vpop.f32.mrb[25].mxu0 }
 0x204   :  { %v4362_v26 = vpop.f32.mrb[25].mxu1  ;;  %v4341_v27 = vadd.f32 %v4340_v25, %v4339_v20  ;;  %v4342_v28 = vpop.f32.mrb[26].mxu0  ;;  %4642 = vmatpush3.bf16.msra.mxu0 %v1526_v61  ;;  %v955_v61 = vld [vmem:[#allocation2 + $0x750] sm:$0xff]  ;;  %v960_v20 = vld [vmem:[#allocation2 + $0x778] sm:$0xff] }
 0x205   :  { %v4363_v58 = vadd.f32 %v4362_v26, %v4361_v21  ;;  %4664 = vmatpush3.bf16.msra.mxu1 %v1542_v18  ;;  %v4364_v32 = vpop.f32.mrb[26].mxu1  ;;  %v4343_v33 = vpop.f32.mrb[27].mxu0  ;;  %4643 = vmatprep.subr.bf16.mxu0 %v1535_v0  ;;  %v1557_v18 = vunpack.c.l.s8.bf16 %v947_v16  ;;  %v1573_v0 = vunpack.c.l.s8.bf16 %v955_v61  ;;  %v88_v21 = vld [vmem:[%s5939_s0 + $0x78] sm:$0xff]  ;;  %v1574_v25 = vunpack.c.h.s8.bf16 %v955_v61 }
 0x206   :  { %4665 = vmatprep.subr.bf16.mxu1 %v1551_v1  ;;  %v4365_v36 = vpop.f32.mrb[27].mxu1  ;;  %v2388_v44 = vadd.f32 %v4341_v27, %v5674_v13  ;;  %v953_v13 = vld [vmem:[#allocation2 + $0x740] sm:$0xff]  ;;  %v1582_v1 = vunpack.c.h.s8.bf16 %v959_v56  ;;  %v1567_v26 = vunpack.c.l.s8.bf16 %v952_v41  ;;  %v948_v27 = vld [vmem:[#allocation2 + $0x718] sm:$0xff]  ;;  %v1583_v28 = vunpack.c.l.s8.bf16 %v960_v20  ;;  %v962_v56 = vld [vmem:[#allocation2 + $0x788] sm:$0xff] }
 0x207   :  { %v1569_v63 = vunpack.c.l.s8.bf16 %v953_v13  ;;  %v1570_v10 = vunpack.c.h.s8.bf16 %v953_v13  ;;  %v376_v32 = vcombine.high %v88_v21, %v88_v21  ;;  %v1559_v37 = vunpack.c.l.s8.bf16 %v948_v27 }
 0x208   :  { %v5694_v17 = vadd.f32 %v4363_v58, %v2388_v44  ;;  %4644 = vmatpush3.bf16.msra.mxu0 %v1527_v29  ;;  %v956_v58 = vld [vmem:[#allocation2 + $0x758] sm:$0xff]  ;;  %v1584_v47 = vunpack.c.h.s8.bf16 %v960_v20 }
 0x209   :  { %4666 = vmatpush3.bf16.msra.mxu1 %v1543_v30  ;;  %4645 = vmatprep.subr.bf16.mxu0 %v1536_v34  ;;  %v1575_v38 = vunpack.c.l.s8.bf16 %v956_v58 }
 0x20a   :  { %4667 = vmatprep.subr.bf16.mxu1 %v1552_v35 }
 0x20c   :  { %4646 = vmatpush3.bf16.msra.mxu0 %v1528_v42 }
 0x20d   :  { %4668 = vmatpush3.bf16.msra.mxu1 %v1544_v43  ;;  %4675 = vmatprep.subr.bf16.mxu0 %v1561_v46  ;;  %v1568_v46 = vunpack.c.h.s8.bf16 %v952_v41  ;;  %v5724_v41 = vld [vmem:[#allocation7] sm:$0x3] }
 0x20e   :  { %4697 = vmatprep.subr.bf16.mxu1 %v1577_v51 }
 0x20f   :  { %2946 = vmatmul.mubr.bf16.vlgmr.msra.gmra.mrb[52].mxu0 %v677_v8  ;;  %v5709_v8 = vrot.slane %v88_v21, %v5431_v23  ;;  %v963_v21 = vld [vmem:[#allocation2 + $0x790] sm:$0xff] }
 0x210   :  { %2986 = vmatmul.mubr.bf16.vlgmr.msra.gmra.mrb[52].mxu1 %v679_v62  ;;  %4676 = vmatpush3.bf16.msra.mxu0 %v1553_v22  ;;  %v5712_v62 = vrot.slane %v376_v32, %v5431_v23  ;;  %v976_v32 = vld [vmem:[#allocation2 + $0x7f8] sm:$0xff] }
 0x211   :  { %4698 = vmatpush3.bf16.msra.mxu1 %v1569_v63  ;;  %4677 = vmatprep.subr.bf16.mxu0 %v1562_v3  ;;  %v1560_v63 = vunpack.c.h.s8.bf16 %v948_v27  ;;  %v1576_v3 = vunpack.c.h.s8.bf16 %v956_v58  ;;  %v1589_v27 = vunpack.c.l.s8.bf16 %v963_v21 }
 0x212   :  { %4699 = vmatprep.subr.bf16.mxu1 %v1578_v4  ;;  %3025 = vmatprep.mubr.bf16.mxu0 %v682_v7  ;;  %v1593_v4 = vunpack.c.l.s8.bf16 %v965_v54  ;;  %v391_v7 = vcombine.high %v5709_v8, %v5709_v8 }
 0x213   :  { %3065 = vmatprep.mubr.bf16.mxu1 %v684_v45  ;;  %v392_v45 = vcombine.high %v5712_v62, %v5712_v62 }
 0x214   :  { %4678 = vmatpush3.bf16.msra.mxu0 %v1554_v40  ;;  %v681_v40 = vpack.c.bf16 %v5689_v55, %v5689_v55  ;;  %v1586_v55 = vunpack.c.h.s8.bf16 %v961_v5 }
 0x215   :  { %4700 = vmatpush3.bf16.msra.mxu1 %v1570_v10  ;;  %4679 = vmatprep.subr.bf16.mxu0 %v1563_v31  ;;  %v683_v10 = vpack.c.bf16 %v5692_v39, %v5692_v39  ;;  %v1585_v31 = vunpack.c.l.s8.bf16 %v961_v5 }
 0x216   :  { %4701 = vmatprep.subr.bf16.mxu1 %v1579_v11  ;;  %v1594_v11 = vunpack.c.h.s8.bf16 %v965_v54 }
 0x218   :  { %4680 = vmatpush3.bf16.msra.mxu0 %v1555_v50  ;;  %v966_v50 = vld [vmem:[#allocation2 + $0x7a8] sm:$0xff] }
 0x219   :  { %4702 = vmatpush3.bf16.msra.mxu1 %v1571_v12  ;;  %4681 = vmatprep.subr.bf16.mxu0 %v1564_v52  ;;  %v974_v12 = vld [vmem:[#allocation2 + $0x7e8] sm:$0xff]  ;;  %v686_v52 = vpack.c.bf16 %v391_v7, %v391_v7  ;;  %v1595_v39 = vunpack.c.l.s8.bf16 %v966_v50 }
 0x21a   :  { %4703 = vmatprep.subr.bf16.mxu1 %v1580_v53  ;;  %v688_v53 = vpack.c.bf16 %v392_v45, %v392_v45  ;;  %v1612_v61 = vunpack.c.h.s8.bf16 %v974_v12 }
 0x21c   :  { %4682 = vmatpush3.bf16.msra.mxu0 %v1556_v15  ;;  %v1611_v15 = vunpack.c.l.s8.bf16 %v974_v12  ;;  %v5331_v12 = vmov 4  }
 0x21d   :  { %4704 = vmatpush3.bf16.msra.mxu1 %v1572_v57  ;;  %4683 = vmatprep.subr.bf16.mxu0 %v1565_v9  ;;  %v970_v57 = vld [vmem:[#allocation2 + $0x7c8] sm:$0xff]  ;;  %v1587_v9 = vunpack.c.l.s8.bf16 %v962_v56 }
 0x21e   :  { %4705 = vmatprep.subr.bf16.mxu1 %v1581_v60  ;;  %v1603_v16 = vunpack.c.l.s8.bf16 %v970_v57  ;;  %v1596_v60 = vunpack.c.h.s8.bf16 %v966_v50 }
 0x220   :  { %4684 = vmatpush3.bf16.msra.mxu0 %v1557_v18  ;;  %v967_v18 = vld [vmem:[#allocation2 + $0x7b0] sm:$0xff] }
 0x221   :  { %4706 = vmatpush3.bf16.msra.mxu1 %v1573_v0  ;;  %4685 = vmatprep.subr.bf16.mxu0 %v1566_v19  ;;  %v975_v0 = vld [vmem:[#allocation2 + $0x7f0] sm:$0xff]  ;;  %v1588_v19 = vunpack.c.h.s8.bf16 %v962_v56  ;;  %v1597_v20 = vunpack.c.l.s8.bf16 %v967_v18  ;;  %v1598_v58 = vunpack.c.h.s8.bf16 %v967_v18  ;;  %v985_v56 = vld [vmem:[#allocation2 + $0x840] sm:$0xff] }
 0x222   :  { %4707 = vmatprep.subr.bf16.mxu1 %v1582_v1  ;;  %v4383_v29 = vpop.f32.mrb[28].mxu0  ;;  %v1604_v1 = vunpack.c.h.s8.bf16 %v970_v57 }
 0x223   :  { %v4405_v30 = vpop.f32.mrb[28].mxu1  ;;  %v4384_v33 = vpop.f32.mrb[29].mxu0 }
 0x224   :  { %v4406_v34 = vpop.f32.mrb[29].mxu1  ;;  %v4385_v35 = vadd.f32 %v4384_v33, %v4383_v29  ;;  %v4386_v36 = vpop.f32.mrb[30].mxu0  ;;  %4686 = vmatpush3.bf16.msra.mxu0 %v1558_v24  ;;  %v1613_v24 = vunpack.c.l.s8.bf16 %v975_v0  ;;  %v1614_v29 = vunpack.c.h.s8.bf16 %v975_v0  ;;  %v5328_v33 = vmov 0  }
 0x225   :  { %v4407_v44 = vadd.f32 %v4406_v34, %v4405_v30  ;;  %4708 = vmatpush3.bf16.msra.mxu1 %v1574_v25  ;;  %v4408_v42 = vpop.f32.mrb[30].mxu1  ;;  %v4387_v43 = vpop.f32.mrb[31].mxu0  ;;  %4687 = vmatprep.subr.bf16.mxu0 %v1567_v26  ;;  %v971_v25 = vld [vmem:[#allocation2 + $0x7d0] sm:$0xff]  ;;  %v5327_v26 = vmov 2   ;;  %v968_v30 = vld [vmem:[#allocation2 + $0x7b8] sm:$0xff]  ;;  %v89_v34 = vld [vmem:[%s5939_s0 + $0x80] sm:$0xff]  ;;  %v1590_v36 = vunpack.c.h.s8.bf16 %v963_v21  ;;  %v1633_v0 = vunpack.c.l.s8.bf16 %v985_v56 }
 0x226   :  { %4709 = vmatprep.subr.bf16.mxu1 %v1583_v28  ;;  %v4409_v51 = vpop.f32.mrb[31].mxu1  ;;  %v2468_v13 = vadd.f32 %v4385_v35, %v5694_v17  ;;  %v969_v17 = vld [vmem:[#allocation2 + $0x7c0] sm:$0xff]  ;;  %5161 = vset.pattern.permute.xlu1 %v5327_v26  ;;  %v1605_v28 = vunpack.c.l.s8.bf16 %v971_v25  ;;  %v5329_v35 = vmov 3   ;;  %v1615_v42 = vunpack.c.l.s8.bf16 %v976_v32  ;;  %v972_v43 = vld [vmem:[#allocation2 + $0x7d8] sm:$0xff]  ;;  %v990_v21 = vld [vmem:[#allocation2 + $0x868] sm:$0xff] }
 0x227   :  { %v1601_v48 = vunpack.c.l.s8.bf16 %v969_v17  ;;  %v1602_v14 = vunpack.c.h.s8.bf16 %v969_v17  ;;  %3819 = vperm.xlu1 %5161, %v5724_v41   ;;  %5159 = vset.pattern.permute.xlu0 %v5328_v33  ;;  %v393_v51 = vcombine.high %v89_v34, %v89_v34  ;;  %v1600_v45 = vunpack.c.h.s8.bf16 %v968_v30 }
 0x228   :  { %v5714_v22 = vadd.f32 %v4407_v44, %v2468_v13  ;;  %4688 = vmatpush3.bf16.msra.mxu0 %v1559_v37  ;;  %3805 = vperm.xlu0 %5159, %v5724_v41   ;;  %v1606_v44 = vunpack.c.h.s8.bf16 %v971_v25  ;;  %v1599_v37 = vunpack.c.l.s8.bf16 %v968_v30 }
 0x229   :  { %4710 = vmatpush3.bf16.msra.mxu1 %v1575_v38  ;;  %4689 = vmatprep.subr.bf16.mxu0 %v1568_v46  ;;  %v964_v38 = vld [vmem:[#allocation2 + $0x798] sm:$0xff]  ;;  %v5737_v50 = vrot.slane %v393_v51, %v5431_v23 }
 0x22a   :  { %4711 = vmatprep.subr.bf16.mxu1 %v1584_v47  ;;  %v1591_v5 = vunpack.c.l.s8.bf16 %v964_v38 }
 0x22b   :  { %5162 = vset.pattern.permute.xlu1 %v5329_v35  ;;  %v409_v57 = vcombine.high %v5737_v50, %v5737_v50  ;;  %v983_v35 = vld [vmem:[#allocation2 + $0x830] sm:$0xff] }
 0x22c   :  { %4690 = vmatpush3.bf16.msra.mxu0 %v1560_v63  ;;  %3826 = vperm.xlu1 %5162, %v5724_v41  }
 0x22d   :  { %4712 = vmatpush3.bf16.msra.mxu1 %v1576_v3  ;;  %4719 = vmatprep.subr.bf16.mxu0 %v1593_v4  ;;  %v692_v25 = vpack.c.bf16 %v409_v57, %v409_v57 }
 0x22e   :  { %4741 = vmatprep.subr.bf16.mxu1 %v1609_v6  ;;  %5160 = vset.pattern.permute.xlu0 %v5330_v59  ;;  %v1607_v6 = vunpack.c.l.s8.bf16 %v972_v43  ;;  %v984_v59 = vld [vmem:[#allocation2 + $0x838] sm:$0xff] }
 0x22f   :  { %3026 = vmatmul.mubr.bf16.vlgmr.msra.gmra.mrb[56].mxu0 %v681_v40  ;;  %v1616_v40 = vunpack.c.h.s8.bf16 %v976_v32  ;;  %3812 = vperm.xlu0 %5160, %v5724_v41  }
 0x230   :  { %3066 = vmatmul.mubr.bf16.vlgmr.msra.gmra.mrb[56].mxu1 %v683_v10  ;;  %4720 = vmatpush3.bf16.msra.mxu0 %v1585_v31 }
 0x231   :  { %4742 = vmatpush3.bf16.msra.mxu1 %v1601_v48  ;;  %4721 = vmatprep.subr.bf16.mxu0 %v1594_v11  ;;  %v981_v48 = vld [vmem:[#allocation2 + $0x820] sm:$0xff] }
 0x232   :  { %4743 = vmatprep.subr.bf16.mxu1 %v1610_v49  ;;  %3105 = vmatprep.mubr.bf16.mxu0 %v686_v52  ;;  %v989_v11 = vld [vmem:[#allocation2 + $0x860] sm:$0xff]  ;;  %v5734_v49 = vrot.slane %v89_v34, %v5431_v23  ;;  %v1592_v52 = vunpack.c.h.s8.bf16 %v964_v38  ;;  %v1644_v34 = vunpack.c.h.s8.bf16 %v990_v21  ;;  %v1629_v38 = vunpack.c.l.s8.bf16 %v983_v35 }
 0x233   :  { %3145 = vmatprep.mubr.bf16.mxu1 %v688_v53  ;;  %5163 = vset.pattern.permute.xlu1 %v5331_v12 }
 0x234   :  { %4722 = vmatpush3.bf16.msra.mxu0 %v1586_v55  ;;  %3833 = vperm.xlu1 %5163, %v5724_v41   ;;  %v1625_v55 = vunpack.c.l.s8.bf16 %v981_v48 }
 0x235   :  { %4744 = vmatpush3.bf16.msra.mxu1 %v1602_v14  ;;  %4723 = vmatprep.subr.bf16.mxu0 %v1595_v39  ;;  %v977_v14 = vld [vmem:[#allocation2 + $0x800] sm:$0xff]  ;;  %v1641_v39 = vunpack.c.l.s8.bf16 %v989_v11 }
 0x236   :  { %4745 = vmatprep.subr.bf16.mxu1 %v1611_v15  ;;  %v408_v15 = vcombine.high %v5734_v49, %v5734_v49  ;;  %v1617_v18 = vunpack.c.l.s8.bf16 %v977_v14 }
 0x238   :  { %4724 = vmatpush3.bf16.msra.mxu0 %v1587_v9  ;;  %v5332_v9 = vmov 5  }
 0x239   :  { %4746 = vmatpush3.bf16.msra.mxu1 %v1603_v16  ;;  %4725 = vmatprep.subr.bf16.mxu0 %v1596_v60  ;;  %v685_v16 = vpack.c.bf16 %v5709_v8, %v5709_v8  ;;  %v687_v60 = vpack.c.bf16 %v5712_v62, %v5712_v62  ;;  %v1618_v8 = vunpack.c.h.s8.bf16 %v977_v14  ;;  %v1634_v62 = vunpack.c.h.s8.bf16 %v985_v56 }
 0x23a   :  { %4747 = vmatprep.subr.bf16.mxu1 %v1612_v61  ;;  %5164 = vset.pattern.permute.xlu0 %v5332_v9  ;;  %v5333_v61 = vmov 6   ;;  %v1632_v56 = vunpack.c.h.s8.bf16 %v984_v59 }
 0x23b   :  { %5165 = vset.pattern.permute.xlu1 %v5333_v61  ;;  %3840 = vperm.xlu0 %5164, %v5724_v41  }
 0x23c   :  { %4726 = vmatpush3.bf16.msra.mxu0 %v1588_v19  ;;  %v1626_v19 = vunpack.c.h.s8.bf16 %v981_v48  ;;  %3847 = vperm.xlu1 %5165, %v5724_v41  }
 0x23d   :  { %4748 = vmatpush3.bf16.msra.mxu1 %v1604_v1  ;;  %4727 = vmatprep.subr.bf16.mxu0 %v1597_v20  ;;  %v1642_v1 = vunpack.c.h.s8.bf16 %v989_v11  ;;  %v982_v20 = vld [vmem:[#allocation2 + $0x828] sm:$0xff] }
 0x23e   :  { %4749 = vmatprep.subr.bf16.mxu1 %v1613_v24  ;;  %v690_v24 = vpack.c.bf16 %v408_v15, %v408_v15  ;;  %v1627_v26 = vunpack.c.l.s8.bf16 %v982_v20  ;;  %v1628_v33 = vunpack.c.h.s8.bf16 %v982_v20 }
 0x240   :  { %4728 = vmatpush3.bf16.msra.mxu0 %v1589_v27  ;;  %v978_v27 = vld [vmem:[#allocation2 + $0x808] sm:$0xff] }
 0x241   :  { %4750 = vmatpush3.bf16.msra.mxu1 %v1605_v28  ;;  %4729 = vmatprep.subr.bf16.mxu0 %v1598_v58  ;;  %v1643_v28 = vunpack.c.l.s8.bf16 %v990_v21  ;;  %v986_v58 = vld [vmem:[#allocation2 + $0x848] sm:$0xff]  ;;  %v1619_v30 = vunpack.c.l.s8.bf16 %v978_v27  ;;  %v993_v21 = vld [vmem:[#allocation2 + $0x880] sm:$0xff] }
 0x242   :  { %4751 = vmatprep.subr.bf16.mxu1 %v1614_v29  ;;  %v4427_v46 = vpop.f32.mrb[32].mxu0  ;;  %v5334_v29 = vmov 7   ;;  %v1635_v32 = vunpack.c.l.s8.bf16 %v986_v58 }
 0x243   :  { %v4449_v47 = vpop.f32.mrb[32].mxu1  ;;  %v4428_v13 = vpop.f32.mrb[33].mxu0  ;;  %5166 = vset.pattern.permute.xlu1 %v5334_v29  ;;  %5167 = vset.pattern.permute.xlu0 %v5334_v29 }
 0x244   :  { %v4450_v54 = vpop.f32.mrb[33].mxu1  ;;  %v4429_v63 = vadd.f32 %v4428_v13, %v4427_v46  ;;  %v4430_v3 = vpop.f32.mrb[34].mxu0  ;;  %4730 = vmatpush3.bf16.msra.mxu0 %v1590_v36  ;;  %v991_v36 = vld [vmem:[#allocation2 + $0x870] sm:$0xff]  ;;  %3854 = vperm.xlu1 %5166, %v5724_v41   ;;  %v1630_v13 = vunpack.c.h.s8.bf16 %v983_v35  ;;  %v992_v41 = vld [vmem:[#allocation2 + $0x878] sm:$0xff] }
 0x245   :  { %v4451_v4 = vadd.f32 %v4450_v54, %v4449_v47  ;;  %4752 = vmatpush3.bf16.msra.mxu1 %v1606_v44  ;;  %v4452_v17 = vpop.f32.mrb[34].mxu1  ;;  %v4431_v7 = vpop.f32.mrb[35].mxu0  ;;  %4731 = vmatprep.subr.bf16.mxu0 %v1599_v37  ;;  %v1620_v44 = vunpack.c.h.s8.bf16 %v978_v27  ;;  %v1636_v37 = vunpack.c.h.s8.bf16 %v986_v58  ;;  %v987_v46 = vld [vmem:[#allocation2 + $0x850] sm:$0xff]  ;;  %v1646_v54 = vunpack.c.h.s8.bf16 %v991_v36 }
 0x246   :  { %4753 = vmatprep.subr.bf16.mxu1 %v1615_v42  ;;  %v4453_v10 = vpop.f32.mrb[35].mxu1  ;;  %v2548_v31 = vadd.f32 %v4429_v63, %v5714_v22  ;;  %v1608_v22 = vunpack.c.h.s8.bf16 %v972_v43  ;;  %v979_v42 = vld [vmem:[#allocation2 + $0x810] sm:$0xff]  ;;  %v1645_v43 = vunpack.c.l.s8.bf16 %v991_v36  ;;  %v1637_v51 = vunpack.c.l.s8.bf16 %v987_v46  ;;  %v90_v63 = vld [vmem:[%s5939_s0 + $0x88] sm:$0xff]  ;;  %v988_v7 = vld [vmem:[#allocation2 + $0x858] sm:$0xff] }
 0x247   :  { %v1621_v47 = vunpack.c.l.s8.bf16 %v979_v42  ;;  %v1622_v3 = vunpack.c.h.s8.bf16 %v979_v42  ;;  %v1647_v17 = vunpack.c.l.s8.bf16 %v992_v41  ;;  %v410_v10 = vcombine.high %v90_v63, %v90_v63  ;;  %v994_v36 = vld [vmem:[#allocation2 + $0x888] sm:$0xff] }
 0x248   :  { %v5741_v53 = vadd.f32 %v4451_v4, %v2548_v31  ;;  %4732 = vmatpush3.bf16.msra.mxu0 %v1591_v5  ;;  %v1638_v4 = vunpack.c.h.s8.bf16 %v987_v46  ;;  %v1631_v5 = vunpack.c.l.s8.bf16 %v984_v59  ;;  %v1648_v15 = vunpack.c.h.s8.bf16 %v992_v41  ;;  %v995_v41 = vld [vmem:[#allocation2 + $0x890] sm:$0xff] }
 0x249   :  { %4754 = vmatpush3.bf16.msra.mxu1 %v1607_v6  ;;  %4733 = vmatprep.subr.bf16.mxu0 %v1600_v45  ;;  %v980_v6 = vld [vmem:[#allocation2 + $0x818] sm:$0xff]  ;;  %v5759_v61 = vrot.slane %v90_v63, %v5431_v23  ;;  %v1649_v27 = vunpack.c.l.s8.bf16 %v993_v21 }
 0x24a   :  { %4755 = vmatprep.subr.bf16.mxu1 %v1616_v40 }
 0x24c   :  { %4734 = vmatpush3.bf16.msra.mxu0 %v1592_v52 }
 0x24d   :  { %4756 = vmatpush3.bf16.msra.mxu1 %v1608_v22  ;;  %4763 = vmatprep.subr.bf16.mxu0 %v1625_v55  ;;  %v1623_v22 = vunpack.c.l.s8.bf16 %v980_v6  ;;  %v1639_v55 = vunpack.c.l.s8.bf16 %v988_v7 }
 0x24e   :  { %4785 = vmatprep.subr.bf16.mxu1 %v1641_v39 }
 0x24f   :  { %3106 = vmatmul.mubr.bf16.vlgmr.msra.gmra.mrb[60].mxu0 %v685_v16  ;;  %v997_v16 = vld [vmem:[#allocation2 + $0x8a0] sm:$0xff] }
 0x250   :  { %3146 = vmatmul.mubr.bf16.vlgmr.msra.gmra.mrb[60].mxu1 %v687_v60  ;;  %4764 = vmatpush3.bf16.msra.mxu0 %v1617_v18  ;;  %v1005_v60 = vld [vmem:[#allocation2 + $0x8e0] sm:$0xff]  ;;  %v5762_v18 = vrot.slane %v410_v10, %v5431_v23  ;;  %v1657_v20 = vunpack.c.l.s8.bf16 %v997_v16  ;;  %v1658_v58 = vunpack.c.h.s8.bf16 %v997_v16  ;;  %v1654_v10 = vunpack.c.h.s8.bf16 %v995_v41 }
 0x251   :  { %4786 = vmatpush3.bf16.msra.mxu1 %v1633_v0  ;;  %4765 = vmatprep.subr.bf16.mxu0 %v1626_v19  ;;  %v1624_v19 = vunpack.c.h.s8.bf16 %v980_v6  ;;  %v1674_v29 = vunpack.c.h.s8.bf16 %v1005_v60 }
 0x252   :  { %4787 = vmatprep.subr.bf16.mxu1 %v1642_v1  ;;  %3185 = vmatprep.mubr.bf16.mxu0 %v690_v24  ;;  %v1640_v1 = vunpack.c.h.s8.bf16 %v988_v7  ;;  %v1673_v24 = vunpack.c.l.s8.bf16 %v1005_v60  ;;  %v1000_v7 = vld [vmem:[#allocation2 + $0x8b8] sm:$0xff] }
 0x253   :  { %3225 = vmatprep.mubr.bf16.mxu1 %v692_v25  ;;  %v425_v25 = vcombine.high %v5759_v61, %v5759_v61 }
 0x254   :  { %4766 = vmatpush3.bf16.msra.mxu0 %v1618_v8  ;;  %v426_v8 = vcombine.high %v5762_v18, %v5762_v18 }
 0x255   :  { %4788 = vmatpush3.bf16.msra.mxu1 %v1634_v62  ;;  %4767 = vmatprep.subr.bf16.mxu0 %v1627_v26  ;;  %v689_v62 = vpack.c.bf16 %v5734_v49, %v5734_v49  ;;  %v691_v26 = vpack.c.bf16 %v5737_v50, %v5737_v50  ;;  %v1650_v49 = vunpack.c.h.s8.bf16 %v993_v21 }
 0x256   :  { %4789 = vmatprep.subr.bf16.mxu1 %v1643_v28 }
 0x258   :  { %4768 = vmatpush3.bf16.msra.mxu0 %v1619_v30  ;;  %v998_v30 = vld [vmem:[#allocation2 + $0x8a8] sm:$0xff] }
 0x259   :  { %4790 = vmatpush3.bf16.msra.mxu1 %v1635_v32  ;;  %4769 = vmatprep.subr.bf16.mxu0 %v1628_v33  ;;  %v1006_v32 = vld [vmem:[#allocation2 + $0x8e8] sm:$0xff]  ;;  %v694_v33 = vpack.c.bf16 %v425_v25, %v425_v25  ;;  %v1659_v50 = vunpack.c.l.s8.bf16 %v998_v30  ;;  %v1013_v25 = vld [vmem:[#allocation2 + $0x920] sm:$0xff] }
 0x25a   :  { %4791 = vmatprep.subr.bf16.mxu1 %v1644_v34  ;;  %v696_v34 = vpack.c.bf16 %v426_v8, %v426_v8  ;;  %v1676_v46 = vunpack.c.h.s8.bf16 %v1006_v32  ;;  %v1021_v8 = vld [vmem:[#allocation2 + $0x960] sm:$0xff] }
 0x25c   :  { %4770 = vmatpush3.bf16.msra.mxu0 %v1620_v44  ;;  %v1675_v44 = vunpack.c.l.s8.bf16 %v1006_v32  ;;  %v1705_v32 = vunpack.c.l.s8.bf16 %v1021_v8 }
 0x25d   :  { %4792 = vmatpush3.bf16.msra.mxu1 %v1636_v37  ;;  %4771 = vmatprep.subr.bf16.mxu0 %v1629_v38  ;;  %v1002_v37 = vld [vmem:[#allocation2 + $0x8c8] sm:$0xff]  ;;  %v1651_v38 = vunpack.c.l.s8.bf16 %v994_v36 }
 0x25e   :  { %4793 = vmatprep.subr.bf16.mxu1 %v1645_v43  ;;  %v1667_v42 = vunpack.c.l.s8.bf16 %v1002_v37  ;;  %v1660_v43 = vunpack.c.h.s8.bf16 %v998_v30  ;;  %v1009_v30 = vld [vmem:[#allocation2 + $0x900] sm:$0xff] }
 0x260   :  { %4772 = vmatpush3.bf16.msra.mxu0 %v1621_v47  ;;  %v999_v47 = vld [vmem:[#allocation2 + $0x8b0] sm:$0xff] }
 0x261   :  { %4794 = vmatpush3.bf16.msra.mxu1 %v1637_v51  ;;  %4773 = vmatprep.subr.bf16.mxu0 %v1630_v13  ;;  %v1007_v51 = vld [vmem:[#allocation2 + $0x8f0] sm:$0xff]  ;;  %v1652_v13 = vunpack.c.h.s8.bf16 %v994_v36  ;;  %v1661_v59 = vunpack.c.l.s8.bf16 %v999_v47  ;;  %v1662_v6 = vunpack.c.h.s8.bf16 %v999_v47 }
 0x262   :  { %4795 = vmatprep.subr.bf16.mxu1 %v1646_v54  ;;  %v4471_v45 = vpop.f32.mrb[36].mxu0  ;;  %v1668_v54 = vunpack.c.h.s8.bf16 %v1002_v37  ;;  %v1677_v63 = vunpack.c.l.s8.bf16 %v1007_v51  ;;  %v1706_v37 = vunpack.c.h.s8.bf16 %v1021_v8 }
 0x263   :  { %v4493_v40 = vpop.f32.mrb[36].mxu1  ;;  %v4472_v31 = vpop.f32.mrb[37].mxu0 }
 0x264   :  { %v4494_v48 = vpop.f32.mrb[37].mxu1  ;;  %v4473_v11 = vadd.f32 %v4472_v31, %v4471_v45  ;;  %v4474_v12 = vpop.f32.mrb[38].mxu0  ;;  %4774 = vmatpush3.bf16.msra.mxu0 %v1622_v3  ;;  %v1003_v3 = vld [vmem:[#allocation2 + $0x8d0] sm:$0xff]  ;;  %v1008_v45 = vld [vmem:[#allocation2 + $0x8f8] sm:$0xff] }
 0x265   :  { %v4495_v52 = vadd.f32 %v4494_v48, %v4493_v40  ;;  %4796 = vmatpush3.bf16.msra.mxu1 %v1638_v4  ;;  %v4496_v14 = vpop.f32.mrb[38].mxu1  ;;  %v4475_v39 = vpop.f32.mrb[39].mxu0  ;;  %4775 = vmatprep.subr.bf16.mxu0 %v1631_v5  ;;  %v1653_v4 = vunpack.c.l.s8.bf16 %v995_v41  ;;  %v1669_v5 = vunpack.c.l.s8.bf16 %v1003_v3  ;;  %v91_v40 = vld [vmem:[%s5939_s0 + $0x90] sm:$0xff]  ;;  %v1670_v31 = vunpack.c.h.s8.bf16 %v1003_v3 }
 0x266   :  { %4797 = vmatprep.subr.bf16.mxu1 %v1647_v17  ;;  %v4497_v57 = vpop.f32.mrb[39].mxu1  ;;  %v2628_v9 = vadd.f32 %v4473_v11, %v5741_v53  ;;  %v1001_v53 = vld [vmem:[#allocation2 + $0x8c0] sm:$0xff]  ;;  %v1678_v17 = vunpack.c.h.s8.bf16 %v1007_v51  ;;  %v1663_v48 = vunpack.c.l.s8.bf16 %v1000_v7  ;;  %v996_v11 = vld [vmem:[#allocation2 + $0x898] sm:$0xff]  ;;  %v1679_v12 = vunpack.c.l.s8.bf16 %v1008_v45  ;;  %v1010_v51 = vld [vmem:[#allocation2 + $0x908] sm:$0xff] }
 0x267   :  { %v1665_v28 = vunpack.c.l.s8.bf16 %v1001_v53  ;;  %v1666_v35 = vunpack.c.h.s8.bf16 %v1001_v53  ;;  %v427_v14 = vcombine.high %v91_v40, %v91_v40  ;;  %v1655_v16 = vunpack.c.l.s8.bf16 %v996_v11 }
 0x268   :  { %v5764_v0 = vadd.f32 %v4495_v52, %v2628_v9  ;;  %4776 = vmatpush3.bf16.msra.mxu0 %v1623_v22  ;;  %v1004_v52 = vld [vmem:[#allocation2 + $0x8d8] sm:$0xff]  ;;  %v1680_v21 = vunpack.c.h.s8.bf16 %v1008_v45  ;;  %v1011_v45 = vld [vmem:[#allocation2 + $0x910] sm:$0xff] }
 0x269   :  { %4798 = vmatpush3.bf16.msra.mxu1 %v1639_v55  ;;  %4777 = vmatprep.subr.bf16.mxu0 %v1632_v56  ;;  %v1671_v60 = vunpack.c.l.s8.bf16 %v1004_v52 }
 0x26a   :  { %4799 = vmatprep.subr.bf16.mxu1 %v1648_v15 }
 0x26c   :  { %4778 = vmatpush3.bf16.msra.mxu0 %v1624_v19 }
 0x26d   :  { %4800 = vmatpush3.bf16.msra.mxu1 %v1640_v1  ;;  %4807 = vmatprep.subr.bf16.mxu0 %v1657_v20  ;;  %v1664_v20 = vunpack.c.h.s8.bf16 %v1000_v7 }
 0x26e   :  { %4829 = vmatprep.subr.bf16.mxu1 %v1673_v24 }
 0x26f   :  { %3186 = vmatmul.mubr.bf16.vlgmr.msra.gmra.mrb[64].mxu0 %v689_v62  ;;  %v5779_v62 = vrot.slane %v91_v40, %v5431_v23 }
 0x270   :  { %3226 = vmatmul.mubr.bf16.vlgmr.msra.gmra.mrb[64].mxu1 %v691_v26  ;;  %4808 = vmatpush3.bf16.msra.mxu0 %v1649_v27  ;;  %v5782_v26 = vrot.slane %v427_v14, %v5431_v23  ;;  %v1686_v14 = vunpack.c.h.s8.bf16 %v1011_v45 }
 0x271   :  { %4830 = vmatpush3.bf16.msra.mxu1 %v1665_v28  ;;  %4809 = vmatprep.subr.bf16.mxu0 %v1658_v58  ;;  %v1656_v28 = vunpack.c.h.s8.bf16 %v996_v11  ;;  %v1672_v58 = vunpack.c.h.s8.bf16 %v1004_v52  ;;  %v1016_v52 = vld [vmem:[#allocation2 + $0x938] sm:$0xff] }
 0x272   :  { %4831 = vmatprep.subr.bf16.mxu1 %v1674_v29  ;;  %3265 = vmatprep.mubr.bf16.mxu0 %v694_v33  ;;  %v1689_v29 = vunpack.c.l.s8.bf16 %v1013_v25  ;;  %v442_v33 = vcombine.high %v5779_v62, %v5779_v62 }
 0x273   :  { %3305 = vmatprep.mubr.bf16.mxu1 %v696_v34  ;;  %v443_v34 = vcombine.high %v5782_v26, %v5782_v26 }
 0x274   :  { %4810 = vmatpush3.bf16.msra.mxu0 %v1650_v49  ;;  %v693_v49 = vpack.c.bf16 %v5759_v61, %v5759_v61  ;;  %v1682_v61 = vunpack.c.h.s8.bf16 %v1009_v30 }
 0x275   :  { %4832 = vmatpush3.bf16.msra.mxu1 %v1666_v35  ;;  %4811 = vmatprep.subr.bf16.mxu0 %v1659_v50  ;;  %v695_v35 = vpack.c.bf16 %v5762_v18, %v5762_v18  ;;  %v1681_v50 = vunpack.c.l.s8.bf16 %v1009_v30 }
 0x276   :  { %4833 = vmatprep.subr.bf16.mxu1 %v1675_v44  ;;  %v1690_v44 = vunpack.c.h.s8.bf16 %v1013_v25 }
 0x278   :  { %4812 = vmatpush3.bf16.msra.mxu0 %v1651_v38  ;;  %v1014_v38 = vld [vmem:[#allocation2 + $0x928] sm:$0xff] }
 0x279   :  { %4834 = vmatpush3.bf16.msra.mxu1 %v1667_v42  ;;  %4813 = vmatprep.subr.bf16.mxu0 %v1660_v43  ;;  %v1022_v42 = vld [vmem:[#allocation2 + $0x968] sm:$0xff]  ;;  %v698_v43 = vpack.c.bf16 %v442_v33, %v442_v33  ;;  %v1691_v18 = vunpack.c.l.s8.bf16 %v1014_v38  ;;  %v1029_v33 = vld [vmem:[#allocation2 + $0x9a0] sm:$0xff] }
 0x27a   :  { %4835 = vmatprep.subr.bf16.mxu1 %v1676_v46  ;;  %v700_v46 = vpack.c.bf16 %v443_v34, %v443_v34  ;;  %v1708_v3 = vunpack.c.h.s8.bf16 %v1022_v42  ;;  %v1037_v34 = vld [vmem:[#allocation2 + $0x9e0] sm:$0xff] }
 0x27c   :  { %4814 = vmatpush3.bf16.msra.mxu0 %v1652_v13  ;;  %v1707_v13 = vunpack.c.l.s8.bf16 %v1022_v42  ;;  %v1737_v42 = vunpack.c.l.s8.bf16 %v1037_v34 }
 0x27d   :  { %4836 = vmatpush3.bf16.msra.mxu1 %v1668_v54  ;;  %4815 = vmatprep.subr.bf16.mxu0 %v1661_v59  ;;  %v1018_v54 = vld [vmem:[#allocation2 + $0x948] sm:$0xff]  ;;  %v1683_v59 = vunpack.c.l.s8.bf16 %v1010_v51 }
 0x27e   :  { %4837 = vmatprep.subr.bf16.mxu1 %v1677_v63  ;;  %v1699_v41 = vunpack.c.l.s8.bf16 %v1018_v54  ;;  %v1692_v63 = vunpack.c.h.s8.bf16 %v1014_v38  ;;  %v1025_v38 = vld [vmem:[#allocation2 + $0x980] sm:$0xff] }
 0x280   :  { %4816 = vmatpush3.bf16.msra.mxu0 %v1653_v4  ;;  %v1015_v4 = vld [vmem:[#allocation2 + $0x930] sm:$0xff] }
 0x281   :  { %4838 = vmatpush3.bf16.msra.mxu1 %v1669_v5  ;;  %4817 = vmatprep.subr.bf16.mxu0 %v1662_v6  ;;  %v1023_v5 = vld [vmem:[#allocation2 + $0x970] sm:$0xff]  ;;  %v1684_v6 = vunpack.c.h.s8.bf16 %v1010_v51  ;;  %v1693_v7 = vunpack.c.l.s8.bf16 %v1015_v4  ;;  %v1694_v11 = vunpack.c.h.s8.bf16 %v1015_v4 }
 0x282   :  { %4839 = vmatprep.subr.bf16.mxu1 %v1678_v17  ;;  %v4515_v22 = vpop.f32.mrb[40].mxu0  ;;  %v1700_v17 = vunpack.c.h.s8.bf16 %v1018_v54  ;;  %v1709_v40 = vunpack.c.l.s8.bf16 %v1023_v5  ;;  %v1738_v54 = vunpack.c.h.s8.bf16 %v1037_v34 }
 0x283   :  { %v4537_v55 = vpop.f32.mrb[40].mxu1  ;;  %v4516_v39 = vpop.f32.mrb[41].mxu0 }
 0x284   :  { %v4538_v56 = vpop.f32.mrb[41].mxu1  ;;  %v4517_v15 = vadd.f32 %v4516_v39, %v4515_v22  ;;  %v4518_v57 = vpop.f32.mrb[42].mxu0  ;;  %4818 = vmatpush3.bf16.msra.mxu0 %v1654_v10  ;;  %v1019_v10 = vld [vmem:[#allocation2 + $0x950] sm:$0xff]  ;;  %v1024_v22 = vld [vmem:[#allocation2 + $0x978] sm:$0xff] }
 0x285   :  { %v4539_v9 = vadd.f32 %v4538_v56, %v4537_v55  ;;  %4840 = vmatpush3.bf16.msra.mxu1 %v1670_v31  ;;  %v4540_v19 = vpop.f32.mrb[42].mxu1  ;;  %v4519_v1 = vpop.f32.mrb[43].mxu0  ;;  %4819 = vmatprep.subr.bf16.mxu0 %v1663_v48  ;;  %v1685_v31 = vunpack.c.l.s8.bf16 %v1011_v45  ;;  %v1701_v48 = vunpack.c.l.s8.bf16 %v1019_v10  ;;  %v92_v55 = vld [vmem:[%s5939_s0 + $0x98] sm:$0xff]  ;;  %v1702_v39 = vunpack.c.h.s8.bf16 %v1019_v10 }
 0x286   :  { %4841 = vmatprep.subr.bf16.mxu1 %v1679_v12  ;;  %v4541_v24 = vpop.f32.mrb[43].mxu1  ;;  %v2708_v53 = vadd.f32 %v4517_v15, %v5764_v0  ;;  %v1017_v0 = vld [vmem:[#allocation2 + $0x940] sm:$0xff]  ;;  %v1710_v12 = vunpack.c.h.s8.bf16 %v1023_v5  ;;  %v1695_v56 = vunpack.c.l.s8.bf16 %v1016_v52  ;;  %v1012_v15 = vld [vmem:[#allocation2 + $0x918] sm:$0xff]  ;;  %v1711_v57 = vunpack.c.l.s8.bf16 %v1024_v22  ;;  %v1026_v5 = vld [vmem:[#allocation2 + $0x988] sm:$0xff] }
 0x287   :  { %v1697_v36 = vunpack.c.l.s8.bf16 %v1017_v0  ;;  %v1698_v47 = vunpack.c.h.s8.bf16 %v1017_v0  ;;  %v444_v19 = vcombine.high %v92_v55, %v92_v55  ;;  %v1687_v25 = vunpack.c.l.s8.bf16 %v1012_v15 }
 0x288   :  { %v5784_v27 = vadd.f32 %v4539_v9, %v2708_v53  ;;  %4820 = vmatpush3.bf16.msra.mxu0 %v1655_v16  ;;  %v1020_v9 = vld [vmem:[#allocation2 + $0x958] sm:$0xff]  ;;  %v1712_v30 = vunpack.c.h.s8.bf16 %v1024_v22  ;;  %v1027_v22 = vld [vmem:[#allocation2 + $0x990] sm:$0xff] }
 0x289   :  { %4842 = vmatpush3.bf16.msra.mxu1 %v1671_v60  ;;  %4821 = vmatprep.subr.bf16.mxu0 %v1664_v20  ;;  %v1703_v8 = vunpack.c.l.s8.bf16 %v1020_v9 }
 0x28a   :  { %4843 = vmatprep.subr.bf16.mxu1 %v1680_v21 }
 0x28c   :  { %4822 = vmatpush3.bf16.msra.mxu0 %v1656_v28 }
 0x28d   :  { %4844 = vmatpush3.bf16.msra.mxu1 %v1672_v58  ;;  %4851 = vmatprep.subr.bf16.mxu0 %v1689_v29  ;;  %v1696_v29 = vunpack.c.h.s8.bf16 %v1016_v52 }
 0x28e   :  { %4873 = vmatprep.subr.bf16.mxu1 %v1705_v32 }
 0x28f   :  { %3266 = vmatmul.mubr.bf16.vlgmr.msra.gmra.mrb[68].mxu0 %v693_v49  ;;  %v5799_v49 = vrot.slane %v92_v55, %v5431_v23 }
 0x290   :  { %3306 = vmatmul.mubr.bf16.vlgmr.msra.gmra.mrb[68].mxu1 %v695_v35  ;;  %4852 = vmatpush3.bf16.msra.mxu0 %v1681_v50  ;;  %v5802_v35 = vrot.slane %v444_v19, %v5431_v23  ;;  %v1718_v19 = vunpack.c.h.s8.bf16 %v1027_v22 }
 0x291   :  { %4874 = vmatpush3.bf16.msra.mxu1 %v1697_v36  ;;  %4853 = vmatprep.subr.bf16.mxu0 %v1690_v44  ;;  %v1688_v36 = vunpack.c.h.s8.bf16 %v1012_v15  ;;  %v1704_v44 = vunpack.c.h.s8.bf16 %v1020_v9  ;;  %v1032_v9 = vld [vmem:[#allocation2 + $0x9b8] sm:$0xff] }
 0x292   :  { %4875 = vmatprep.subr.bf16.mxu1 %v1706_v37  ;;  %3345 = vmatprep.mubr.bf16.mxu0 %v698_v43  ;;  %v1721_v37 = vunpack.c.l.s8.bf16 %v1029_v33  ;;  %v459_v43 = vcombine.high %v5799_v49, %v5799_v49 }
 0x293   :  { %3385 = vmatprep.mubr.bf16.mxu1 %v700_v46  ;;  %v460_v46 = vcombine.high %v5802_v35, %v5802_v35 }
 0x294   :  { %4854 = vmatpush3.bf16.msra.mxu0 %v1682_v61  ;;  %v697_v61 = vpack.c.bf16 %v5779_v62, %v5779_v62  ;;  %v1714_v62 = vunpack.c.h.s8.bf16 %v1025_v38 }
 0x295   :  { %4876 = vmatpush3.bf16.msra.mxu1 %v1698_v47  ;;  %4855 = vmatprep.subr.bf16.mxu0 %v1691_v18  ;;  %v699_v47 = vpack.c.bf16 %v5782_v26, %v5782_v26  ;;  %v1713_v18 = vunpack.c.l.s8.bf16 %v1025_v38 }
 0x296   :  { %4877 = vmatprep.subr.bf16.mxu1 %v1707_v13  ;;  %v1722_v13 = vunpack.c.h.s8.bf16 %v1029_v33 }
 0x298   :  { %4856 = vmatpush3.bf16.msra.mxu0 %v1683_v59  ;;  %v1030_v59 = vld [vmem:[#allocation2 + $0x9a8] sm:$0xff] }
 0x299   :  { %4878 = vmatpush3.bf16.msra.mxu1 %v1699_v41  ;;  %4857 = vmatprep.subr.bf16.mxu0 %v1692_v63  ;;  %v1038_v41 = vld [vmem:[#allocation2 + $0x9e8] sm:$0xff]  ;;  %v702_v63 = vpack.c.bf16 %v459_v43, %v459_v43  ;;  %v1723_v26 = vunpack.c.l.s8.bf16 %v1030_v59  ;;  %v1045_v43 = vld [vmem:[#allocation2 + $0xa20] sm:$0xff] }
 0x29a   :  { %4879 = vmatprep.subr.bf16.mxu1 %v1708_v3  ;;  %v704_v3 = vpack.c.bf16 %v460_v46, %v460_v46  ;;  %v1740_v10 = vunpack.c.h.s8.bf16 %v1038_v41  ;;  %v1053_v46 = vld [vmem:[#allocation2 + $0xa60] sm:$0xff] }
 0x29c   :  { %4858 = vmatpush3.bf16.msra.mxu0 %v1684_v6  ;;  %v1739_v6 = vunpack.c.l.s8.bf16 %v1038_v41  ;;  %v1769_v41 = vunpack.c.l.s8.bf16 %v1053_v46 }
 0x29d   :  { %4880 = vmatpush3.bf16.msra.mxu1 %v1700_v17  ;;  %4859 = vmatprep.subr.bf16.mxu0 %v1693_v7  ;;  %v1034_v17 = vld [vmem:[#allocation2 + $0x9c8] sm:$0xff]  ;;  %v1715_v7 = vunpack.c.l.s8.bf16 %v1026_v5 }
 0x29e   :  { %4881 = vmatprep.subr.bf16.mxu1 %v1709_v40  ;;  %v1731_v45 = vunpack.c.l.s8.bf16 %v1034_v17  ;;  %v1724_v40 = vunpack.c.h.s8.bf16 %v1030_v59  ;;  %v1041_v59 = vld [vmem:[#allocation2 + $0xa00] sm:$0xff] }
 0x2a0   :  { %4860 = vmatpush3.bf16.msra.mxu0 %v1685_v31  ;;  %v1031_v31 = vld [vmem:[#allocation2 + $0x9b0] sm:$0xff] }
 0x2a1   :  { %4882 = vmatpush3.bf16.msra.mxu1 %v1701_v48  ;;  %4861 = vmatprep.subr.bf16.mxu0 %v1694_v11  ;;  %v1039_v48 = vld [vmem:[#allocation2 + $0x9f0] sm:$0xff]  ;;  %v1716_v11 = vunpack.c.h.s8.bf16 %v1026_v5  ;;  %v1725_v52 = vunpack.c.l.s8.bf16 %v1031_v31  ;;  %v1726_v15 = vunpack.c.h.s8.bf16 %v1031_v31 }
 0x2a2   :  { %4883 = vmatprep.subr.bf16.mxu1 %v1710_v12  ;;  %v4559_v16 = vpop.f32.mrb[44].mxu0  ;;  %v1732_v12 = vunpack.c.h.s8.bf16 %v1034_v17  ;;  %v1741_v55 = vunpack.c.l.s8.bf16 %v1039_v48  ;;  %v1770_v17 = vunpack.c.h.s8.bf16 %v1053_v46 }
 0x2a3   :  { %v4581_v60 = vpop.f32.mrb[44].mxu1  ;;  %v4560_v1 = vpop.f32.mrb[45].mxu0 }
 0x2a4   :  { %v4582_v20 = vpop.f32.mrb[45].mxu1  ;;  %v4561_v21 = vadd.f32 %v4560_v1, %v4559_v16  ;;  %v4562_v24 = vpop.f32.mrb[46].mxu0  ;;  %4862 = vmatpush3.bf16.msra.mxu0 %v1686_v14  ;;  %v1035_v14 = vld [vmem:[#allocation2 + $0x9d0] sm:$0xff]  ;;  %v1040_v16 = vld [vmem:[#allocation2 + $0x9f8] sm:$0xff] }
 0x2a5   :  { %v4583_v53 = vadd.f32 %v4582_v20, %v4581_v60  ;;  %4884 = vmatpush3.bf16.msra.mxu1 %v1702_v39  ;;  %v4584_v28 = vpop.f32.mrb[46].mxu1  ;;  %v4563_v58 = vpop.f32.mrb[47].mxu0  ;;  %4863 = vmatprep.subr.bf16.mxu0 %v1695_v56  ;;  %v1717_v39 = vunpack.c.l.s8.bf16 %v1027_v22  ;;  %v1733_v56 = vunpack.c.l.s8.bf16 %v1035_v14  ;;  %v93_v60 = vld [vmem:[%s5939_s0 + $0xa0] sm:$0xff]  ;;  %v1734_v1 = vunpack.c.h.s8.bf16 %v1035_v14 }
 0x2a6   :  { %4885 = vmatprep.subr.bf16.mxu1 %v1711_v57  ;;  %v4585_v32 = vpop.f32.mrb[47].mxu1  ;;  %v2788_v0 = vadd.f32 %v4561_v21, %v5784_v27  ;;  %v1033_v27 = vld [vmem:[#allocation2 + $0x9c0] sm:$0xff]  ;;  %v1742_v57 = vunpack.c.h.s8.bf16 %v1039_v48  ;;  %v1727_v20 = vunpack.c.l.s8.bf16 %v1032_v9  ;;  %v1028_v21 = vld [vmem:[#allocation2 + $0x998] sm:$0xff]  ;;  %v1743_v24 = vunpack.c.l.s8.bf16 %v1040_v16  ;;  %v1042_v48 = vld [vmem:[#allocation2 + $0xa08] sm:$0xff] }
 0x2a7   :  { %v1729_v51 = vunpack.c.l.s8.bf16 %v1033_v27  ;;  %v1730_v4 = vunpack.c.h.s8.bf16 %v1033_v27  ;;  %v461_v28 = vcombine.high %v93_v60, %v93_v60  ;;  %v1719_v33 = vunpack.c.l.s8.bf16 %v1028_v21 }
 0x2a8   :  { %v5804_v50 = vadd.f32 %v4583_v53, %v2788_v0  ;;  %4864 = vmatpush3.bf16.msra.mxu0 %v1687_v25  ;;  %v1036_v53 = vld [vmem:[#allocation2 + $0x9d8] sm:$0xff]  ;;  %v1744_v38 = vunpack.c.h.s8.bf16 %v1040_v16  ;;  %v1043_v16 = vld [vmem:[#allocation2 + $0xa10] sm:$0xff] }
 0x2a9   :  { %4886 = vmatpush3.bf16.msra.mxu1 %v1703_v8  ;;  %4865 = vmatprep.subr.bf16.mxu0 %v1696_v29  ;;  %v1735_v34 = vunpack.c.l.s8.bf16 %v1036_v53 }
 0x2aa   :  { %4887 = vmatprep.subr.bf16.mxu1 %v1712_v30 }
 0x2ac   :  { %4866 = vmatpush3.bf16.msra.mxu0 %v1688_v36 }
 0x2ad   :  { %4888 = vmatpush3.bf16.msra.mxu1 %v1704_v44  ;;  %4895 = vmatprep.subr.bf16.mxu0 %v1721_v37  ;;  %v1728_v37 = vunpack.c.h.s8.bf16 %v1032_v9 }
 0x2ae   :  { %4917 = vmatprep.subr.bf16.mxu1 %v1737_v42 }
 0x2af   :  { %3346 = vmatmul.mubr.bf16.vlgmr.msra.gmra.mrb[72].mxu0 %v697_v61  ;;  %v5819_v61 = vrot.slane %v93_v60, %v5431_v23 }
 0x2b0   :  { %3386 = vmatmul.mubr.bf16.vlgmr.msra.gmra.mrb[72].mxu1 %v699_v47  ;;  %4896 = vmatpush3.bf16.msra.mxu0 %v1713_v18  ;;  %v5822_v47 = vrot.slane %v461_v28, %v5431_v23  ;;  %v1750_v28 = vunpack.c.h.s8.bf16 %v1043_v16 }
 0x2b1   :  { %4918 = vmatpush3.bf16.msra.mxu1 %v1729_v51  ;;  %4897 = vmatprep.subr.bf16.mxu0 %v1722_v13  ;;  %v1720_v51 = vunpack.c.h.s8.bf16 %v1028_v21  ;;  %v1736_v13 = vunpack.c.h.s8.bf16 %v1036_v53  ;;  %v1048_v53 = vld [vmem:[#allocation2 + $0xa38] sm:$0xff] }
 0x2b2   :  { %4919 = vmatprep.subr.bf16.mxu1 %v1738_v54  ;;  %3425 = vmatprep.mubr.bf16.mxu0 %v702_v63  ;;  %v1753_v54 = vunpack.c.l.s8.bf16 %v1045_v43  ;;  %v476_v63 = vcombine.high %v5819_v61, %v5819_v61 }
 0x2b3   :  { %3465 = vmatprep.mubr.bf16.mxu1 %v704_v3  ;;  %v477_v3 = vcombine.high %v5822_v47, %v5822_v47 }
 0x2b4   :  { %4898 = vmatpush3.bf16.msra.mxu0 %v1714_v62  ;;  %v701_v62 = vpack.c.bf16 %v5799_v49, %v5799_v49  ;;  %v1746_v49 = vunpack.c.h.s8.bf16 %v1041_v59 }
 0x2b5   :  { %4920 = vmatpush3.bf16.msra.mxu1 %v1730_v4  ;;  %4899 = vmatprep.subr.bf16.mxu0 %v1723_v26  ;;  %v703_v4 = vpack.c.bf16 %v5802_v35, %v5802_v35  ;;  %v1745_v26 = vunpack.c.l.s8.bf16 %v1041_v59 }
 0x2b6   :  { %4921 = vmatprep.subr.bf16.mxu1 %v1739_v6  ;;  %v1754_v6 = vunpack.c.h.s8.bf16 %v1045_v43 }
 0x2b8   :  { %4900 = vmatpush3.bf16.msra.mxu0 %v1715_v7  ;;  %v1046_v7 = vld [vmem:[#allocation2 + $0xa28] sm:$0xff] }
 0x2b9   :  { %4922 = vmatpush3.bf16.msra.mxu1 %v1731_v45  ;;  %4901 = vmatprep.subr.bf16.mxu0 %v1724_v40  ;;  %v1054_v45 = vld [vmem:[#allocation2 + $0xa68] sm:$0xff]  ;;  %v706_v40 = vpack.c.bf16 %v476_v63, %v476_v63  ;;  %v1755_v35 = vunpack.c.l.s8.bf16 %v1046_v7  ;;  %v1061_v63 = vld [vmem:[#allocation2 + $0xaa0] sm:$0xff] }
 0x2ba   :  { %4923 = vmatprep.subr.bf16.mxu1 %v1740_v10  ;;  %v708_v10 = vpack.c.bf16 %v477_v3, %v477_v3  ;;  %v1772_v14 = vunpack.c.h.s8.bf16 %v1054_v45  ;;  %v1069_v3 = vld [vmem:[#allocation2 + $0xae0] sm:$0xff] }
 0x2bc   :  { %4902 = vmatpush3.bf16.msra.mxu0 %v1716_v11  ;;  %v1771_v11 = vunpack.c.l.s8.bf16 %v1054_v45  ;;  %v1801_v45 = vunpack.c.l.s8.bf16 %v1069_v3 }
 0x2bd   :  { %4924 = vmatpush3.bf16.msra.mxu1 %v1732_v12  ;;  %4903 = vmatprep.subr.bf16.mxu0 %v1725_v52  ;;  %v1050_v12 = vld [vmem:[#allocation2 + $0xa48] sm:$0xff]  ;;  %v1747_v52 = vunpack.c.l.s8.bf16 %v1042_v48 }
 0x2be   :  { %4925 = vmatprep.subr.bf16.mxu1 %v1741_v55  ;;  %v1763_v22 = vunpack.c.l.s8.bf16 %v1050_v12  ;;  %v1756_v55 = vunpack.c.h.s8.bf16 %v1046_v7  ;;  %v1057_v7 = vld [vmem:[#allocation2 + $0xa80] sm:$0xff] }
 0x2c0   :  { %4904 = vmatpush3.bf16.msra.mxu0 %v1717_v39  ;;  %v1047_v39 = vld [vmem:[#allocation2 + $0xa30] sm:$0xff] }
 0x2c1   :  { %4926 = vmatpush3.bf16.msra.mxu1 %v1733_v56  ;;  %4905 = vmatprep.subr.bf16.mxu0 %v1726_v15  ;;  %v1055_v56 = vld [vmem:[#allocation2 + $0xa70] sm:$0xff]  ;;  %v1748_v15 = vunpack.c.h.s8.bf16 %v1042_v48  ;;  %v1757_v9 = vunpack.c.l.s8.bf16 %v1047_v39  ;;  %v1758_v21 = vunpack.c.h.s8.bf16 %v1047_v39 }
 0x2c2   :  { %4927 = vmatprep.subr.bf16.mxu1 %v1742_v57  ;;  %v4603_v25 = vpop.f32.mrb[48].mxu0  ;;  %v1764_v57 = vunpack.c.h.s8.bf16 %v1050_v12  ;;  %v1773_v60 = vunpack.c.l.s8.bf16 %v1055_v56  ;;  %v1802_v12 = vunpack.c.h.s8.bf16 %v1069_v3 }
 0x2c3   :  { %v4625_v8 = vpop.f32.mrb[48].mxu1  ;;  %v4604_v58 = vpop.f32.mrb[49].mxu0 }
 0x2c4   :  { %v4626_v29 = vpop.f32.mrb[49].mxu1  ;;  %v4605_v30 = vadd.f32 %v4604_v58, %v4603_v25  ;;  %v4606_v32 = vpop.f32.mrb[50].mxu0  ;;  %4906 = vmatpush3.bf16.msra.mxu0 %v1718_v19  ;;  %v1051_v19 = vld [vmem:[#allocation2 + $0xa50] sm:$0xff]  ;;  %v1056_v25 = vld [vmem:[#allocation2 + $0xa78] sm:$0xff] }
 0x2c5   :  { %v4627_v0 = vadd.f32 %v4626_v29, %v4625_v8  ;;  %4928 = vmatpush3.bf16.msra.mxu1 %v1734_v1  ;;  %v4628_v36 = vpop.f32.mrb[50].mxu1  ;;  %v4607_v44 = vpop.f32.mrb[51].mxu0  ;;  %4907 = vmatprep.subr.bf16.mxu0 %v1727_v20  ;;  %v1749_v1 = vunpack.c.l.s8.bf16 %v1043_v16  ;;  %v1765_v20 = vunpack.c.l.s8.bf16 %v1051_v19  ;;  %v94_v8 = vld [vmem:[%s5939_s0 + $0xa8] sm:$0xff]  ;;  %v1766_v58 = vunpack.c.h.s8.bf16 %v1051_v19 }
 0x2c6   :  { %4929 = vmatprep.subr.bf16.mxu1 %v1743_v24  ;;  %v4629_v42 = vpop.f32.mrb[51].mxu1  ;;  %v2868_v27 = vadd.f32 %v4605_v30, %v5804_v50  ;;  %v1049_v50 = vld [vmem:[#allocation2 + $0xa40] sm:$0xff]  ;;  %v1774_v24 = vunpack.c.h.s8.bf16 %v1055_v56  ;;  %v1759_v29 = vunpack.c.l.s8.bf16 %v1048_v53  ;;  %v1044_v30 = vld [vmem:[#allocation2 + $0xa18] sm:$0xff]  ;;  %v1775_v32 = vunpack.c.l.s8.bf16 %v1056_v25  ;;  %v1058_v56 = vld [vmem:[#allocation2 + $0xa88] sm:$0xff] }
 0x2c7   :  { %v1761_v5 = vunpack.c.l.s8.bf16 %v1049_v50  ;;  %v1762_v31 = vunpack.c.h.s8.bf16 %v1049_v50  ;;  %v478_v36 = vcombine.high %v94_v8, %v94_v8  ;;  %v1751_v43 = vunpack.c.l.s8.bf16 %v1044_v30 }
 0x2c8   :  { %v5824_v18 = vadd.f32 %v4627_v0, %v2868_v27  ;;  %4908 = vmatpush3.bf16.msra.mxu0 %v1719_v33  ;;  %v1052_v0 = vld [vmem:[#allocation2 + $0xa58] sm:$0xff]  ;;  %v1776_v59 = vunpack.c.h.s8.bf16 %v1056_v25  ;;  %v1059_v25 = vld [vmem:[#allocation2 + $0xa90] sm:$0xff] }
 0x2c9   :  { %4930 = vmatpush3.bf16.msra.mxu1 %v1735_v34  ;;  %4909 = vmatprep.subr.bf16.mxu0 %v1728_v37  ;;  %v1767_v46 = vunpack.c.l.s8.bf16 %v1052_v0 }
 0x2ca   :  { %4931 = vmatprep.subr.bf16.mxu1 %v1744_v38 }
 0x2cc   :  { %4910 = vmatpush3.bf16.msra.mxu0 %v1720_v51 }
 0x2cd   :  { %4932 = vmatpush3.bf16.msra.mxu1 %v1736_v13  ;;  %4939 = vmatprep.subr.bf16.mxu0 %v1753_v54  ;;  %v1760_v54 = vunpack.c.h.s8.bf16 %v1048_v53 }
 0x2ce   :  { %4961 = vmatprep.subr.bf16.mxu1 %v1769_v41 }
 0x2cf   :  { %3426 = vmatmul.mubr.bf16.vlgmr.msra.gmra.mrb[76].mxu0 %v701_v62  ;;  %v5839_v62 = vrot.slane %v94_v8, %v5431_v23 }
 0x2d0   :  { %3466 = vmatmul.mubr.bf16.vlgmr.msra.gmra.mrb[76].mxu1 %v703_v4  ;;  %4940 = vmatpush3.bf16.msra.mxu0 %v1745_v26  ;;  %v5842_v4 = vrot.slane %v478_v36, %v5431_v23  ;;  %v1782_v36 = vunpack.c.h.s8.bf16 %v1059_v25 }
 0x2d1   :  { %4962 = vmatpush3.bf16.msra.mxu1 %v1761_v5  ;;  %4941 = vmatprep.subr.bf16.mxu0 %v1754_v6  ;;  %v1752_v5 = vunpack.c.h.s8.bf16 %v1044_v30  ;;  %v1768_v6 = vunpack.c.h.s8.bf16 %v1052_v0  ;;  %v1064_v0 = vld [vmem:[#allocation2 + $0xab8] sm:$0xff] }
 0x2d2   :  { %4963 = vmatprep.subr.bf16.mxu1 %v1770_v17  ;;  %3505 = vmatprep.mubr.bf16.mxu0 %v706_v40  ;;  %v1785_v17 = vunpack.c.l.s8.bf16 %v1061_v63  ;;  %v493_v40 = vcombine.high %v5839_v62, %v5839_v62 }
 0x2d3   :  { %3545 = vmatprep.mubr.bf16.mxu1 %v708_v10  ;;  %v494_v10 = vcombine.high %v5842_v4, %v5842_v4 }
 0x2d4   :  { %4942 = vmatpush3.bf16.msra.mxu0 %v1746_v49  ;;  %v705_v49 = vpack.c.bf16 %v5819_v61, %v5819_v61  ;;  %v1778_v61 = vunpack.c.h.s8.bf16 %v1057_v7 }
 0x2d5   :  { %4964 = vmatpush3.bf16.msra.mxu1 %v1762_v31  ;;  %4943 = vmatprep.subr.bf16.mxu0 %v1755_v35  ;;  %v707_v31 = vpack.c.bf16 %v5822_v47, %v5822_v47  ;;  %v1777_v35 = vunpack.c.l.s8.bf16 %v1057_v7 }
 0x2d6   :  { %4965 = vmatprep.subr.bf16.mxu1 %v1771_v11  ;;  %v1786_v11 = vunpack.c.h.s8.bf16 %v1061_v63 }
 0x2d8   :  { %4944 = vmatpush3.bf16.msra.mxu0 %v1747_v52  ;;  %v1062_v52 = vld [vmem:[#allocation2 + $0xaa8] sm:$0xff] }
 0x2d9   :  { %4966 = vmatpush3.bf16.msra.mxu1 %v1763_v22  ;;  %4945 = vmatprep.subr.bf16.mxu0 %v1756_v55  ;;  %v1070_v22 = vld [vmem:[#allocation2 + $0xae8] sm:$0xff]  ;;  %v710_v55 = vpack.c.bf16 %v493_v40, %v493_v40  ;;  %v1787_v47 = vunpack.c.l.s8.bf16 %v1062_v52  ;;  %v1077_v40 = vld [vmem:[#allocation2 + $0xb20] sm:$0xff] }
 0x2da   :  { %4967 = vmatprep.subr.bf16.mxu1 %v1772_v14  ;;  %v712_v14 = vpack.c.bf16 %v494_v10, %v494_v10  ;;  %v1804_v19 = vunpack.c.h.s8.bf16 %v1070_v22  ;;  %v1085_v10 = vld [vmem:[#allocation2 + $0xb60] sm:$0xff] }
 0x2dc   :  { %4946 = vmatpush3.bf16.msra.mxu0 %v1748_v15  ;;  %v1803_v15 = vunpack.c.l.s8.bf16 %v1070_v22  ;;  %v1833_v22 = vunpack.c.l.s8.bf16 %v1085_v10 }
 0x2dd   :  { %4968 = vmatpush3.bf16.msra.mxu1 %v1764_v57  ;;  %4947 = vmatprep.subr.bf16.mxu0 %v1757_v9  ;;  %v1066_v57 = vld [vmem:[#allocation2 + $0xac8] sm:$0xff]  ;;  %v1779_v9 = vunpack.c.l.s8.bf16 %v1058_v56 }
 0x2de   :  { %4969 = vmatprep.subr.bf16.mxu1 %v1773_v60  ;;  %v1795_v16 = vunpack.c.l.s8.bf16 %v1066_v57  ;;  %v1788_v60 = vunpack.c.h.s8.bf16 %v1062_v52  ;;  %v1073_v52 = vld [vmem:[#allocation2 + $0xb00] sm:$0xff] }
 0x2e0   :  { %4948 = vmatpush3.bf16.msra.mxu0 %v1749_v1  ;;  %v1063_v1 = vld [vmem:[#allocation2 + $0xab0] sm:$0xff] }
 0x2e1   :  { %4970 = vmatpush3.bf16.msra.mxu1 %v1765_v20  ;;  %4949 = vmatprep.subr.bf16.mxu0 %v1758_v21  ;;  %v1071_v20 = vld [vmem:[#allocation2 + $0xaf0] sm:$0xff]  ;;  %v1780_v21 = vunpack.c.h.s8.bf16 %v1058_v56  ;;  %v1789_v53 = vunpack.c.l.s8.bf16 %v1063_v1  ;;  %v1790_v30 = vunpack.c.h.s8.bf16 %v1063_v1 }
 0x2e2   :  { %4971 = vmatprep.subr.bf16.mxu1 %v1774_v24  ;;  %v4647_v33 = vpop.f32.mrb[52].mxu0  ;;  %v1796_v24 = vunpack.c.h.s8.bf16 %v1066_v57  ;;  %v1805_v8 = vunpack.c.l.s8.bf16 %v1071_v20  ;;  %v1834_v57 = vunpack.c.h.s8.bf16 %v1085_v10 }
 0x2e3   :  { %v4669_v34 = vpop.f32.mrb[52].mxu1  ;;  %v4648_v44 = vpop.f32.mrb[53].mxu0 }
 0x2e4   :  { %v4670_v37 = vpop.f32.mrb[53].mxu1  ;;  %v4649_v38 = vadd.f32 %v4648_v44, %v4647_v33  ;;  %v4650_v42 = vpop.f32.mrb[54].mxu0  ;;  %4950 = vmatpush3.bf16.msra.mxu0 %v1750_v28  ;;  %v1067_v28 = vld [vmem:[#allocation2 + $0xad0] sm:$0xff]  ;;  %v1072_v33 = vld [vmem:[#allocation2 + $0xaf8] sm:$0xff] }
 0x2e5   :  { %v4671_v27 = vadd.f32 %v4670_v37, %v4669_v34  ;;  %4972 = vmatpush3.bf16.msra.mxu1 %v1766_v58  ;;  %v4672_v51 = vpop.f32.mrb[54].mxu1  ;;  %v4651_v13 = vpop.f32.mrb[55].mxu0  ;;  %4951 = vmatprep.subr.bf16.mxu0 %v1759_v29  ;;  %v1781_v58 = vunpack.c.l.s8.bf16 %v1059_v25  ;;  %v1797_v29 = vunpack.c.l.s8.bf16 %v1067_v28  ;;  %v95_v34 = vld [vmem:[%s5939_s0 + $0xb0] sm:$0xff]  ;;  %v1798_v44 = vunpack.c.h.s8.bf16 %v1067_v28 }
 0x2e6   :  { %4973 = vmatprep.subr.bf16.mxu1 %v1775_v32  ;;  %v4673_v41 = vpop.f32.mrb[55].mxu1  ;;  %v2948_v50 = vadd.f32 %v4649_v38, %v5824_v18  ;;  %v1065_v18 = vld [vmem:[#allocation2 + $0xac0] sm:$0xff]  ;;  %v1806_v32 = vunpack.c.h.s8.bf16 %v1071_v20  ;;  %v1791_v37 = vunpack.c.l.s8.bf16 %v1064_v0  ;;  %v1060_v38 = vld [vmem:[#allocation2 + $0xa98] sm:$0xff]  ;;  %v1807_v42 = vunpack.c.l.s8.bf16 %v1072_v33  ;;  %v1074_v20 = vld [vmem:[#allocation2 + $0xb08] sm:$0xff] }
 0x2e7   :  { %v1793_v48 = vunpack.c.l.s8.bf16 %v1065_v18  ;;  %v1794_v39 = vunpack.c.h.s8.bf16 %v1065_v18  ;;  %v495_v51 = vcombine.high %v95_v34, %v95_v34  ;;  %v1783_v63 = vunpack.c.l.s8.bf16 %v1060_v38 }
 0x2e8   :  { %v5844_v26 = vadd.f32 %v4671_v27, %v2948_v50  ;;  %4952 = vmatpush3.bf16.msra.mxu0 %v1751_v43  ;;  %v1068_v27 = vld [vmem:[#allocation2 + $0xad8] sm:$0xff]  ;;  %v1808_v7 = vunpack.c.h.s8.bf16 %v1072_v33  ;;  %v1075_v33 = vld [vmem:[#allocation2 + $0xb10] sm:$0xff] }
 0x2e9   :  { %4974 = vmatpush3.bf16.msra.mxu1 %v1767_v46  ;;  %4953 = vmatprep.subr.bf16.mxu0 %v1760_v54  ;;  %v1799_v3 = vunpack.c.l.s8.bf16 %v1068_v27 }
 0x2ea   :  { %4975 = vmatprep.subr.bf16.mxu1 %v1776_v59 }
 0x2ec   :  { %4954 = vmatpush3.bf16.msra.mxu0 %v1752_v5 }
 0x2ed   :  { %4976 = vmatpush3.bf16.msra.mxu1 %v1768_v6  ;;  %4983 = vmatprep.subr.bf16.mxu0 %v1785_v17  ;;  %v1792_v17 = vunpack.c.h.s8.bf16 %v1064_v0 }
 0x2ee   :  { %5005 = vmatprep.subr.bf16.mxu1 %v1801_v45 }
 0x2ef   :  { %3506 = vmatmul.mubr.bf16.vlgmr.msra.gmra.mrb[80].mxu0 %v705_v49  ;;  %v5859_v49 = vrot.slane %v95_v34, %v5431_v23 }
 0x2f0   :  { %3546 = vmatmul.mubr.bf16.vlgmr.msra.gmra.mrb[80].mxu1 %v707_v31  ;;  %4984 = vmatpush3.bf16.msra.mxu0 %v1777_v35  ;;  %v5862_v31 = vrot.slane %v495_v51, %v5431_v23  ;;  %v1814_v51 = vunpack.c.h.s8.bf16 %v1075_v33 }
 0x2f1   :  { %5006 = vmatpush3.bf16.msra.mxu1 %v1793_v48  ;;  %4985 = vmatprep.subr.bf16.mxu0 %v1786_v11  ;;  %v1784_v48 = vunpack.c.h.s8.bf16 %v1060_v38  ;;  %v1800_v11 = vunpack.c.h.s8.bf16 %v1068_v27  ;;  %v1080_v27 = vld [vmem:[#allocation2 + $0xb38] sm:$0xff] }
 0x2f2   :  { %5007 = vmatprep.subr.bf16.mxu1 %v1802_v12  ;;  %3585 = vmatprep.mubr.bf16.mxu0 %v710_v55  ;;  %v1817_v12 = vunpack.c.l.s8.bf16 %v1077_v40  ;;  %v510_v55 = vcombine.high %v5859_v49, %v5859_v49 }
 0x2f3   :  { %3625 = vmatprep.mubr.bf16.mxu1 %v712_v14  ;;  %v511_v14 = vcombine.high %v5862_v31, %v5862_v31 }
 0x2f4   :  { %4986 = vmatpush3.bf16.msra.mxu0 %v1778_v61  ;;  %v709_v61 = vpack.c.bf16 %v5839_v62, %v5839_v62  ;;  %v1810_v62 = vunpack.c.h.s8.bf16 %v1073_v52 }
 0x2f5   :  { %5008 = vmatpush3.bf16.msra.mxu1 %v1794_v39  ;;  %4987 = vmatprep.subr.bf16.mxu0 %v1787_v47  ;;  %v711_v39 = vpack.c.bf16 %v5842_v4, %v5842_v4  ;;  %v1809_v47 = vunpack.c.l.s8.bf16 %v1073_v52 }
 0x2f6   :  { %5009 = vmatprep.subr.bf16.mxu1 %v1803_v15  ;;  %v1818_v15 = vunpack.c.h.s8.bf16 %v1077_v40 }
 0x2f8   :  { %4988 = vmatpush3.bf16.msra.mxu0 %v1779_v9  ;;  %v1078_v9 = vld [vmem:[#allocation2 + $0xb28] sm:$0xff] }
 0x2f9   :  { %5010 = vmatpush3.bf16.msra.mxu1 %v1795_v16  ;;  %4989 = vmatprep.subr.bf16.mxu0 %v1788_v60  ;;  %v1086_v16 = vld [vmem:[#allocation2 + $0xb68] sm:$0xff]  ;;  %v714_v60 = vpack.c.bf16 %v510_v55, %v510_v55  ;;  %v1819_v4 = vunpack.c.l.s8.bf16 %v1078_v9  ;;  %v1093_v55 = vld [vmem:[#allocation2 + $0xba0] sm:$0xff] }
 0x2fa   :  { %5011 = vmatprep.subr.bf16.mxu1 %v1804_v19  ;;  %v716_v19 = vpack.c.bf16 %v511_v14, %v511_v14  ;;  %v1836_v28 = vunpack.c.h.s8.bf16 %v1086_v16  ;;  %v1101_v14 = vld [vmem:[#allocation2 + $0xbe0] sm:$0xff] }
 0x2fc   :  { %4990 = vmatpush3.bf16.msra.mxu0 %v1780_v21  ;;  %v1835_v21 = vunpack.c.l.s8.bf16 %v1086_v16  ;;  %v1865_v16 = vunpack.c.l.s8.bf16 %v1101_v14 }
 0x2fd   :  { %5012 = vmatpush3.bf16.msra.mxu1 %v1796_v24  ;;  %4991 = vmatprep.subr.bf16.mxu0 %v1789_v53  ;;  %v1082_v24 = vld [vmem:[#allocation2 + $0xb48] sm:$0xff]  ;;  %v1811_v53 = vunpack.c.l.s8.bf16 %v1074_v20 }
 0x2fe   :  { %5013 = vmatprep.subr.bf16.mxu1 %v1805_v8  ;;  %v1827_v25 = vunpack.c.l.s8.bf16 %v1082_v24  ;;  %v1820_v8 = vunpack.c.h.s8.bf16 %v1078_v9  ;;  %v1089_v9 = vld [vmem:[#allocation2 + $0xb80] sm:$0xff] }
 0x300   :  { %4992 = vmatpush3.bf16.msra.mxu0 %v1781_v58  ;;  %v1079_v58 = vld [vmem:[#allocation2 + $0xb30] sm:$0xff] }
 0x301   :  { %5014 = vmatpush3.bf16.msra.mxu1 %v1797_v29  ;;  %4993 = vmatprep.subr.bf16.mxu0 %v1790_v30  ;;  %v1087_v29 = vld [vmem:[#allocation2 + $0xb70] sm:$0xff]  ;;  %v1812_v30 = vunpack.c.h.s8.bf16 %v1074_v20  ;;  %v1821_v0 = vunpack.c.l.s8.bf16 %v1079_v58  ;;  %v1822_v38 = vunpack.c.h.s8.bf16 %v1079_v58  ;;  %v1850_v20 = vunpack.c.h.s8.bf16 %v1093_v55  ;;  %v1090_v58 = vld [vmem:[#allocation2 + $0xb88] sm:$0xff] }
 0x302   :  { %5015 = vmatprep.subr.bf16.mxu1 %v1806_v32  ;;  %v4691_v43 = vpop.f32.mrb[56].mxu0  ;;  %v1828_v32 = vunpack.c.h.s8.bf16 %v1082_v24  ;;  %v1837_v34 = vunpack.c.l.s8.bf16 %v1087_v29  ;;  %v1094_v24 = vld [vmem:[#allocation2 + $0xba8] sm:$0xff] }
 0x303   :  { %v4713_v46 = vpop.f32.mrb[56].mxu1  ;;  %v4692_v13 = vpop.f32.mrb[57].mxu0 }
 0x304   :  { %v4714_v54 = vpop.f32.mrb[57].mxu1  ;;  %v4693_v59 = vadd.f32 %v4692_v13, %v4691_v43  ;;  %v4694_v41 = vpop.f32.mrb[58].mxu0  ;;  %4994 = vmatpush3.bf16.msra.mxu0 %v1782_v36  ;;  %v1083_v36 = vld [vmem:[#allocation2 + $0xb50] sm:$0xff]  ;;  %v1088_v43 = vld [vmem:[#allocation2 + $0xb78] sm:$0xff] }
 0x305   :  { %v4715_v50 = vadd.f32 %v4714_v54, %v4713_v46  ;;  %5016 = vmatpush3.bf16.msra.mxu1 %v1798_v44  ;;  %v4716_v5 = vpop.f32.mrb[58].mxu1  ;;  %v4695_v6 = vpop.f32.mrb[59].mxu0  ;;  %4995 = vmatprep.subr.bf16.mxu0 %v1791_v37  ;;  %v1813_v44 = vunpack.c.l.s8.bf16 %v1075_v33  ;;  %v1829_v37 = vunpack.c.l.s8.bf16 %v1083_v36  ;;  %v96_v46 = vld [vmem:[%s5939_s0 + $0xb8] sm:$0xff]  ;;  %v1830_v13 = vunpack.c.h.s8.bf16 %v1083_v36  ;;  %s5337_s0 = smov [#allocation10]  }
 0x306   :  { %5017 = vmatprep.subr.bf16.mxu1 %v1807_v42  ;;  %v4717_v45 = vpop.f32.mrb[59].mxu1  ;;  %v3028_v18 = vadd.f32 %v4693_v59, %v5844_v26  ;;  %v1081_v26 = vld [vmem:[#allocation2 + $0xb40] sm:$0xff]  ;;  %v1838_v42 = vunpack.c.h.s8.bf16 %v1087_v29  ;;  %v1823_v54 = vunpack.c.l.s8.bf16 %v1080_v27  ;;  %v1076_v59 = vld [vmem:[#allocation2 + $0xb18] sm:$0xff]  ;;  %v1839_v41 = vunpack.c.l.s8.bf16 %v1088_v43  ;;  %s4034_s9 = sshll.u32 %s5337_s0, 4  ;;  %s4035_s9 = int_to_ptr.vmem [resolvable:$true] %s4034_s9 }
 0x307   :  { %v1825_v56 = vunpack.c.l.s8.bf16 %v1081_v26  ;;  %v1826_v1 = vunpack.c.h.s8.bf16 %v1081_v26  ;;  %v512_v5 = vcombine.high %v96_v46, %v96_v46  ;;  %v1815_v40 = vunpack.c.l.s8.bf16 %v1076_v59  ;;  %s5288_s10 = scalar_lea.vmem %s4035_s9, 32  ;;  %p5293_p5 = scmp.lt.s32.totalorder %s4035_s9, %s4035_s9 }
 0x308   :  { %v5864_v35 = vadd.f32 %v4715_v50, %v3028_v18  ;;  %4996 = vmatpush3.bf16.msra.mxu0 %v1783_v63  ;;  %v1084_v50 = vld [vmem:[#allocation2 + $0xb58] sm:$0xff]  ;;  %v1840_v52 = vunpack.c.h.s8.bf16 %v1088_v43  ;;  %p5289_p4 = scmp.ne.s32.totalorder %s4035_s9, %s5288_s10  ;;  %p5294_p6 = scmp.lt.s32.totalorder %s5288_s10, %s5288_s10 }
 0x309   :  { %5018 = vmatpush3.bf16.msra.mxu1 %v1799_v3  ;;  %4997 = vmatprep.subr.bf16.mxu0 %v1792_v17  ;;  %v1831_v10 = vunpack.c.l.s8.bf16 %v1084_v50 }
 0x30a   :  { %5019 = vmatprep.subr.bf16.mxu1 %v1808_v7  ;;  %p5295_p7 = por %p5294_p6, %p5293_p5 }
 0x30c   :  { %4998 = vmatpush3.bf16.msra.mxu0 %v1784_v48  ;;  %p5296_p8 = pnand %p5295_p7, %p5289_p4 }
 0x30d   :  { %5020 = vmatpush3.bf16.msra.mxu1 %v1800_v11  ;;  %5027 = vmatprep.subr.bf16.mxu0 %v1817_v12  ;;  %v1824_v12 = vunpack.c.h.s8.bf16 %v1080_v27  ;;  %v1844_v27 = vunpack.c.h.s8.bf16 %v1090_v58 }
 0x30e   :  { %5049 = vmatprep.subr.bf16.mxu1 %v1833_v22 }
 0x30f   :  { %3586 = vmatmul.mubr.bf16.vlgmr.msra.gmra.mrb[84].mxu0 %v709_v61  ;;  %v5879_v61 = vrot.slane %v96_v46, %v5431_v23 }
 0x310   :  { %3626 = vmatmul.mubr.bf16.vlgmr.msra.gmra.mrb[84].mxu1 %v711_v39  ;;  %5028 = vmatpush3.bf16.msra.mxu0 %v1809_v47  ;;  %v5882_v39 = vrot.slane %v512_v5, %v5431_v23  ;;  %v713_v23 = vpack.c.bf16 %v5859_v49, %v5859_v49  ;;  %v1842_v49 = vunpack.c.h.s8.bf16 %v1089_v9  ;;  %v5335_v5 = vmov 0.0  }
 0x311   :  { %5050 = vmatpush3.bf16.msra.mxu1 %v1825_v56  ;;  %5029 = vmatprep.subr.bf16.mxu0 %v1818_v15  ;;  %v1816_v56 = vunpack.c.h.s8.bf16 %v1076_v59  ;;  %v1832_v15 = vunpack.c.h.s8.bf16 %v1084_v50  ;;  %v1099_v59 = vld [vmem:[#allocation2 + $0xbd0] sm:$0xff] }
 0x312   :  { %5051 = vmatprep.subr.bf16.mxu1 %v1834_v57  ;;  %3665 = vmatprep.mubr.bf16.mxu0 %v714_v60  ;;  %v1849_v57 = vunpack.c.l.s8.bf16 %v1093_v55  ;;  %v527_v60 = vcombine.high %v5879_v61, %v5879_v61  ;;  %v1861_v50 = vunpack.c.l.s8.bf16 %v1099_v59 }
 0x313   :  { %3705 = vmatprep.mubr.bf16.mxu1 %v716_v19  ;;  %v528_v19 = vcombine.high %v5882_v39, %v5882_v39 }
 0x314   :  { %5030 = vmatpush3.bf16.msra.mxu0 %v1810_v62  ;;  %v715_v62 = vpack.c.bf16 %v5862_v31, %v5862_v31  ;;  %v1851_v31 = vunpack.c.l.s8.bf16 %v1094_v24 }
 0x315   :  { %5052 = vmatpush3.bf16.msra.mxu1 %v1826_v1  ;;  %5031 = vmatprep.subr.bf16.mxu0 %v1819_v4  ;;  %v1841_v1 = vunpack.c.l.s8.bf16 %v1089_v9 }
 0x316   :  { %5053 = vmatprep.subr.bf16.mxu1 %v1835_v21  ;;  %v1866_v21 = vunpack.c.h.s8.bf16 %v1101_v14 }
 0x318   :  { %5032 = vmatpush3.bf16.msra.mxu0 %v1811_v53  ;;  %v1102_v53 = vld [vmem:[#allocation2 + $0xbe8] sm:$0xff] }
 0x319   :  { %5054 = vmatpush3.bf16.msra.mxu1 %v1827_v25  ;;  %5033 = vmatprep.subr.bf16.mxu0 %v1820_v8  ;;  %v718_v25 = vpack.c.bf16 %v527_v60, %v527_v60  ;;  %v720_v8 = vpack.c.bf16 %v528_v19, %v528_v19  ;;  %v1867_v29 = vunpack.c.l.s8.bf16 %v1102_v53  ;;  %v1868_v36 = vunpack.c.h.s8.bf16 %v1102_v53 }
 0x31a   :  { %5055 = vmatprep.subr.bf16.mxu1 %v1836_v28 }
 0x31c   :  { %5034 = vmatpush3.bf16.msra.mxu0 %v1812_v30  ;;  %v1098_v30 = vld [vmem:[#allocation2 + $0xbc8] sm:$0xff] }
 0x31d   :  { %5056 = vmatpush3.bf16.msra.mxu1 %v1828_v32  ;;  %5035 = vmatprep.subr.bf16.mxu0 %v1821_v0  ;;  %v3806_v32 = vpop.permute.xlu0 %3805  ;;  %v1843_v0 = vunpack.c.l.s8.bf16 %v1090_v58  ;;  %v1859_v33 = vunpack.c.l.s8.bf16 %v1098_v30  ;;  %v1860_v43 = vunpack.c.h.s8.bf16 %v1098_v30  ;;  %v5192_v30 = vld [vmem:[#allocation8] sm:$0xff]  }
 0x31e   :  { %5057 = vmatprep.subr.bf16.mxu1 %v1837_v34  ;;  %v1852_v34 = vunpack.c.h.s8.bf16 %v1094_v24 }
 0x320   :  { %5036 = vmatpush3.bf16.msra.mxu0 %v1813_v44  ;;  %v3820_v44 = vpop.permute.xlu1 %3819 }
 0x321   :  { %5058 = vmatpush3.bf16.msra.mxu1 %v1829_v37  ;;  %5037 = vmatprep.subr.bf16.mxu0 %v1822_v38  ;;  %v1095_v37 = vld [vmem:[#allocation2 + $0xbb0] sm:$0xff]  ;;  %v3813_v46 = vpop.permute.xlu0 %3812 }
 0x322   :  { %5059 = vmatprep.subr.bf16.mxu1 %v1838_v42  ;;  %v4735_v63 = vpop.f32.mrb[60].mxu0  ;;  %v1103_v38 = vld [vmem:[#allocation2 + $0xbf0] sm:$0xff]  ;;  %v5895_v42 = vand.u32 127, %v125_v2 }
 0x323   :  { %v4757_v3 = vpop.f32.mrb[60].mxu1  ;;  %v4736_v6 = vpop.f32.mrb[61].mxu0 }
 0x324   :  { %v4758_v17 = vpop.f32.mrb[61].mxu1  ;;  %v4737_v7 = vadd.f32 %v4736_v6, %v4735_v63  ;;  %v4738_v45 = vpop.f32.mrb[62].mxu0  ;;  %5038 = vmatpush3.bf16.msra.mxu0 %v1814_v51  ;;  %v1853_v51 = vunpack.c.l.s8.bf16 %v1095_v37  ;;  %vm3807_vm0 = vcmp.eq.s32.totalorder %v3806_v32, %v5895_v42  ;;  %vm3814_vm1 = vcmp.eq.s32.totalorder %v3813_v46, %v5895_v42 }
 0x325   :  { %v4759_v18 = vadd.f32 %v4758_v17, %v4757_v3  ;;  %5060 = vmatpush3.bf16.msra.mxu1 %v1830_v13  ;;  %v4760_v48 = vpop.f32.mrb[62].mxu1  ;;  %v4739_v11 = vpop.f32.mrb[63].mxu0  ;;  %5039 = vmatprep.subr.bf16.mxu0 %v1823_v54  ;;  %v1091_v13 = vld [vmem:[#allocation2 + $0xb90] sm:$0xff]  ;;  %v1869_v54 = vunpack.c.l.s8.bf16 %v1103_v38  ;;  %v1854_v63 = vunpack.c.h.s8.bf16 %v1095_v37  ;;  %v1870_v3 = vunpack.c.h.s8.bf16 %v1103_v38  ;;  %v1104_v45 = vld [vmem:[#allocation2 + $0xbf8] sm:$0xff] }
 0x326   :  { %5061 = vmatprep.subr.bf16.mxu1 %v1839_v41  ;;  %v4761_v22 = vpop.f32.mrb[63].mxu1  ;;  %v3108_v26 = vadd.f32 %v4737_v7, %v5864_v35  ;;  %v1097_v35 = vld [vmem:[#allocation2 + $0xbc0] sm:$0xff]  ;;  %v3827_v41 = vpop.permute.xlu1 %3826  ;;  %v1845_v2 = vunpack.c.l.s8.bf16 %v1091_v13  ;;  %v4046_v6 = vsel %vm3807_vm0, 1.0, %v5335_v5  ;;  %v4047_v17 = vsel %vm3814_vm1, 1.0, %v5335_v5  ;;  %v1096_v7 = vld [vmem:[#allocation2 + $0xbb8] sm:$0xff] }
 0x327   :  { %v1857_v4 = vunpack.c.l.s8.bf16 %v1097_v35  ;;  %v1858_v28 = vunpack.c.h.s8.bf16 %v1097_v35  ;;  %vm3821_vm2 = vcmp.eq.s32.totalorder %v3820_v44, %v5895_v42  ;;  %v1855_v11 = vunpack.c.l.s8.bf16 %v1096_v7  ;;  %v1100_v22 = vld [vmem:[#allocation2 + $0xbd8] sm:$0xff] }
 0x328   :  { %v5884_v47 = vadd.f32 %v4759_v18, %v3108_v26  ;;  %5040 = vmatpush3.bf16.msra.mxu0 %v1815_v40  ;;  %v1846_v18 = vunpack.c.h.s8.bf16 %v1091_v13  ;;  %v1862_v40 = vunpack.c.h.s8.bf16 %v1099_v59  ;;  %v4048_v26 = vsel %vm3821_vm2, 1.0, %v5335_v5  ;;  %v5195_v38 = vld [vmem:[#allocation8 + $0x18] sm:$0xff]  }
 0x329   :  { %5062 = vmatpush3.bf16.msra.mxu1 %v1831_v10  ;;  %5041 = vmatprep.subr.bf16.mxu0 %v1824_v12  ;;  %v3817_v10 = vadd.f32 %v4047_v17, %v4046_v6  ;;  %v1092_v12 = vld [vmem:[#allocation2 + $0xb98] sm:$0xff]  ;;  %vm3828_vm3 = vcmp.eq.s32.totalorder %v3827_v41, %v5895_v42  ;;  %v1863_v60 = vunpack.c.l.s8.bf16 %v1100_v22 }
 0x32a   :  { %5063 = vmatprep.subr.bf16.mxu1 %v1840_v52  ;;  %v3834_v48 = vpop.permute.xlu1 %3833  ;;  %v1871_v52 = vunpack.c.l.s8.bf16 %v1104_v45  ;;  %v1847_v35 = vunpack.c.l.s8.bf16 %v1092_v12 }
 0x32b   :  { %vm3835_vm4 = vcmp.eq.s32.totalorder %v3834_v48, %v5895_v42 }
 0x32c   :  { %5042 = vmatpush3.bf16.msra.mxu0 %v1816_v56 }
 0x32d   :  { %5064 = vmatpush3.bf16.msra.mxu1 %v1832_v15  ;;  %5071 = vmatprep.subr.bf16.mxu0 %v1849_v57 }
 0x32e   :  { %5093 = vmatprep.subr.bf16.mxu1 %v1865_v16  ;;  %v3848_v58 = vpop.permute.xlu1 %3847 }
 0x32f   :  { %3666 = vmatmul.mubr.bf16.vlgmr.msra.gmra.mrb[88].mxu0 %v713_v23  ;;  %v3824_v23 = vadd.f32 %v4048_v26, %v3817_v10  ;;  %vm3849_vm6 = vcmp.eq.s32.totalorder %v3848_v58, %v5895_v42 }
 0x330   :  { %3706 = vmatmul.mubr.bf16.vlgmr.msra.gmra.mrb[88].mxu1 %v715_v62  ;;  %5072 = vmatpush3.bf16.msra.mxu0 %v1841_v1  ;;  %v1856_v1 = vunpack.c.h.s8.bf16 %v1096_v7 }
 0x331   :  { %5094 = vmatpush3.bf16.msra.mxu1 %v1857_v4  ;;  %5073 = vmatprep.subr.bf16.mxu0 %v1850_v20  ;;  %v1872_v4 = vunpack.c.h.s8.bf16 %v1104_v45 }
 0x332   :  { %5095 = vmatprep.subr.bf16.mxu1 %v1866_v21  ;;  %3745 = vmatprep.mubr.bf16.mxu0 %v718_v25  ;;  %v4049_v21 = vsel %vm3828_vm3, 1.0, %v5335_v5  ;;  %v3841_v25 = vpop.permute.xlu0 %3840 }
 0x333   :  { %3785 = vmatprep.mubr.bf16.mxu1 %v720_v8  ;;  %v1848_v8 = vunpack.c.h.s8.bf16 %v1092_v12  ;;  %vm3842_vm5 = vcmp.eq.s32.totalorder %v3841_v25, %v5895_v42 }
 0x334   :  { %5074 = vmatpush3.bf16.msra.mxu0 %v1842_v49  ;;  %v1864_v49 = vunpack.c.h.s8.bf16 %v1100_v22 }
 0x335   :  { %5096 = vmatpush3.bf16.msra.mxu1 %v1858_v28  ;;  %5075 = vmatprep.subr.bf16.mxu0 %v1851_v31  ;;  %v3831_v28 = vadd.f32 %v4049_v21, %v3824_v23  ;;  %v4050_v31 = vsel %vm3835_vm4, 1.0, %v5335_v5 }
 0x336   :  { %5097 = vmatprep.subr.bf16.mxu1 %v1867_v29  ;;  %v717_v29 = vpack.c.bf16 %v5879_v61, %v5879_v61  ;;  %v5193_v61 = vld [vmem:[#allocation8 + $0x8] sm:$0xff]  }
 0x337   :  { %v3838_v32 = vadd.f32 %v4050_v31, %v3831_v28 }
 0x338   :  { %5076 = vmatpush3.bf16.msra.mxu0 %v1843_v0  ;;  %v4051_v0 = vsel %vm3842_vm5, 1.0, %v5335_v5 }
 0x339   :  { %5098 = vmatpush3.bf16.msra.mxu1 %v1859_v33  ;;  %5077 = vmatprep.subr.bf16.mxu0 %v1852_v34  ;;  %v3855_v33 = vpop.permute.xlu1 %3854  ;;  %v4052_v34 = vsel %vm3849_vm6, 1.0, %v5335_v5 }
 0x33a   :  { %5099 = vmatprep.subr.bf16.mxu1 %v1868_v36  ;;  %vm3856_vm8 = vcmp.eq.s32.totalorder %v3855_v33, %v5895_v42  ;;  %v5194_v36 = vld [vmem:[#allocation8 + $0x10] sm:$0xff]  }
 0x33b   :  { %v4053_v37 = vsel %vm3856_vm8, 1.0, %v5335_v5 }
 0x33c   :  { %5078 = vmatpush3.bf16.msra.mxu0 %v1844_v27 }
 0x33d   :  { %5100 = vmatpush3.bf16.msra.mxu1 %v1860_v43  ;;  %5079 = vmatprep.subr.bf16.mxu0 %v1853_v51 }
 0x33e   :  { %5101 = vmatprep.subr.bf16.mxu1 %v1869_v54 }
 0x340   :  { %5080 = vmatpush3.bf16.msra.mxu0 %v1845_v2 }
 0x341   :  { %5102 = vmatpush3.bf16.msra.mxu1 %v1861_v50  ;;  %5081 = vmatprep.subr.bf16.mxu0 %v1854_v63 }
 0x342   :  { %5103 = vmatprep.subr.bf16.mxu1 %v1870_v3  ;;  %v4779_v55 = vpop.f32.mrb[64].mxu0 }
 0x343   :  { %v4801_v14 = vpop.f32.mrb[64].mxu1  ;;  %v4780_v56 = vpop.f32.mrb[65].mxu0 }
 0x344   :  { %v4802_v15 = vpop.f32.mrb[65].mxu1  ;;  %v4781_v57 = vadd.f32 %v4780_v56, %v4779_v55  ;;  %v4782_v9 = vpop.f32.mrb[66].mxu0  ;;  %5082 = vmatpush3.bf16.msra.mxu0 %v1846_v18 }
 0x345   :  { %v4803_v16 = vadd.f32 %v4802_v15, %v4801_v14  ;;  %5104 = vmatpush3.bf16.msra.mxu1 %v1862_v40  ;;  %v4804_v19 = vpop.f32.mrb[66].mxu1  ;;  %v4783_v62 = vpop.f32.mrb[67].mxu0  ;;  %5083 = vmatprep.subr.bf16.mxu0 %v1855_v11 }
 0x346   :  { %5105 = vmatprep.subr.bf16.mxu1 %v1871_v52  ;;  %v4805_v20 = vpop.f32.mrb[67].mxu1  ;;  %v3188_v24 = vadd.f32 %v4781_v57, %v5884_v47  ;;  %v719_v47 = vpack.c.bf16 %v5882_v39, %v5882_v39  ;;  %v3845_v39 = vadd.f32 %v4051_v0, %v3838_v32 }
 0x348   :  { %v3228_v53 = vadd.f32 %v4803_v16, %v3188_v24  ;;  %5084 = vmatpush3.bf16.msra.mxu0 %v1847_v35  ;;  %v3852_v44 = vadd.f32 %v4052_v34, %v3845_v39 }
 0x349   :  { %5106 = vmatpush3.bf16.msra.mxu1 %v1863_v60  ;;  %5085 = vmatprep.subr.bf16.mxu0 %v1856_v1 }
 0x34a   :  { %5107 = vmatprep.subr.bf16.mxu1 %v1872_v4  ;;  %v3859_v27 = vadd.f32 %v4053_v37, %v3852_v44 }
 0x34c   :  { %5086 = vmatpush3.bf16.msra.mxu0 %v1848_v8  ;;  %v3860_v43 = vpack.c.bf16 %v3859_v27, %v3859_v27 }
 0x34d   :  { %5108 = vmatpush3.bf16.msra.mxu1 %v1864_v49  ;;  %5122 = vmatprep.subr.bf16.mxu0 %v5335_v5 }
 0x34e   :  { %5134 = vmatprep.subr.mxu1 %v5335_v5 }
 0x34f   :  { %3746 = vmatmul.mubr.bf16.vlgmr.msra.gmra.mrb[92].mxu0 %v717_v29 }
 0x350   :  { %3786 = vmatmul.mubr.bf16.vlgmr.msra.gmra.mrb[92].mxu1 %v719_v47  ;;  %5123 = vmatpush3.bf16.msra.mxu0 %v5192_v30 }
 0x351   :  { %5130 = vmatprep.mubr.msk.bf16.mxu0 %vm5336_vm7, %v5335_v5  ;;  %5124 = vmatprep.subr.bf16.mxu0 %v5335_v5 }
 0x352   :  { %5136 = vmatprep.mubr.msk.f32.mxu1 %vm5336_vm7, %v5335_v5 }
 0x354   :  { %5125 = vmatpush3.bf16.msra.mxu0 %v5193_v61 }
 0x355   :  { %5126 = vmatprep.subr.bf16.mxu0 %v5335_v5 }
 0x358   :  { %5127 = vmatpush3.bf16.msra.mxu0 %v5194_v36 }
 0x359   :  { %5128 = vmatprep.subr.bf16.mxu0 %v5335_v5 }
 0x35c   :  { %5129 = vmatpush3.bf16.msra.mxu0 %v5195_v38 }
 0x35f   :  { %5131 = vmatmul.mubr.msk.bf16.vlgmr.msra.gmra.mrb[96].mxu0 %vm3893_vm9, %v3860_v43 }
 0x362   :  { %v4823_v46 = vpop.f32.mrb[68].mxu0 }
 0x363   :  { %v4845_v51 = vpop.f32.mrb[68].mxu1  ;;  %v4824_v13 = vpop.f32.mrb[69].mxu0 }
 0x364   :  { %v4846_v42 = vpop.f32.mrb[69].mxu1  ;;  %v4825_v54 = vadd.f32 %v4824_v13, %v4823_v46  ;;  %v4826_v59 = vpop.f32.mrb[70].mxu0 }
 0x365   :  { %v4847_v41 = vadd.f32 %v4846_v42, %v4845_v51  ;;  %v4848_v2 = vpop.f32.mrb[70].mxu1  ;;  %v4827_v50 = vpop.f32.mrb[71].mxu0 }
 0x366   :  { %v4849_v63 = vpop.f32.mrb[71].mxu1  ;;  %v3268_v3 = vadd.f32 %v4825_v54, %v3228_v53 }
 0x368   :  { %v3308_v6 = vadd.f32 %v4847_v41, %v3268_v3 }
 0x382   :  { %v4867_v17 = vpop.f32.mrb[72].mxu0 }
 0x383   :  { %v4889_v7 = vpop.f32.mrb[72].mxu1  ;;  %v4868_v45 = vpop.f32.mrb[73].mxu0 }
 0x384   :  { %v4890_v5 = vpop.f32.mrb[73].mxu1  ;;  %v4869_v18 = vadd.f32 %v4868_v45, %v4867_v17  ;;  %v4870_v40 = vpop.f32.mrb[74].mxu0 }
 0x385   :  { %v4891_v10 = vadd.f32 %v4890_v5, %v4889_v7  ;;  %v4892_v48 = vpop.f32.mrb[74].mxu1  ;;  %v4871_v11 = vpop.f32.mrb[75].mxu0 }
 0x386   :  { %v4893_v12 = vpop.f32.mrb[75].mxu1  ;;  %v3348_v52 = vadd.f32 %v4869_v18, %v3308_v6  ;;  %v4045_v48 = vld [vmem:[#allocation5] ss:$0 sm:$0xff] }
 0x388   :  { %v3388_v22 = vadd.f32 %v4891_v10, %v3348_v52 }
 0x3a2   :  { %v4911_v26 = vpop.f32.mrb[76].mxu0 }
 0x3a3   :  { %v4933_v55 = vpop.f32.mrb[76].mxu1  ;;  %v4912_v14 = vpop.f32.mrb[77].mxu0 }
 0x3a4   :  { %v4934_v56 = vpop.f32.mrb[77].mxu1  ;;  %v4913_v15 = vadd.f32 %v4912_v14, %v4911_v26  ;;  %v4914_v57 = vpop.f32.mrb[78].mxu0 }
 0x3a5   :  { %v4935_v9 = vadd.f32 %v4934_v56, %v4933_v55  ;;  %v4936_v16 = vpop.f32.mrb[78].mxu1  ;;  %v4915_v35 = vpop.f32.mrb[79].mxu0 }
 0x3a6   :  { %v4937_v60 = vpop.f32.mrb[79].mxu1  ;;  %v3428_v19 = vadd.f32 %v4913_v15, %v3388_v22 }
 0x3a8   :  { %v3468_v23 = vadd.f32 %v4935_v9, %v3428_v19 }
 0x3c2   :  { %v4955_v62 = vpop.f32.mrb[80].mxu0 }
 0x3c3   :  { %v4977_v1 = vpop.f32.mrb[80].mxu1  ;;  %v4956_v4 = vpop.f32.mrb[81].mxu0 }
 0x3c4   :  { %v4978_v20 = vpop.f32.mrb[81].mxu1  ;;  %v4957_v21 = vadd.f32 %v4956_v4, %v4955_v62  ;;  %v4958_v24 = vpop.f32.mrb[82].mxu0 }
 0x3c5   :  { %v4979_v53 = vadd.f32 %v4978_v20, %v4977_v1  ;;  %v4980_v25 = vpop.f32.mrb[82].mxu1  ;;  %v4959_v8 = vpop.f32.mrb[83].mxu0 }
 0x3c6   :  { %v4981_v49 = vpop.f32.mrb[83].mxu1  ;;  %v3508_v28 = vadd.f32 %v4957_v21, %v3468_v23 }
 0x3c8   :  { %v3548_v31 = vadd.f32 %v4979_v53, %v3508_v28 }
 0x3e2   :  { %v4999_v58 = vpop.f32.mrb[84].mxu0 }
 0x3e3   :  { %v5021_v29 = vpop.f32.mrb[84].mxu1  ;;  %v5000_v47 = vpop.f32.mrb[85].mxu0 }
 0x3e4   :  { %v5022_v30 = vpop.f32.mrb[85].mxu1  ;;  %v5001_v32 = vadd.f32 %v5000_v47, %v4999_v58  ;;  %v5002_v0 = vpop.f32.mrb[86].mxu0 }
 0x3e5   :  { %v5023_v33 = vadd.f32 %v5022_v30, %v5021_v29  ;;  %v5024_v61 = vpop.f32.mrb[86].mxu1  ;;  %v5003_v39 = vpop.f32.mrb[87].mxu0 }
 0x3e6   :  { %v5025_v34 = vpop.f32.mrb[87].mxu1  ;;  %v3588_v36 = vadd.f32 %v5001_v32, %v3548_v31 }
 0x3e8   :  { %v3628_v44 = vadd.f32 %v5023_v33, %v3588_v36 }
 0x402   :  { %v5043_v37 = vpop.f32.mrb[88].mxu0 }
 0x403   :  { %v5065_v38 = vpop.f32.mrb[88].mxu1  ;;  %v5044_v27 = vpop.f32.mrb[89].mxu0 }
 0x404   :  { %v5066_v43 = vpop.f32.mrb[89].mxu1  ;;  %v5045_v46 = vadd.f32 %v5044_v27, %v5043_v37  ;;  %v5046_v51 = vpop.f32.mrb[90].mxu0 }
 0x405   :  { %v5067_v13 = vadd.f32 %v5066_v43, %v5065_v38  ;;  %v5068_v42 = vpop.f32.mrb[90].mxu1  ;;  %v5047_v54 = vpop.f32.mrb[91].mxu0 }
 0x406   :  { %v5069_v59 = vpop.f32.mrb[91].mxu1  ;;  %v3668_v41 = vadd.f32 %v5045_v46, %v3628_v44 }
 0x408   :  { %v3708_v2 = vadd.f32 %v5067_v13, %v3668_v41 }
 0x422   :  { %v5087_v50 = vpop.f32.mrb[92].mxu0 }
 0x423   :  { %v5109_v63 = vpop.f32.mrb[92].mxu1  ;;  %v5088_v3 = vpop.f32.mrb[93].mxu0 }
 0x424   :  { %v5110_v6 = vpop.f32.mrb[93].mxu1  ;;  %v5089_v17 = vadd.f32 %v5088_v3, %v5087_v50  ;;  %v5090_v7 = vpop.f32.mrb[94].mxu0 }
 0x425   :  { %v5111_v45 = vadd.f32 %v5110_v6, %v5109_v63  ;;  %v5112_v5 = vpop.f32.mrb[94].mxu1  ;;  %v5091_v18 = vpop.f32.mrb[95].mxu0 }
 0x426   :  { %v5113_v40 = vpop.f32.mrb[95].mxu1  ;;  %v3748_v10 = vadd.f32 %v5089_v17, %v3708_v2 }
 0x428   :  { %v3788_v11 = vadd.f32 %v5111_v45, %v3748_v10 }
 0x42a   :  { %v3800_v12 = vmul.f32 %v4045_v48, %v3788_v11 }
 0x42c   :  { %v3937_v52 = vmul.f32 %v3800_v12, %v3800_v12 }
 0x42e   :  { %v3939_v22 = vsel %vm3938_vm10, %v3937_v52, 0.0 }
 0x42f   :  { %3940 = vadd.xlane.f32.xlu1 %v3939_v22 }
 0x432   :  { %v3931_v26 = vpop.f32.mrb[96].mxu0 }
 0x433   :  { %v3945_v55 = vmul.f32 %v3931_v26, %v3931_v26  ;;  %v5132_v14 = vpop.f32.mrb[97].mxu0 }
 0x434   :  { %v3934_v56 = vpop.f32.mrb[98].mxu0 }
 0x435   :  { %v5133_v15 = vpop.f32.mrb[99].mxu0  ;;  %v3946_v57 = vsel %vm3938_vm10, %v3945_v55, 0.0 }
 0x436   :  { %3947 = vadd.xlane.f32.xlu0 %v3946_v57 }
 0x4bc   :  { %v3941_v9 = vpop.xlane.xlu1 %3940 }
 0x4bd   :  { %v3942_v16 = vadd.f32 1e-12, %v3941_v9 }
 0x4c3   :  { %v3948_v35 = vpop.xlane.xlu0 %3947 }
 0x4c4   :  { %v3949_v60 = vadd.f32 1e-12, %v3948_v35 }
 0x4c6   :  { %5196 = vrsqrt.f32 %v3949_v60 }
 0x4c7   :  { %5198 = vrsqrt.f32 %v3942_v16 }
 0x4d0   :  { %v5197_v19 = vpop.eup %5196 }
 0x4d1   :  { %v5199_v23 = vpop.eup %5198  ;;  %v3951_v62 = vmul.f32 %v5197_v19, %v3931_v26 }
 0x4d2   :  { %v3944_v1 = vmul.f32 %v5199_v23, %v3800_v12 }
 0x4d3   :  { %5135 = vmatpush3.xpose.msra.mxu1 %v3951_v62 }
 0x4d6   :  { %5137 = vmatmul.mubr.f32.vlgmr.msra.gmra.mrb[96].mxu1 %v3944_v1 }
 0x5a9   :  { %v4018_v4 = vpop.f32.mrb[96].mxu1 }
 0x5aa   :  { %v4022_v20 = vmul.f32 14.285714, %v4018_v4  ;;  %v5138_v21 = vpop.f32.mrb[97].mxu1 }
 0x5ac   :  { %v4024_v24 = vmul.f32 0.01, %v4022_v20 }
 0x5ae   :  { %v4025_v53 = vsub.f32 1.0, %v4024_v24 }
 0x5b0   :  { %4027 = vst.msk [vmem:[#allocation10] sm:$0x3] %vm4026_vm11, %v4025_v53 }
 0x5b1   :  { %5299 = shalt.err (!%p5296_p8)
}
 0x5b2   :  { %s5300_s13 = scalar_lea.hbm %s5944_s5, 32 }
 0x5b3   :  { %p5301_p9 = scmp.ne.s32.totalorder %s5944_s5, %s5300_s13  ;;  %p5304_p10 = scmp.lt.u32.totalorder %s5300_s13, %s5944_s5 }
 0x5b5   :  { %p5306_p11 = pnand %p5304_p10, %p5301_p9 }
 0x5b7   :  { %5309 = shalt.err (!%p5306_p11)
}
 0x5b8   :  { %4037 = dma.vmem_to_hbm [thread:$0]  %s4035_s9, 32, %s5944_s5, [#allocation4]  }
 0x5b9   :  { %5316 = dma.done.wait [#allocation4], 32  }
 0x5ba   :  { %5317 = vsyncadd [#allocation4], 4294967264 }
 0x5bb   :  { %4041 = vsyncpa [#allocation3], 1 }
 0x5bc   :  { %4042 = vsyncpa [#allocation6], 1 }
 0x5bd   :  { %4043 = vsyncpa [#allocation9], 1 }
 0x5be   :  { %4044 = vsyncpa [#allocation4], 1 }

</bundles_post_ra>
